<compile_context>
chip_gen: v7x
topology: tpu7x:2x2x1
jax: 0.10.0
libtpu: 0.0.40
codegen_flags: <defaults>
</compile_context>

<pallas_src>
import functools

import jax
import jax.numpy as jnp
from jax.experimental import pallas as pl
from jax.experimental.pallas import tpu as pltpu


# ----------------------------------------------------------------------------
# Wrapper-side weight preparation
# ----------------------------------------------------------------------------
def build_band_weights(w, scale, *, w_in, stride, pad):
    """Fold BN scale into conv weights and build per-(kd,kh) banded W-operands.

    w: (K, K, K, Ci, Co) conv weights (DHWIO), scale: (Co,) BN scale.
    Returns:
      B: (K, K, w_in*Ci, w_out*Co) with
         B[kd, kh, w*Ci+ci, wo*Co+co] = (w*scale)[kd, kh, kw, ci, co]
         where kw = w - wo*stride + pad, zero if kw is outside [0, K).
         (i.e. the W convolution, its zero-padding and its stride are all
          encoded in this band matrix.)
      w_out: output width.
    """
    K = w.shape[0]
    Ci = w.shape[3]
    Co = w.shape[4]
    w_out = (w_in + 2 * pad - K) // stride + 1

    wf = (w * scale[None, None, None, None, :]).astype(jnp.float32)

    kw = jnp.arange(K)[:, None, None]          # (K, 1, 1)
    wpos = jnp.arange(w_in)[None, :, None]     # (1, w_in, 1)
    wo = jnp.arange(w_out)[None, None, :]      # (1, 1, w_out)
    M = (wpos == wo * stride + kw - pad).astype(jnp.float32)   # (K, w_in, w_out)

    # B[kd, kh, w, ci, wo, co] = sum_kw wf[kd,kh,kw,ci,co] * M[kw, w, wo]
    B = jnp.einsum('dhkic,kwo->dhwioc', wf, M)
    return B.reshape(K, K, w_in * Ci, w_out * Co), w_out


# ----------------------------------------------------------------------------
# Fused kernel: conv1+bn+relu -> conv2+bn+relu -> conv3+bn+relu
# ----------------------------------------------------------------------------
def _fused_kernel(x_ref, b1_ref, bias1_ref, b2_ref, bias2_ref, b3_ref,
                  bias3_ref, o_ref, a1_ref, a2_ref, *,
                  K, stride, Do, Ho, Wo, C, Cin, W):
    M = Do * Ho
    L_in = W * Cin
    L = Wo * C

    # ---- layer 1: Cin -> C, stride `stride` --------------------------------
    acc = jnp.zeros((M, L), jnp.float32)
    if stride == 1:
        for kd in range(K):
            for kh in range(K):
                slab = x_ref[pl.ds(kd, Do), pl.ds(kh, Ho), :]      # (Do,Ho,W*Cin)
                acc = acc + jnp.dot(slab.reshape(M, L_in),
                                    b1_ref[kd, kh, :, :],
                                    preferred_element_type=jnp.float32)
    else:
        # Strided D/H taps: slice the loaded value (W-stride is already in B1).
        xv = x_ref[...]
        for kd in range(K):
            for kh in range(K):
                slab = xv[kd:kd + (Do - 1) * stride + 1:stride,
                          kh:kh + (Ho - 1) * stride + 1:stride, :]
                acc = acc + jnp.dot(slab.reshape(M, L_in),
                                    b1_ref[kd, kh, :, :],
                                    preferred_element_type=jnp.float32)
    h = jnp.maximum(acc + bias1_ref[...], 0.0)                     # BN(eval)+ReLU

    # Stash into D/H-haloed VMEM scratch (halo rows stay zero; W-padding is
    # already handled inside the band matrices of the next layer).
    a1_ref[...] = jnp.zeros(a1_ref.shape, jnp.float32)
    a1_ref[pl.ds(1, Do), pl.ds(1, Ho), :] = h.reshape(Do, Ho, L)

    # ---- layer 2: C -> C, stride 1 ------------------------------------------
    acc = jnp.zeros((M, L), jnp.float32)
    for kd in range(K):
        for kh in range(K):
            slab = a1_ref[pl.ds(kd, Do), pl.ds(kh, Ho), :]         # (Do,Ho,Wo*C)
            acc = acc + jnp.dot(slab.reshape(M, L),
                                b2_ref[kd, kh, :, :],
                                preferred_element_type=jnp.float32)
    h = jnp.maximum(acc + bias2_ref[...], 0.0)

    a2_ref[...] = jnp.zeros(a2_ref.shape, jnp.float32)
    a2_ref[pl.ds(1, Do), pl.ds(1, Ho), :] = h.reshape(Do, Ho, L)

    # ---- layer 3: C -> C, stride 1 ------------------------------------------
    acc = jnp.zeros((M, L), jnp.float32)
    for kd in range(K):
        for kh in range(K):
            slab = a2_ref[pl.ds(kd, Do), pl.ds(kh, Ho), :]
            acc = acc + jnp.dot(slab.reshape(M, L),
                                b3_ref[kd, kh, :, :],
                                preferred_element_type=jnp.float32)
    h = jnp.maximum(acc + bias3_ref[...], 0.0)

    # Lane-dense output store: (Do*Ho, Wo*C) -- e.g. (128, 128) at demo shapes.
    o_ref[...] = h.astype(o_ref.dtype)


# ----------------------------------------------------------------------------
# Forward wrapper (equivalent of Conv3DBlock.forward)
# ----------------------------------------------------------------------------
def conv3d_block_forward(x_ncdhw, layer_params):
    """x_ncdhw: (N, Cin, D, H, W).  layer_params: 3x (w, scale, bias, stride)
    with w in DHWIO layout (K, K, K, Cin, Cout)."""
    N, Cin, D, H, W = x_ncdhw.shape
    K, pad = 3, 1
    (w1, s1, b1, st1), (w2, s2, b2, st2), (w3, s3, b3, st3) = layer_params
    assert st2 == 1 and st3 == 1, "GCNet Conv3DBlock layers 2/3 use stride 1"
    C = w1.shape[-1]

    # Output spatial dims after layer 1 (layers 2/3 preserve them).
    Do = (D + 2 * pad - K) // st1 + 1
    Ho = (H + 2 * pad - K) // st1 + 1

    # Banded weights (BN scale folded in) + tiled BN biases.
    B1, Wo = build_band_weights(w1, s1, w_in=W, stride=st1, pad=pad)
    B2, _ = build_band_weights(w2, s2, w_in=Wo, stride=1, pad=pad)
    B3, _ = build_band_weights(w3, s3, w_in=Wo, stride=1, pad=pad)
    bias1 = jnp.tile(b1.astype(jnp.float32), Wo).reshape(1, Wo * C)
    bias2 = jnp.tile(b2.astype(jnp.float32), Wo).reshape(1, Wo * C)
    bias3 = jnp.tile(b3.astype(jnp.float32), Wo).reshape(1, Wo * C)

    # NCDHW -> NDHWC, pad D/H halos only (W padding lives in the band matrices),
    # then fold (W, Cin) into one lane axis.
    x = jnp.transpose(x_ncdhw, (0, 2, 3, 4, 1)).astype(jnp.float32)
    x = jnp.pad(x, ((0, 0), (pad, pad), (pad, pad), (0, 0), (0, 0)))
    Dp, Hp = D + 2 * pad, H + 2 * pad
    x = x.reshape(N, Dp, Hp, W * Cin)

    kernel = functools.partial(_fused_kernel, K=K, stride=st1,
                               Do=Do, Ho=Ho, Wo=Wo, C=C, Cin=Cin, W=W)

    out = pl.pallas_call(
        kernel,
        out_shape=jax.ShapeDtypeStruct((N, Do * Ho, Wo * C), jnp.float32),
        grid=(N,),
        in_specs=[
            pl.BlockSpec((None, Dp, Hp, W * Cin), lambda n: (n, 0, 0, 0)),
            pl.BlockSpec(B1.shape, lambda n: (0, 0, 0, 0)),
            pl.BlockSpec(bias1.shape, lambda n: (0, 0)),
            pl.BlockSpec(B2.shape, lambda n: (0, 0, 0, 0)),
            pl.BlockSpec(bias2.shape, lambda n: (0, 0)),
            pl.BlockSpec(B3.shape, lambda n: (0, 0, 0, 0)),
            pl.BlockSpec(bias3.shape, lambda n: (0, 0)),
        ],
        out_specs=pl.BlockSpec((None, Do * Ho, Wo * C), lambda n: (n, 0, 0)),
        scratch_shapes=[
            pltpu.VMEM((Do + 2, Ho + 2, Wo * C), jnp.float32),   # act of layer 1
            pltpu.VMEM((Do + 2, Ho + 2, Wo * C), jnp.float32),   # act of layer 2
        ],
        compiler_params=pltpu.CompilerParams(
            dimension_semantics=("parallel",)),
    )(x, B1, bias1, B2, bias2, B3, bias3)

    out = out.reshape(N, Do, Ho, Wo, C)
    return jnp.transpose(out, (0, 4, 1, 2, 3))                   # NDHWC -> NCDHW


# ----------------------------------------------------------------------------
# Param construction + pure-JAX reference
# ----------------------------------------------------------------------------
def make_convbn_params(key, cin, cout, k=3):
    kw_, kg, kb, km, kv = jax.random.split(key, 5)
    fan_in = k * k * k * cin
    w = jax.random.normal(kw_, (k, k, k, cin, cout), jnp.float32) / jnp.sqrt(fan_in)
    gamma = 1.0 + 0.1 * jax.random.normal(kg, (cout,), jnp.float32)
    beta = 0.1 * jax.random.normal(kb, (cout,), jnp.float32)
    running_mean = 0.1 * jax.random.normal(km, (cout,), jnp.float32)
    running_var = 1.0 + 0.1 * jax.random.uniform(kv, (cout,), jnp.float32)
    eps = 1e-5
    scale = gamma / jnp.sqrt(running_var + eps)
    bias = beta - running_mean * scale
    return w, scale, bias


def ref_conv_bn_relu(x_ndhwc, w, scale, bias, stride):
    y = jax.lax.conv_general_dilated(
        x_ndhwc, w,
        window_strides=(stride, stride, stride),
        padding=[(1, 1), (1, 1), (1, 1)],
        dimension_numbers=("NDHWC", "DHWIO", "NDHWC"),
        precision=jax.lax.Precision.HIGHEST)
    return jnp.maximum(y * scale + bias, 0.0)


if __name__ == "__main__":
    # Small shapes consistent with the module: in_planes=4, planes=8.
    N, Cin, D, H, W = 2, 4, 8, 16, 16
    planes = 8
    stride = 1

    key = jax.random.PRNGKey(0)
    kx, k1, k2, k3 = jax.random.split(key, 4)

    x = jax.random.normal(kx, (N, Cin, D, H, W), jnp.float32)

    w1, s1, b1 = make_convbn_params(k1, Cin, planes)
    w2, s2, b2 = make_convbn_params(k2, planes, planes)
    w3, s3, b3 = make_convbn_params(k3, planes, planes)

    layer_params = [(w1, s1, b1, stride), (w2, s2, b2, 1), (w3, s3, b3, 1)]

    out = conv3d_block_forward(x, layer_params)
    out = jax.block_until_ready(out)
    assert out.shape == (N, planes, D // stride, H // stride, W // stride), out.shape

    # Pure-JAX reference (channels-last) for sanity.
    xr = jnp.transpose(x, (0, 2, 3, 4, 1))
    for (w, s, b, st) in layer_params:
        xr = ref_conv_bn_relu(xr, w, s, b, st)
    ref = jnp.transpose(xr, (0, 4, 1, 2, 3))
    assert jnp.allclose(out, ref, rtol=1e-3, atol=1e-3), float(
        jnp.max(jnp.abs(out - ref)))

    print("KERNEL_OK")
</pallas_src>

<mosaic_0001>
module attributes {stable_mosaic.version = 11 : i64} {
  func.func @_fused_kernel(%arg0: i32, %arg1: memref<1x10x18x64xf32, #tpu.memory_space<vmem>>, %arg2: memref<3x3x64x128xf32, #tpu.memory_space<vmem>>, %arg3: memref<1x128xf32, #tpu.memory_space<vmem>>, %arg4: memref<3x3x128x128xf32, #tpu.memory_space<vmem>>, %arg5: memref<1x128xf32, #tpu.memory_space<vmem>>, %arg6: memref<3x3x128x128xf32, #tpu.memory_space<vmem>>, %arg7: memref<1x128xf32, #tpu.memory_space<vmem>>, %arg8: memref<1x128x128xf32, #tpu.memory_space<vmem>>, %arg9: memref<10x18x128xf32, #tpu.memory_space<vmem>>, %arg10: memref<10x18x128xf32, #tpu.memory_space<vmem>>) attributes {dimension_semantics = [#tpu.dimension_semantics<parallel>], iteration_bounds = array<i64: 2>, scalar_prefetch = 0 : i64, scratch_operands = 2 : i64, tpu.core_type = #tpu.core_type<tc>, window_params = [{transform_indices = @transform_0, window_bounds = array<i64: 1, 10, 18, 64>}, {pipeline_mode = #tpu.pipeline_mode<synchronous>, transform_indices = @transform_1, window_bounds = array<i64: 3, 3, 64, 128>}, {pipeline_mode = #tpu.pipeline_mode<synchronous>, transform_indices = @transform_2, window_bounds = array<i64: 1, 128>}, {pipeline_mode = #tpu.pipeline_mode<synchronous>, transform_indices = @transform_3, window_bounds = array<i64: 3, 3, 128, 128>}, {pipeline_mode = #tpu.pipeline_mode<synchronous>, transform_indices = @transform_4, window_bounds = array<i64: 1, 128>}, {pipeline_mode = #tpu.pipeline_mode<synchronous>, transform_indices = @transform_5, window_bounds = array<i64: 3, 3, 128, 128>}, {pipeline_mode = #tpu.pipeline_mode<synchronous>, transform_indices = @transform_6, window_bounds = array<i64: 1, 128>}, {transform_indices = @transform_7, window_bounds = array<i64: 1, 128, 128>}]} {
    %cst = arith.constant 0.000000e+00 : f32
    %0 = vector.broadcast %cst : f32 to vector<128x128xf32>
    %c0 = arith.constant 0 : index
    %c0_0 = arith.constant 0 : index
    %c0_1 = arith.constant 0 : index
    %c0_2 = arith.constant 0 : index
    %1 = vector.load %arg1[%c0, %c0_0, %c0_1, %c0_2] : memref<1x10x18x64xf32, #tpu.memory_space<vmem>>, vector<1x8x16x64xf32>
    %2 = vector.shape_cast %1 : vector<1x8x16x64xf32> to vector<8x16x64xf32>
    %3 = vector.shape_cast %2 : vector<8x16x64xf32> to vector<128x64xf32>
    %c0_3 = arith.constant 0 : index
    %c0_4 = arith.constant 0 : index
    %c0_5 = arith.constant 0 : index
    %c0_6 = arith.constant 0 : index
    %4 = vector.load %arg2[%c0_3, %c0_4, %c0_5, %c0_6] : memref<3x3x64x128xf32, #tpu.memory_space<vmem>>, vector<1x1x64x128xf32>
    %5 = vector.shape_cast %4 : vector<1x1x64x128xf32> to vector<64x128xf32>
    %cst_7 = arith.constant dense<0.000000e+00> : vector<128x128xf32>
    %6 = tpu.matmul %3, %5, %cst_7 {dimension_numbers = #tpu.dot_dimension_numbers<[1], [0], [0], [1], [0, 0, 1, 1], [], []>} : vector<128x64xf32>, vector<64x128xf32>, vector<128x128xf32> -> vector<128x128xf32>
    %7 = arith.addf %0, %6 : vector<128x128xf32>
    %c0_8 = arith.constant 0 : index
    %c0_9 = arith.constant 0 : index
    %c1 = arith.constant 1 : index
    %c0_10 = arith.constant 0 : index
    %8 = vector.load %arg1[%c0_8, %c0_9, %c1, %c0_10] : memref<1x10x18x64xf32, #tpu.memory_space<vmem>>, vector<1x8x16x64xf32>
    %9 = vector.shape_cast %8 : vector<1x8x16x64xf32> to vector<8x16x64xf32>
    %10 = vector.shape_cast %9 : vector<8x16x64xf32> to vector<128x64xf32>
    %c0_11 = arith.constant 0 : index
    %c1_12 = arith.constant 1 : index
    %c0_13 = arith.constant 0 : index
    %c0_14 = arith.constant 0 : index
    %11 = vector.load %arg2[%c0_11, %c1_12, %c0_13, %c0_14] : memref<3x3x64x128xf32, #tpu.memory_space<vmem>>, vector<1x1x64x128xf32>
    %12 = vector.shape_cast %11 : vector<1x1x64x128xf32> to vector<64x128xf32>
    %cst_15 = arith.constant dense<0.000000e+00> : vector<128x128xf32>
    %13 = tpu.matmul %10, %12, %cst_15 {dimension_numbers = #tpu.dot_dimension_numbers<[1], [0], [0], [1], [0, 0, 1, 1], [], []>} : vector<128x64xf32>, vector<64x128xf32>, vector<128x128xf32> -> vector<128x128xf32>
    %14 = arith.addf %7, %13 : vector<128x128xf32>
    %c0_16 = arith.constant 0 : index
    %c0_17 = arith.constant 0 : index
    %c2 = arith.constant 2 : index
    %c0_18 = arith.constant 0 : index
    %15 = vector.load %arg1[%c0_16, %c0_17, %c2, %c0_18] : memref<1x10x18x64xf32, #tpu.memory_space<vmem>>, vector<1x8x16x64xf32>
    %16 = vector.shape_cast %15 : vector<1x8x16x64xf32> to vector<8x16x64xf32>
    %17 = vector.shape_cast %16 : vector<8x16x64xf32> to vector<128x64xf32>
    %c0_19 = arith.constant 0 : index
    %c2_20 = arith.constant 2 : index
    %c0_21 = arith.constant 0 : index
    %c0_22 = arith.constant 0 : index
    %18 = vector.load %arg2[%c0_19, %c2_20, %c0_21, %c0_22] : memref<3x3x64x128xf32, #tpu.memory_space<vmem>>, vector<1x1x64x128xf32>
    %19 = vector.shape_cast %18 : vector<1x1x64x128xf32> to vector<64x128xf32>
    %cst_23 = arith.constant dense<0.000000e+00> : vector<128x128xf32>
    %20 = tpu.matmul %17, %19, %cst_23 {dimension_numbers = #tpu.dot_dimension_numbers<[1], [0], [0], [1], [0, 0, 1, 1], [], []>} : vector<128x64xf32>, vector<64x128xf32>, vector<128x128xf32> -> vector<128x128xf32>
    %21 = arith.addf %14, %20 : vector<128x128xf32>
    %c0_24 = arith.constant 0 : index
    %c1_25 = arith.constant 1 : index
    %c0_26 = arith.constant 0 : index
    %c0_27 = arith.constant 0 : index
    %22 = vector.load %arg1[%c0_24, %c1_25, %c0_26, %c0_27] : memref<1x10x18x64xf32, #tpu.memory_space<vmem>>, vector<1x8x16x64xf32>
    %23 = vector.shape_cast %22 : vector<1x8x16x64xf32> to vector<8x16x64xf32>
    %24 = vector.shape_cast %23 : vector<8x16x64xf32> to vector<128x64xf32>
    %c1_28 = arith.constant 1 : index
    %c0_29 = arith.constant 0 : index
    %c0_30 = arith.constant 0 : index
    %c0_31 = arith.constant 0 : index
    %25 = vector.load %arg2[%c1_28, %c0_29, %c0_30, %c0_31] : memref<3x3x64x128xf32, #tpu.memory_space<vmem>>, vector<1x1x64x128xf32>
    %26 = vector.shape_cast %25 : vector<1x1x64x128xf32> to vector<64x128xf32>
    %cst_32 = arith.constant dense<0.000000e+00> : vector<128x128xf32>
    %27 = tpu.matmul %24, %26, %cst_32 {dimension_numbers = #tpu.dot_dimension_numbers<[1], [0], [0], [1], [0, 0, 1, 1], [], []>} : vector<128x64xf32>, vector<64x128xf32>, vector<128x128xf32> -> vector<128x128xf32>
    %28 = arith.addf %21, %27 : vector<128x128xf32>
    %c0_33 = arith.constant 0 : index
    %c1_34 = arith.constant 1 : index
    %c1_35 = arith.constant 1 : index
    %c0_36 = arith.constant 0 : index
    %29 = vector.load %arg1[%c0_33, %c1_34, %c1_35, %c0_36] : memref<1x10x18x64xf32, #tpu.memory_space<vmem>>, vector<1x8x16x64xf32>
    %30 = vector.shape_cast %29 : vector<1x8x16x64xf32> to vector<8x16x64xf32>
    %31 = vector.shape_cast %30 : vector<8x16x64xf32> to vector<128x64xf32>
    %c1_37 = arith.constant 1 : index
    %c1_38 = arith.constant 1 : index
    %c0_39 = arith.constant 0 : index
    %c0_40 = arith.constant 0 : index
    %32 = vector.load %arg2[%c1_37, %c1_38, %c0_39, %c0_40] : memref<3x3x64x128xf32, #tpu.memory_space<vmem>>, vector<1x1x64x128xf32>
    %33 = vector.shape_cast %32 : vector<1x1x64x128xf32> to vector<64x128xf32>
    %cst_41 = arith.constant dense<0.000000e+00> : vector<128x128xf32>
    %34 = tpu.matmul %31, %33, %cst_41 {dimension_numbers = #tpu.dot_dimension_numbers<[1], [0], [0], [1], [0, 0, 1, 1], [], []>} : vector<128x64xf32>, vector<64x128xf32>, vector<128x128xf32> -> vector<128x128xf32>
    %35 = arith.addf %28, %34 : vector<128x128xf32>
    %c0_42 = arith.constant 0 : index
    %c1_43 = arith.constant 1 : index
    %c2_44 = arith.constant 2 : index
    %c0_45 = arith.constant 0 : index
    %36 = vector.load %arg1[%c0_42, %c1_43, %c2_44, %c0_45] : memref<1x10x18x64xf32, #tpu.memory_space<vmem>>, vector<1x8x16x64xf32>
    %37 = vector.shape_cast %36 : vector<1x8x16x64xf32> to vector<8x16x64xf32>
    %38 = vector.shape_cast %37 : vector<8x16x64xf32> to vector<128x64xf32>
    %c1_46 = arith.constant 1 : index
    %c2_47 = arith.constant 2 : index
    %c0_48 = arith.constant 0 : index
    %c0_49 = arith.constant 0 : index
    %39 = vector.load %arg2[%c1_46, %c2_47, %c0_48, %c0_49] : memref<3x3x64x128xf32, #tpu.memory_space<vmem>>, vector<1x1x64x128xf32>
    %40 = vector.shape_cast %39 : vector<1x1x64x128xf32> to vector<64x128xf32>
    %cst_50 = arith.constant dense<0.000000e+00> : vector<128x128xf32>
    %41 = tpu.matmul %38, %40, %cst_50 {dimension_numbers = #tpu.dot_dimension_numbers<[1], [0], [0], [1], [0, 0, 1, 1], [], []>} : vector<128x64xf32>, vector<64x128xf32>, vector<128x128xf32> -> vector<128x128xf32>
    %42 = arith.addf %35, %41 : vector<128x128xf32>
    %c0_51 = arith.constant 0 : index
    %c2_52 = arith.constant 2 : index
    %c0_53 = arith.constant 0 : index
    %c0_54 = arith.constant 0 : index
    %43 = vector.load %arg1[%c0_51, %c2_52, %c0_53, %c0_54] : memref<1x10x18x64xf32, #tpu.memory_space<vmem>>, vector<1x8x16x64xf32>
    %44 = vector.shape_cast %43 : vector<1x8x16x64xf32> to vector<8x16x64xf32>
    %45 = vector.shape_cast %44 : vector<8x16x64xf32> to vector<128x64xf32>
    %c2_55 = arith.constant 2 : index
    %c0_56 = arith.constant 0 : index
    %c0_57 = arith.constant 0 : index
    %c0_58 = arith.constant 0 : index
    %46 = vector.load %arg2[%c2_55, %c0_56, %c0_57, %c0_58] : memref<3x3x64x128xf32, #tpu.memory_space<vmem>>, vector<1x1x64x128xf32>
    %47 = vector.shape_cast %46 : vector<1x1x64x128xf32> to vector<64x128xf32>
    %cst_59 = arith.constant dense<0.000000e+00> : vector<128x128xf32>
    %48 = tpu.matmul %45, %47, %cst_59 {dimension_numbers = #tpu.dot_dimension_numbers<[1], [0], [0], [1], [0, 0, 1, 1], [], []>} : vector<128x64xf32>, vector<64x128xf32>, vector<128x128xf32> -> vector<128x128xf32>
    %49 = arith.addf %42, %48 : vector<128x128xf32>
    %c0_60 = arith.constant 0 : index
    %c2_61 = arith.constant 2 : index
    %c1_62 = arith.constant 1 : index
    %c0_63 = arith.constant 0 : index
    %50 = vector.load %arg1[%c0_60, %c2_61, %c1_62, %c0_63] : memref<1x10x18x64xf32, #tpu.memory_space<vmem>>, vector<1x8x16x64xf32>
    %51 = vector.shape_cast %50 : vector<1x8x16x64xf32> to vector<8x16x64xf32>
    %52 = vector.shape_cast %51 : vector<8x16x64xf32> to vector<128x64xf32>
    %c2_64 = arith.constant 2 : index
    %c1_65 = arith.constant 1 : index
    %c0_66 = arith.constant 0 : index
    %c0_67 = arith.constant 0 : index
    %53 = vector.load %arg2[%c2_64, %c1_65, %c0_66, %c0_67] : memref<3x3x64x128xf32, #tpu.memory_space<vmem>>, vector<1x1x64x128xf32>
    %54 = vector.shape_cast %53 : vector<1x1x64x128xf32> to vector<64x128xf32>
    %cst_68 = arith.constant dense<0.000000e+00> : vector<128x128xf32>
    %55 = tpu.matmul %52, %54, %cst_68 {dimension_numbers = #tpu.dot_dimension_numbers<[1], [0], [0], [1], [0, 0, 1, 1], [], []>} : vector<128x64xf32>, vector<64x128xf32>, vector<128x128xf32> -> vector<128x128xf32>
    %56 = arith.addf %49, %55 : vector<128x128xf32>
    %c0_69 = arith.constant 0 : index
    %c2_70 = arith.constant 2 : index
    %c2_71 = arith.constant 2 : index
    %c0_72 = arith.constant 0 : index
    %57 = vector.load %arg1[%c0_69, %c2_70, %c2_71, %c0_72] : memref<1x10x18x64xf32, #tpu.memory_space<vmem>>, vector<1x8x16x64xf32>
    %58 = vector.shape_cast %57 : vector<1x8x16x64xf32> to vector<8x16x64xf32>
    %59 = vector.shape_cast %58 : vector<8x16x64xf32> to vector<128x64xf32>
    %c2_73 = arith.constant 2 : index
    %c2_74 = arith.constant 2 : index
    %c0_75 = arith.constant 0 : index
    %c0_76 = arith.constant 0 : index
    %60 = vector.load %arg2[%c2_73, %c2_74, %c0_75, %c0_76] : memref<3x3x64x128xf32, #tpu.memory_space<vmem>>, vector<1x1x64x128xf32>
    %61 = vector.shape_cast %60 : vector<1x1x64x128xf32> to vector<64x128xf32>
    %cst_77 = arith.constant dense<0.000000e+00> : vector<128x128xf32>
    %62 = tpu.matmul %59, %61, %cst_77 {dimension_numbers = #tpu.dot_dimension_numbers<[1], [0], [0], [1], [0, 0, 1, 1], [], []>} : vector<128x64xf32>, vector<64x128xf32>, vector<128x128xf32> -> vector<128x128xf32>
    %63 = arith.addf %56, %62 : vector<128x128xf32>
    %c0_78 = arith.constant 0 : index
    %c0_79 = arith.constant 0 : index
    %64 = vector.load %arg3[%c0_78, %c0_79] : memref<1x128xf32, #tpu.memory_space<vmem>>, vector<1x128xf32>
    %65 = vector.broadcast %64 : vector<1x128xf32> to vector<128x128xf32>
    %66 = arith.addf %63, %65 : vector<128x128xf32>
    %cst_80 = arith.constant 0.000000e+00 : f32
    %67 = vector.broadcast %cst_80 : f32 to vector<128x128xf32>
    %68 = arith.maximumf %66, %67 : vector<128x128xf32>
    %cst_81 = arith.constant 0.000000e+00 : f32
    %69 = vector.broadcast %cst_81 : f32 to vector<10x18x128xf32>
    %c0_82 = arith.constant 0 : index
    %c0_83 = arith.constant 0 : index
    %c0_84 = arith.constant 0 : index
    %70 = vector.load %arg9[%c0_82, %c0_83, %c0_84] : memref<10x18x128xf32, #tpu.memory_space<vmem>>, vector<10x18x128xf32>
    tpu.vector_store %arg9[%c0_82, %c0_83, %c0_84], %69 {strides = array<i32>} : memref<10x18x128xf32, #tpu.memory_space<vmem>>, vector<10x18x128xf32>,
    %71 = vector.shape_cast %68 : vector<128x128xf32> to vector<8x16x128xf32>
    %c1_85 = arith.constant 1 : index
    %c1_86 = arith.constant 1 : index
    %c0_87 = arith.constant 0 : index
    %72 = vector.load %arg9[%c1_85, %c1_86, %c0_87] : memref<10x18x128xf32, #tpu.memory_space<vmem>>, vector<8x16x128xf32>
    tpu.vector_store %arg9[%c1_85, %c1_86, %c0_87], %71 {strides = array<i32>} : memref<10x18x128xf32, #tpu.memory_space<vmem>>, vector<8x16x128xf32>,
    %cst_88 = arith.constant 0.000000e+00 : f32
    %73 = vector.broadcast %cst_88 : f32 to vector<128x128xf32>
    %c0_89 = arith.constant 0 : index
    %c0_90 = arith.constant 0 : index
    %c0_91 = arith.constant 0 : index
    %74 = vector.load %arg9[%c0_89, %c0_90, %c0_91] : memref<10x18x128xf32, #tpu.memory_space<vmem>>, vector<8x16x128xf32>
    %75 = vector.shape_cast %74 : vector<8x16x128xf32> to vector<128x128xf32>
    %c0_92 = arith.constant 0 : index
    %c0_93 = arith.constant 0 : index
    %c0_94 = arith.constant 0 : index
    %c0_95 = arith.constant 0 : index
    %76 = vector.load %arg4[%c0_92, %c0_93, %c0_94, %c0_95] : memref<3x3x128x128xf32, #tpu.memory_space<vmem>>, vector<1x1x128x128xf32>
    %77 = vector.shape_cast %76 : vector<1x1x128x128xf32> to vector<128x128xf32>
    %cst_96 = arith.constant dense<0.000000e+00> : vector<128x128xf32>
    %78 = tpu.matmul %75, %77, %cst_96 {dimension_numbers = #tpu.dot_dimension_numbers<[1], [0], [0], [1], [0, 0, 1, 1], [], []>} : vector<128x128xf32>, vector<128x128xf32>, vector<128x128xf32> -> vector<128x128xf32>
    %79 = arith.addf %73, %78 : vector<128x128xf32>
    %c0_97 = arith.constant 0 : index
    %c1_98 = arith.constant 1 : index
    %c0_99 = arith.constant 0 : index
    %80 = vector.load %arg9[%c0_97, %c1_98, %c0_99] : memref<10x18x128xf32, #tpu.memory_space<vmem>>, vector<8x16x128xf32>
    %81 = vector.shape_cast %80 : vector<8x16x128xf32> to vector<128x128xf32>
    %c0_100 = arith.constant 0 : index
    %c1_101 = arith.constant 1 : index
    %c0_102 = arith.constant 0 : index
    %c0_103 = arith.constant 0 : index
    %82 = vector.load %arg4[%c0_100, %c1_101, %c0_102, %c0_103] : memref<3x3x128x128xf32, #tpu.memory_space<vmem>>, vector<1x1x128x128xf32>
    %83 = vector.shape_cast %82 : vector<1x1x128x128xf32> to vector<128x128xf32>
    %cst_104 = arith.constant dense<0.000000e+00> : vector<128x128xf32>
    %84 = tpu.matmul %81, %83, %cst_104 {dimension_numbers = #tpu.dot_dimension_numbers<[1], [0], [0], [1], [0, 0, 1, 1], [], []>} : vector<128x128xf32>, vector<128x128xf32>, vector<128x128xf32> -> vector<128x128xf32>
    %85 = arith.addf %79, %84 : vector<128x128xf32>
    %c0_105 = arith.constant 0 : index
    %c2_106 = arith.constant 2 : index
    %c0_107 = arith.constant 0 : index
    %86 = vector.load %arg9[%c0_105, %c2_106, %c0_107] : memref<10x18x128xf32, #tpu.memory_space<vmem>>, vector<8x16x128xf32>
    %87 = vector.shape_cast %86 : vector<8x16x128xf32> to vector<128x128xf32>
    %c0_108 = arith.constant 0 : index
    %c2_109 = arith.constant 2 : index
    %c0_110 = arith.constant 0 : index
    %c0_111 = arith.constant 0 : index
    %88 = vector.load %arg4[%c0_108, %c2_109, %c0_110, %c0_111] : memref<3x3x128x128xf32, #tpu.memory_space<vmem>>, vector<1x1x128x128xf32>
    %89 = vector.shape_cast %88 : vector<1x1x128x128xf32> to vector<128x128xf32>
    %cst_112 = arith.constant dense<0.000000e+00> : vector<128x128xf32>
    %90 = tpu.matmul %87, %89, %cst_112 {dimension_numbers = #tpu.dot_dimension_numbers<[1], [0], [0], [1], [0, 0, 1, 1], [], []>} : vector<128x128xf32>, vector<128x128xf32>, vector<128x128xf32> -> vector<128x128xf32>
    %91 = arith.addf %85, %90 : vector<128x128xf32>
    %c1_113 = arith.constant 1 : index
    %c0_114 = arith.constant 0 : index
    %c0_115 = arith.constant 0 : index
    %92 = vector.load %arg9[%c1_113, %c0_114, %c0_115] : memref<10x18x128xf32, #tpu.memory_space<vmem>>, vector<8x16x128xf32>
    %93 = vector.shape_cast %92 : vector<8x16x128xf32> to vector<128x128xf32>
    %c1_116 = arith.constant 1 : index
    %c0_117 = arith.constant 0 : index
    %c0_118 = arith.constant 0 : index
    %c0_119 = arith.constant 0 : index
    %94 = vector.load %arg4[%c1_116, %c0_117, %c0_118, %c0_119] : memref<3x3x128x128xf32, #tpu.memory_space<vmem>>, vector<1x1x128x128xf32>
    %95 = vector.shape_cast %94 : vector<1x1x128x128xf32> to vector<128x128xf32>
    %cst_120 = arith.constant dense<0.000000e+00> : vector<128x128xf32>
    %96 = tpu.matmul %93, %95, %cst_120 {dimension_numbers = #tpu.dot_dimension_numbers<[1], [0], [0], [1], [0, 0, 1, 1], [], []>} : vector<128x128xf32>, vector<128x128xf32>, vector<128x128xf32> -> vector<128x128xf32>
    %97 = arith.addf %91, %96 : vector<128x128xf32>
    %c1_121 = arith.constant 1 : index
    %c1_122 = arith.constant 1 : index
    %c0_123 = arith.constant 0 : index
    %98 = vector.load %arg9[%c1_121, %c1_122, %c0_123] : memref<10x18x128xf32, #tpu.memory_space<vmem>>, vector<8x16x128xf32>
    %99 = vector.shape_cast %98 : vector<8x16x128xf32> to vector<128x128xf32>
    %c1_124 = arith.constant 1 : index
    %c1_125 = arith.constant 1 : index
    %c0_126 = arith.constant 0 : index
    %c0_127 = arith.constant 0 : index
    %100 = vector.load %arg4[%c1_124, %c1_125, %c0_126, %c0_127] : memref<3x3x128x128xf32, #tpu.memory_space<vmem>>, vector<1x1x128x128xf32>
    %101 = vector.shape_cast %100 : vector<1x1x128x128xf32> to vector<128x128xf32>
    %cst_128 = arith.constant dense<0.000000e+00> : vector<128x128xf32>
    %102 = tpu.matmul %99, %101, %cst_128 {dimension_numbers = #tpu.dot_dimension_numbers<[1], [0], [0], [1], [0, 0, 1, 1], [], []>} : vector<128x128xf32>, vector<128x128xf32>, vector<128x128xf32> -> vector<128x128xf32>
    %103 = arith.addf %97, %102 : vector<128x128xf32>
    %c1_129 = arith.constant 1 : index
    %c2_130 = arith.constant 2 : index
    %c0_131 = arith.constant 0 : index
    %104 = vector.load %arg9[%c1_129, %c2_130, %c0_131] : memref<10x18x128xf32, #tpu.memory_space<vmem>>, vector<8x16x128xf32>
    %105 = vector.shape_cast %104 : vector<8x16x128xf32> to vector<128x128xf32>
    %c1_132 = arith.constant 1 : index
    %c2_133 = arith.constant 2 : index
    %c0_134 = arith.constant 0 : index
    %c0_135 = arith.constant 0 : index
    %106 = vector.load %arg4[%c1_132, %c2_133, %c0_134, %c0_135] : memref<3x3x128x128xf32, #tpu.memory_space<vmem>>, vector<1x1x128x128xf32>
    %107 = vector.shape_cast %106 : vector<1x1x128x128xf32> to vector<128x128xf32>
    %cst_136 = arith.constant dense<0.000000e+00> : vector<128x128xf32>
    %108 = tpu.matmul %105, %107, %cst_136 {dimension_numbers = #tpu.dot_dimension_numbers<[1], [0], [0], [1], [0, 0, 1, 1], [], []>} : vector<128x128xf32>, vector<128x128xf32>, vector<128x128xf32> -> vector<128x128xf32>
    %109 = arith.addf %103, %108 : vector<128x128xf32>
    %c2_137 = arith.constant 2 : index
    %c0_138 = arith.constant 0 : index
    %c0_139 = arith.constant 0 : index
    %110 = vector.load %arg9[%c2_137, %c0_138, %c0_139] : memref<10x18x128xf32, #tpu.memory_space<vmem>>, vector<8x16x128xf32>
    %111 = vector.shape_cast %110 : vector<8x16x128xf32> to vector<128x128xf32>
    %c2_140 = arith.constant 2 : index
    %c0_141 = arith.constant 0 : index
    %c0_142 = arith.constant 0 : index
    %c0_143 = arith.constant 0 : index
    %112 = vector.load %arg4[%c2_140, %c0_141, %c0_142, %c0_143] : memref<3x3x128x128xf32, #tpu.memory_space<vmem>>, vector<1x1x128x128xf32>
    %113 = vector.shape_cast %112 : vector<1x1x128x128xf32> to vector<128x128xf32>
    %cst_144 = arith.constant dense<0.000000e+00> : vector<128x128xf32>
    %114 = tpu.matmul %111, %113, %cst_144 {dimension_numbers = #tpu.dot_dimension_numbers<[1], [0], [0], [1], [0, 0, 1, 1], [], []>} : vector<128x128xf32>, vector<128x128xf32>, vector<128x128xf32> -> vector<128x128xf32>
    %115 = arith.addf %109, %114 : vector<128x128xf32>
    %c2_145 = arith.constant 2 : index
    %c1_146 = arith.constant 1 : index
    %c0_147 = arith.constant 0 : index
    %116 = vector.load %arg9[%c2_145, %c1_146, %c0_147] : memref<10x18x128xf32, #tpu.memory_space<vmem>>, vector<8x16x128xf32>
    %117 = vector.shape_cast %116 : vector<8x16x128xf32> to vector<128x128xf32>
    %c2_148 = arith.constant 2 : index
    %c1_149 = arith.constant 1 : index
    %c0_150 = arith.constant 0 : index
    %c0_151 = arith.constant 0 : index
    %118 = vector.load %arg4[%c2_148, %c1_149, %c0_150, %c0_151] : memref<3x3x128x128xf32, #tpu.memory_space<vmem>>, vector<1x1x128x128xf32>
    %119 = vector.shape_cast %118 : vector<1x1x128x128xf32> to vector<128x128xf32>
    %cst_152 = arith.constant dense<0.000000e+00> : vector<128x128xf32>
    %120 = tpu.matmul %117, %119, %cst_152 {dimension_numbers = #tpu.dot_dimension_numbers<[1], [0], [0], [1], [0, 0, 1, 1], [], []>} : vector<128x128xf32>, vector<128x128xf32>, vector<128x128xf32> -> vector<128x128xf32>
    %121 = arith.addf %115, %120 : vector<128x128xf32>
    %c2_153 = arith.constant 2 : index
    %c2_154 = arith.constant 2 : index
    %c0_155 = arith.constant 0 : index
    %122 = vector.load %arg9[%c2_153, %c2_154, %c0_155] : memref<10x18x128xf32, #tpu.memory_space<vmem>>, vector<8x16x128xf32>
    %123 = vector.shape_cast %122 : vector<8x16x128xf32> to vector<128x128xf32>
    %c2_156 = arith.constant 2 : index
    %c2_157 = arith.constant 2 : index
    %c0_158 = arith.constant 0 : index
    %c0_159 = arith.constant 0 : index
    %124 = vector.load %arg4[%c2_156, %c2_157, %c0_158, %c0_159] : memref<3x3x128x128xf32, #tpu.memory_space<vmem>>, vector<1x1x128x128xf32>
    %125 = vector.shape_cast %124 : vector<1x1x128x128xf32> to vector<128x128xf32>
    %cst_160 = arith.constant dense<0.000000e+00> : vector<128x128xf32>
    %126 = tpu.matmul %123, %125, %cst_160 {dimension_numbers = #tpu.dot_dimension_numbers<[1], [0], [0], [1], [0, 0, 1, 1], [], []>} : vector<128x128xf32>, vector<128x128xf32>, vector<128x128xf32> -> vector<128x128xf32>
    %127 = arith.addf %121, %126 : vector<128x128xf32>
    %c0_161 = arith.constant 0 : index
    %c0_162 = arith.constant 0 : index
    %128 = vector.load %arg5[%c0_161, %c0_162] : memref<1x128xf32, #tpu.memory_space<vmem>>, vector<1x128xf32>
    %129 = vector.broadcast %128 : vector<1x128xf32> to vector<128x128xf32>
    %130 = arith.addf %127, %129 : vector<128x128xf32>
    %cst_163 = arith.constant 0.000000e+00 : f32
    %131 = vector.broadcast %cst_163 : f32 to vector<128x128xf32>
    %132 = arith.maximumf %130, %131 : vector<128x128xf32>
    %cst_164 = arith.constant 0.000000e+00 : f32
    %133 = vector.broadcast %cst_164 : f32 to vector<10x18x128xf32>
    %c0_165 = arith.constant 0 : index
    %c0_166 = arith.constant 0 : index
    %c0_167 = arith.constant 0 : index
    %134 = vector.load %arg10[%c0_165, %c0_166, %c0_167] : memref<10x18x128xf32, #tpu.memory_space<vmem>>, vector<10x18x128xf32>
    tpu.vector_store %arg10[%c0_165, %c0_166, %c0_167], %133 {strides = array<i32>} : memref<10x18x128xf32, #tpu.memory_space<vmem>>, vector<10x18x128xf32>,
    %135 = vector.shape_cast %132 : vector<128x128xf32> to vector<8x16x128xf32>
    %c1_168 = arith.constant 1 : index
    %c1_169 = arith.constant 1 : index
    %c0_170 = arith.constant 0 : index
    %136 = vector.load %arg10[%c1_168, %c1_169, %c0_170] : memref<10x18x128xf32, #tpu.memory_space<vmem>>, vector<8x16x128xf32>
    tpu.vector_store %arg10[%c1_168, %c1_169, %c0_170], %135 {strides = array<i32>} : memref<10x18x128xf32, #tpu.memory_space<vmem>>, vector<8x16x128xf32>,
    %cst_171 = arith.constant 0.000000e+00 : f32
    %137 = vector.broadcast %cst_171 : f32 to vector<128x128xf32>
    %c0_172 = arith.constant 0 : index
    %c0_173 = arith.constant 0 : index
    %c0_174 = arith.constant 0 : index
    %138 = vector.load %arg10[%c0_172, %c0_173, %c0_174] : memref<10x18x128xf32, #tpu.memory_space<vmem>>, vector<8x16x128xf32>
    %139 = vector.shape_cast %138 : vector<8x16x128xf32> to vector<128x128xf32>
    %c0_175 = arith.constant 0 : index
    %c0_176 = arith.constant 0 : index
    %c0_177 = arith.constant 0 : index
    %c0_178 = arith.constant 0 : index
    %140 = vector.load %arg6[%c0_175, %c0_176, %c0_177, %c0_178] : memref<3x3x128x128xf32, #tpu.memory_space<vmem>>, vector<1x1x128x128xf32>
    %141 = vector.shape_cast %140 : vector<1x1x128x128xf32> to vector<128x128xf32>
    %cst_179 = arith.constant dense<0.000000e+00> : vector<128x128xf32>
    %142 = tpu.matmul %139, %141, %cst_179 {dimension_numbers = #tpu.dot_dimension_numbers<[1], [0], [0], [1], [0, 0, 1, 1], [], []>} : vector<128x128xf32>, vector<128x128xf32>, vector<128x128xf32> -> vector<128x128xf32>
    %143 = arith.addf %137, %142 : vector<128x128xf32>
    %c0_180 = arith.constant 0 : index
    %c1_181 = arith.constant 1 : index
    %c0_182 = arith.constant 0 : index
    %144 = vector.load %arg10[%c0_180, %c1_181, %c0_182] : memref<10x18x128xf32, #tpu.memory_space<vmem>>, vector<8x16x128xf32>
    %145 = vector.shape_cast %144 : vector<8x16x128xf32> to vector<128x128xf32>
    %c0_183 = arith.constant 0 : index
    %c1_184 = arith.constant 1 : index
    %c0_185 = arith.constant 0 : index
    %c0_186 = arith.constant 0 : index
    %146 = vector.load %arg6[%c0_183, %c1_184, %c0_185, %c0_186] : memref<3x3x128x128xf32, #tpu.memory_space<vmem>>, vector<1x1x128x128xf32>
    %147 = vector.shape_cast %146 : vector<1x1x128x128xf32> to vector<128x128xf32>
    %cst_187 = arith.constant dense<0.000000e+00> : vector<128x128xf32>
    %148 = tpu.matmul %145, %147, %cst_187 {dimension_numbers = #tpu.dot_dimension_numbers<[1], [0], [0], [1], [0, 0, 1, 1], [], []>} : vector<128x128xf32>, vector<128x128xf32>, vector<128x128xf32> -> vector<128x128xf32>
    %149 = arith.addf %143, %148 : vector<128x128xf32>
    %c0_188 = arith.constant 0 : index
    %c2_189 = arith.constant 2 : index
    %c0_190 = arith.constant 0 : index
    %150 = vector.load %arg10[%c0_188, %c2_189, %c0_190] : memref<10x18x128xf32, #tpu.memory_space<vmem>>, vector<8x16x128xf32>
    %151 = vector.shape_cast %150 : vector<8x16x128xf32> to vector<128x128xf32>
    %c0_191 = arith.constant 0 : index
    %c2_192 = arith.constant 2 : index
    %c0_193 = arith.constant 0 : index
    %c0_194 = arith.constant 0 : index
    %152 = vector.load %arg6[%c0_191, %c2_192, %c0_193, %c0_194] : memref<3x3x128x128xf32, #tpu.memory_space<vmem>>, vector<1x1x128x128xf32>
    %153 = vector.shape_cast %152 : vector<1x1x128x128xf32> to vector<128x128xf32>
    %cst_195 = arith.constant dense<0.000000e+00> : vector<128x128xf32>
    %154 = tpu.matmul %151, %153, %cst_195 {dimension_numbers = #tpu.dot_dimension_numbers<[1], [0], [0], [1], [0, 0, 1, 1], [], []>} : vector<128x128xf32>, vector<128x128xf32>, vector<128x128xf32> -> vector<128x128xf32>
    %155 = arith.addf %149, %154 : vector<128x128xf32>
    %c1_196 = arith.constant 1 : index
    %c0_197 = arith.constant 0 : index
    %c0_198 = arith.constant 0 : index
    %156 = vector.load %arg10[%c1_196, %c0_197, %c0_198] : memref<10x18x128xf32, #tpu.memory_space<vmem>>, vector<8x16x128xf32>
    %157 = vector.shape_cast %156 : vector<8x16x128xf32> to vector<128x128xf32>
    %c1_199 = arith.constant 1 : index
    %c0_200 = arith.constant 0 : index
    %c0_201 = arith.constant 0 : index
    %c0_202 = arith.constant 0 : index
    %158 = vector.load %arg6[%c1_199, %c0_200, %c0_201, %c0_202] : memref<3x3x128x128xf32, #tpu.memory_space<vmem>>, vector<1x1x128x128xf32>
    %159 = vector.shape_cast %158 : vector<1x1x128x128xf32> to vector<128x128xf32>
    %cst_203 = arith.constant dense<0.000000e+00> : vector<128x128xf32>
    %160 = tpu.matmul %157, %159, %cst_203 {dimension_numbers = #tpu.dot_dimension_numbers<[1], [0], [0], [1], [0, 0, 1, 1], [], []>} : vector<128x128xf32>, vector<128x128xf32>, vector<128x128xf32> -> vector<128x128xf32>
    %161 = arith.addf %155, %160 : vector<128x128xf32>
    %c1_204 = arith.constant 1 : index
    %c1_205 = arith.constant 1 : index
    %c0_206 = arith.constant 0 : index
    %162 = vector.load %arg10[%c1_204, %c1_205, %c0_206] : memref<10x18x128xf32, #tpu.memory_space<vmem>>, vector<8x16x128xf32>
    %163 = vector.shape_cast %162 : vector<8x16x128xf32> to vector<128x128xf32>
    %c1_207 = arith.constant 1 : index
    %c1_208 = arith.constant 1 : index
    %c0_209 = arith.constant 0 : index
    %c0_210 = arith.constant 0 : index
    %164 = vector.load %arg6[%c1_207, %c1_208, %c0_209, %c0_210] : memref<3x3x128x128xf32, #tpu.memory_space<vmem>>, vector<1x1x128x128xf32>
    %165 = vector.shape_cast %164 : vector<1x1x128x128xf32> to vector<128x128xf32>
    %cst_211 = arith.constant dense<0.000000e+00> : vector<128x128xf32>
    %166 = tpu.matmul %163, %165, %cst_211 {dimension_numbers = #tpu.dot_dimension_numbers<[1], [0], [0], [1], [0, 0, 1, 1], [], []>} : vector<128x128xf32>, vector<128x128xf32>, vector<128x128xf32> -> vector<128x128xf32>
    %167 = arith.addf %161, %166 : vector<128x128xf32>
    %c1_212 = arith.constant 1 : index
    %c2_213 = arith.constant 2 : index
    %c0_214 = arith.constant 0 : index
    %168 = vector.load %arg10[%c1_212, %c2_213, %c0_214] : memref<10x18x128xf32, #tpu.memory_space<vmem>>, vector<8x16x128xf32>
    %169 = vector.shape_cast %168 : vector<8x16x128xf32> to vector<128x128xf32>
    %c1_215 = arith.constant 1 : index
    %c2_216 = arith.constant 2 : index
    %c0_217 = arith.constant 0 : index
    %c0_218 = arith.constant 0 : index
    %170 = vector.load %arg6[%c1_215, %c2_216, %c0_217, %c0_218] : memref<3x3x128x128xf32, #tpu.memory_space<vmem>>, vector<1x1x128x128xf32>
    %171 = vector.shape_cast %170 : vector<1x1x128x128xf32> to vector<128x128xf32>
    %cst_219 = arith.constant dense<0.000000e+00> : vector<128x128xf32>
    %172 = tpu.matmul %169, %171, %cst_219 {dimension_numbers = #tpu.dot_dimension_numbers<[1], [0], [0], [1], [0, 0, 1, 1], [], []>} : vector<128x128xf32>, vector<128x128xf32>, vector<128x128xf32> -> vector<128x128xf32>
    %173 = arith.addf %167, %172 : vector<128x128xf32>
    %c2_220 = arith.constant 2 : index
    %c0_221 = arith.constant 0 : index
    %c0_222 = arith.constant 0 : index
    %174 = vector.load %arg10[%c2_220, %c0_221, %c0_222] : memref<10x18x128xf32, #tpu.memory_space<vmem>>, vector<8x16x128xf32>
    %175 = vector.shape_cast %174 : vector<8x16x128xf32> to vector<128x128xf32>
    %c2_223 = arith.constant 2 : index
    %c0_224 = arith.constant 0 : index
    %c0_225 = arith.constant 0 : index
    %c0_226 = arith.constant 0 : index
    %176 = vector.load %arg6[%c2_223, %c0_224, %c0_225, %c0_226] : memref<3x3x128x128xf32, #tpu.memory_space<vmem>>, vector<1x1x128x128xf32>
    %177 = vector.shape_cast %176 : vector<1x1x128x128xf32> to vector<128x128xf32>
    %cst_227 = arith.constant dense<0.000000e+00> : vector<128x128xf32>
    %178 = tpu.matmul %175, %177, %cst_227 {dimension_numbers = #tpu.dot_dimension_numbers<[1], [0], [0], [1], [0, 0, 1, 1], [], []>} : vector<128x128xf32>, vector<128x128xf32>, vector<128x128xf32> -> vector<128x128xf32>
    %179 = arith.addf %173, %178 : vector<128x128xf32>
    %c2_228 = arith.constant 2 : index
    %c1_229 = arith.constant 1 : index
    %c0_230 = arith.constant 0 : index
    %180 = vector.load %arg10[%c2_228, %c1_229, %c0_230] : memref<10x18x128xf32, #tpu.memory_space<vmem>>, vector<8x16x128xf32>
    %181 = vector.shape_cast %180 : vector<8x16x128xf32> to vector<128x128xf32>
    %c2_231 = arith.constant 2 : index
    %c1_232 = arith.constant 1 : index
    %c0_233 = arith.constant 0 : index
    %c0_234 = arith.constant 0 : index
    %182 = vector.load %arg6[%c2_231, %c1_232, %c0_233, %c0_234] : memref<3x3x128x128xf32, #tpu.memory_space<vmem>>, vector<1x1x128x128xf32>
    %183 = vector.shape_cast %182 : vector<1x1x128x128xf32> to vector<128x128xf32>
    %cst_235 = arith.constant dense<0.000000e+00> : vector<128x128xf32>
    %184 = tpu.matmul %181, %183, %cst_235 {dimension_numbers = #tpu.dot_dimension_numbers<[1], [0], [0], [1], [0, 0, 1, 1], [], []>} : vector<128x128xf32>, vector<128x128xf32>, vector<128x128xf32> -> vector<128x128xf32>
    %185 = arith.addf %179, %184 : vector<128x128xf32>
    %c2_236 = arith.constant 2 : index
    %c2_237 = arith.constant 2 : index
    %c0_238 = arith.constant 0 : index
    %186 = vector.load %arg10[%c2_236, %c2_237, %c0_238] : memref<10x18x128xf32, #tpu.memory_space<vmem>>, vector<8x16x128xf32>
    %187 = vector.shape_cast %186 : vector<8x16x128xf32> to vector<128x128xf32>
    %c2_239 = arith.constant 2 : index
    %c2_240 = arith.constant 2 : index
    %c0_241 = arith.constant 0 : index
    %c0_242 = arith.constant 0 : index
    %188 = vector.load %arg6[%c2_239, %c2_240, %c0_241, %c0_242] : memref<3x3x128x128xf32, #tpu.memory_space<vmem>>, vector<1x1x128x128xf32>
    %189 = vector.shape_cast %188 : vector<1x1x128x128xf32> to vector<128x128xf32>
    %cst_243 = arith.constant dense<0.000000e+00> : vector<128x128xf32>
    %190 = tpu.matmul %187, %189, %cst_243 {dimension_numbers = #tpu.dot_dimension_numbers<[1], [0], [0], [1], [0, 0, 1, 1], [], []>} : vector<128x128xf32>, vector<128x128xf32>, vector<128x128xf32> -> vector<128x128xf32>
    %191 = arith.addf %185, %190 : vector<128x128xf32>
    %c0_244 = arith.constant 0 : index
    %c0_245 = arith.constant 0 : index
    %192 = vector.load %arg7[%c0_244, %c0_245] : memref<1x128xf32, #tpu.memory_space<vmem>>, vector<1x128xf32>
    %193 = vector.broadcast %192 : vector<1x128xf32> to vector<128x128xf32>
    %194 = arith.addf %191, %193 : vector<128x128xf32>
    %cst_246 = arith.constant 0.000000e+00 : f32
    %195 = vector.broadcast %cst_246 : f32 to vector<128x128xf32>
    %196 = arith.maximumf %194, %195 : vector<128x128xf32>
    %c0_247 = arith.constant 0 : index
    %c0_248 = arith.constant 0 : index
    %c0_249 = arith.constant 0 : index
    %197 = vector.load %arg8[%c0_247, %c0_248, %c0_249] : memref<1x128x128xf32, #tpu.memory_space<vmem>>, vector<1x128x128xf32>
    %198 = vector.shape_cast %197 : vector<1x128x128xf32> to vector<128x128xf32>
    %199 = vector.shape_cast %196 : vector<128x128xf32> to vector<1x128x128xf32>
    tpu.vector_store %arg8[%c0_247, %c0_248, %c0_249], %199 {strides = array<i32>} : memref<1x128x128xf32, #tpu.memory_space<vmem>>, vector<1x128x128xf32>,
    return
  }
  func.func @transform_0(%arg0: i32) -> (i32, i32, i32, i32) {
    %c0_i32 = arith.constant 0 : i32
    %c0_i32_0 = arith.constant 0 : i32
    %c0_i32_1 = arith.constant 0 : i32
    %c0_i32_2 = arith.constant 0 : i32
    return %arg0, %c0_i32, %c0_i32_0, %c0_i32_1 : i32, i32, i32, i32
  }
  func.func @transform_1(%arg0: i32) -> (i32, i32, i32, i32) {
    %c0_i32 = arith.constant 0 : i32
    %c0_i32_0 = arith.constant 0 : i32
    %c0_i32_1 = arith.constant 0 : i32
    %c0_i32_2 = arith.constant 0 : i32
    %c0_i32_3 = arith.constant 0 : i32
    return %c0_i32, %c0_i32_0, %c0_i32_1, %c0_i32_2 : i32, i32, i32, i32
  }
  func.func @transform_2(%arg0: i32) -> (i32, i32) {
    %c0_i32 = arith.constant 0 : i32
    %c0_i32_0 = arith.constant 0 : i32
    %c0_i32_1 = arith.constant 0 : i32
    return %c0_i32, %c0_i32_0 : i32, i32
  }
  func.func @transform_3(%arg0: i32) -> (i32, i32, i32, i32) {
    %c0_i32 = arith.constant 0 : i32
    %c0_i32_0 = arith.constant 0 : i32
    %c0_i32_1 = arith.constant 0 : i32
    %c0_i32_2 = arith.constant 0 : i32
    %c0_i32_3 = arith.constant 0 : i32
    return %c0_i32, %c0_i32_0, %c0_i32_1, %c0_i32_2 : i32, i32, i32, i32
  }
  func.func @transform_4(%arg0: i32) -> (i32, i32) {
    %c0_i32 = arith.constant 0 : i32
    %c0_i32_0 = arith.constant 0 : i32
    %c0_i32_1 = arith.constant 0 : i32
    return %c0_i32, %c0_i32_0 : i32, i32
  }
  func.func @transform_5(%arg0: i32) -> (i32, i32, i32, i32) {
    %c0_i32 = arith.constant 0 : i32
    %c0_i32_0 = arith.constant 0 : i32
    %c0_i32_1 = arith.constant 0 : i32
    %c0_i32_2 = arith.constant 0 : i32
    %c0_i32_3 = arith.constant 0 : i32
    return %c0_i32, %c0_i32_0, %c0_i32_1, %c0_i32_2 : i32, i32, i32, i32
  }
  func.func @transform_6(%arg0: i32) -> (i32, i32) {
    %c0_i32 = arith.constant 0 : i32
    %c0_i32_0 = arith.constant 0 : i32
    %c0_i32_1 = arith.constant 0 : i32
    return %c0_i32, %c0_i32_0 : i32, i32
  }
  func.func @transform_7(%arg0: i32) -> (i32, i32, i32) {
    %c0_i32 = arith.constant 0 : i32
    %c0_i32_0 = arith.constant 0 : i32
    %c0_i32_1 = arith.constant 0 : i32
    return %arg0, %c0_i32, %c0_i32_0 : i32, i32, i32
  }
}

</mosaic_0001>

<bundles_post_ra>
// kernel: tpu_custom_call.1
= control target key start
LH: loop header
LB: loop body
LE: loop exit
PB: predicated region body
PF: predicated region fallthrough
CT: control target
= control target key end

     0   :  { %12 = vsyncpa [#allocation5], 0  ;;  %s11489_s0 = inlined_call_operand.vmem [shape: f32[2,10,18,64], index: 0, kind: input, shape index: {}]   ;;  %s11490_s1 = inlined_call_operand.vmem [shape: f32[3,3,64,128], index: 1, kind: input, shape index: {}]   ;;  %s11491_s2 = inlined_call_operand.vmem [shape: f32[1,128], index: 2, kind: input, shape index: {}]   ;;  %s11492_s3 = inlined_call_operand.hbm [shape: f32[3,3,128,128], index: 3, kind: input, shape index: {}]   ;;  %s11493_s4 = inlined_call_operand.vmem [shape: f32[1,128], index: 4, kind: input, shape index: {}]   ;;  %s11494_s5 = inlined_call_operand.hbm [shape: f32[3,3,128,128], index: 5, kind: input, shape index: {}]   ;;  %s11495_s6 = inlined_call_operand.vmem [shape: f32[1,128], index: 6, kind: input, shape index: {}]   ;;  %s11496_s7 = inlined_call_operand.hbm [shape: f32[2,128,128], index: 7, kind: output, shape index: {}]  }
   0x1   :  { %13 = vsyncpa [#allocation8], 0 }
   0x2   :  { %14 = vsyncpa [#allocation6], 0 }
   0x3   :  { %16 = vsyncpa [#allocation6 + $0x1], 0  ;;  %s9983_s24 = smov 0   ;;  %s9985_s25 = smov 0  }
   0x4   :  { %s9987_s26 = smov 0   ;;  %s9989_s27 = smov 0  }
   0x5 LB: > { %s10004_s28 = sadd.s32 4294967295, %s9933_s27   ;;  %s6136_s29 = sadd.s32 4294967294, %s9933_s27   ;;  %s9933_s27 = sphi %s9989_s27, %s11528_s27   ;;  %s9929_s26 = sphi %s9987_s26, %s11527_s26   ;;  %s9925_s25 = sphi %s9985_s25, %s11526_s25   ;;  %s9921_s24 = sphi %s9983_s24, %s11525_s24  }
   0x6   : > { %s10008_s30 = sadd.s32 1, %s9933_s27   ;;  %s181_s8 = sadd.s32 1, %s9929_s26 }
   0x7   : > { %s178_s9 = ssub.s32 %s9933_s27, %s10008_s30  ;;  %p191_p0 = scmp.ne.s32.totalorder %s9929_s26, %s9925_s25 }
   0x8   : > { %p179_p1 = scmp.eq.s32.totalorder %s178_s9, 0  ;;  %p192_p2 = scmp.eq.s32.totalorder %s10004_s28, 1 }
   0x9   : > { %p197_p3 = scmp.ne.s32.totalorder %s9925_s25, %s9921_s24  ;;  %p198_p4 = scmp.eq.s32.totalorder %s6136_s29, 1 }
   0xa   : > { %s10019_s10 = scalar_select %p179_p1, %s9929_s26, %s181_s8  }
   0xb   : > { %p10021_p5 = por %p192_p2, %p191_p0  ;;  %p10025_p6 = por %p198_p4, %p197_p3 }
   0xc   : > { %11506 = sst [smem:[#allocation13_spill]] %s10019_s10  ;;  %p6137_p7 = scmp.ge.s32.totalorder %s9933_s27, 1 }
   0xd   : > { %s11507_s11 = scalar_select %p10021_p5, 1, 0 }
   0xe   : > { %s11508_s12 = scalar_select %p10025_p6, 1, 0 }
   0xf   : > { %p205_p8 = scmp.lt.s32.totalorder %s9933_s27, 3  ;;  %p11497_p9 = scmp.eq.s32.totalorder %s10004_s28, 0 }
  0x10   : > { %s9935_s14 = smov [#allocation4]   ;;  %s9936_s17 = smov [#allocation7]  }
  0x11   : > { %p10032_p10 = pnand %p6137_p7, %p205_p8  ;;  %s223_s15 = sshll.u32 %s9935_s14, 4  ;;  %s224_s15 = int_to_ptr.vmem [resolvable:$true] %s223_s15 }
  0x12   : > { %s239_s18 = sshll.u32 %s9936_s17, 4  ;;  %s9807_s21 = scalar_lea.hbm %s11492_s3, 18432  ;;  %s10044_s18 = int_to_ptr.vmem [resolvable:$true] %s239_s18 }
  0x13   : > { %s11509_s13 = scalar_select %p10032_p10, 1, 0 }
  0x14   : > { %p9750_p11 = pneg %p10032_p10  ;;  %p9808_p13 = scmp.ne.s32.totalorder %s11492_s3, %s9807_s21 }
  0x15   : > { %p9814_p3 = scmp.lt.u32.totalorder %s9807_s21, %s11492_s3 }
  0x16   : > { %p10040_p12 = pnand %p11497_p9, %p9750_p11 }
  0x18   : > { %p9809_p0 = pneg %p10040_p12 }
  0x1a   : > { %p9810_p1 = pnand %p9809_p0, %p9808_p13 }
  0x1c   : > { %p9811_p2 = pneg %p9810_p1 }
  0x1e   : > { %p9816_p4 = pnand %p9814_p3, %p9811_p2 }
  0x20   : > { %9819 = shalt.err (!%p9816_p4)
}
  0x21   : > { %s9820_s9 = scalar_lea.vmem %s224_s15, 18432  ;;  %p9828_p9 = scmp.lt.s32.totalorder %s224_s15, %s224_s15 }
  0x22   : > { %p9821_p7 = scmp.ne.s32.totalorder %s224_s15, %s9820_s9  ;;  %p9829_p6 = scmp.lt.s32.totalorder %s9820_s9, %s9820_s9 }
  0x24   : > { %p9823_p8 = pnand %p9821_p7, %p9809_p0  ;;  %p9830_p5 = por %p9829_p6, %p9828_p9 }
  0x26   : > { %p9824_p11 = pneg %p9823_p8 }
  0x28   : > { %p9831_p10 = pnand %p9830_p5, %p9824_p11 }
  0x2a   : > { %9834 = shalt.err (!%p9831_p10)
}
  0x2b   : > { %s9937_s14 = smov 128   ;;  %s9938_s17 = smov 8  }
  0x2c   : > { %9753 = dma.hbm_to_vmem [thread:$0]  (!%p10040_p12), %s11492_s3, 18432, %s224_s15, [#allocation5], %s9937_s14, %s9937_s14, %s9938_s17  }
  0x2d   : > { %s9835_s23 = scalar_lea.hbm %s11494_s5, 18432 }
  0x2e   : > { %p9836_p13 = scmp.ne.s32.totalorder %s11494_s5, %s9835_s23  ;;  %p9842_p9 = scmp.lt.u32.totalorder %s9835_s23, %s11494_s5 }
  0x30   : > { %p9838_p5 = pnand %p9836_p13, %p9809_p0 }
  0x32   : > { %p9839_p6 = pneg %p9838_p5 }
  0x34   : > { %p9844_p10 = pnand %p9842_p9, %p9839_p6 }
  0x36   : > { %9847 = shalt.err (!%p9844_p10)
}
  0x37   : > { %s9848_s15 = scalar_lea.vmem %s10044_s18, 18432  ;;  %p9856_p4 = scmp.lt.s32.totalorder %s10044_s18, %s10044_s18 }
  0x38   : > { %p9849_p1 = scmp.ne.s32.totalorder %s10044_s18, %s9848_s15  ;;  %p9857_p7 = scmp.lt.s32.totalorder %s9848_s15, %s9848_s15 }
  0x3a   : > { %p9851_p2 = pnand %p9849_p1, %p9809_p0  ;;  %p9858_p8 = por %p9857_p7, %p9856_p4 }
  0x3c   : > { %p9852_p3 = pneg %p9851_p2 }
  0x3e   : > { %p9859_p11 = pnand %p9858_p8, %p9852_p3 }
  0x40   : > { %9862 = shalt.err (!%p9859_p11)
}
  0x41   : > { %9756 = dma.hbm_to_vmem [thread:$0]  (!%p10040_p12), %s11494_s5, 18432, %s10044_s18, [#allocation8], %s9937_s14, %s9937_s14, %s9938_s17  }
  0x42   : > { %p11511_p13 = scmp.ne.s32.totalorder %s11509_s13, 0 }
  0x44   : > { %266 = sbr.rel (%p11511_p13) target bundleno = 1417 (0x589), region = 48 }
  0x4b   : > { %p11512_p5 = scmp.eq.s32.totalorder %s10004_s28, 0 }
  0x4d   : > { %9908 = dma.done.wait (%p11512_p5), [#allocation5], 18432   ;;  %p11513_p0 = pmov %p11512_p5 }
  0x4f   : > { %9910 = vsyncadd (%p11513_p0), [#allocation5], 4294948864  ;;  %p11514_p6 = pmov %p11513_p0 }
  0x50   : > { %p11515_p9 = pmov %p11513_p0 }
  0x51   : > { %9912 = dma.done.wait (%p11514_p6), [#allocation8], 18432  }
  0x52   : > { %9914 = vsyncadd (%p11515_p9), [#allocation8], 4294948864  ;;  %p302_p10 = scmp.lt.s32.totalorder %s10004_s28, 1  ;;  %v6146_v0 = vld [vmem:[%s11490_s1 + $0x40] sm:$0xff]  ;;  %v6147_v1 = vld [vmem:[%s11490_s1 + $0x48] sm:$0xff]  ;;  %vm356_vm0 = vcmask 523264  }
  0x53   : > { %v6266_v2 = vld [vmem:[%s11490_s1 + $0x100] sm:$0xff]  ;;  %v8619_v3 = vpack.c.bf16 %v6147_v1, %v6146_v0  ;;  %v6267_v4 = vld [vmem:[%s11490_s1 + $0x108] sm:$0xff]  ;;  %v6148_v5 = vld [vmem:[%s11490_s1 + $0x50] sm:$0xff]  ;;  %s299_s15 = sand.u32 1, %s9925_s25   ;;  %s6458_s14 = sshll.u32 %s10004_s28, 11 }
  0x54   : > { %s303_s16 = scalar_select %p302_p10, %s10004_s28, 1  ;;  %v6149_v6 = vld [vmem:[%s11490_s1 + $0x58] sm:$0xff]  ;;  %v8683_v7 = vpack.c.bf16 %v6267_v4, %v6266_v2  ;;  %v6268_v9 = vld [vmem:[%s11490_s1 + $0x110] sm:$0xff]  ;;  %v6150_v11 = vld [vmem:[%s11490_s1 + $0x60] sm:$0xff] }
  0x55   : > { %v8623_v8 = vpack.c.bf16 %v6149_v6, %v6148_v5  ;;  %v6269_v10 = vld [vmem:[%s11490_s1 + $0x118] sm:$0xff]  ;;  %8620 = vmatprep.subr.bf16.mxu1 %v8619_v3  ;;  %v6151_v13 = vld [vmem:[%s11490_s1 + $0x68] sm:$0xff]  ;;  %v6270_v14 = vld [vmem:[%s11490_s1 + $0x120] sm:$0xff]  ;;  %s11440_s21 = scalar_lea.hbm %s11496_s7, %s6458_s14  ;;  %s11448_s28 = scalar_lea.sflag [#allocation6], %s299_s15 }
  0x56   : > { %s9739_s18 = smul.u32 240, %s303_s16  ;;  %v8687_v12 = vpack.c.bf16 %v6269_v10, %v6268_v9  ;;  %v6271_v15 = vld [vmem:[%s11490_s1 + $0x128] sm:$0xff]  ;;  %8684 = vmatprep.subr.bf16.mxu0 %v8683_v7  ;;  %8622 = vmatpush3.bf16.msra.mxu1 %v8619_v3  ;;  %v8627_v16 = vpack.c.bf16 %v6151_v13, %v6150_v11  ;;  %v6152_v20 = vld [vmem:[%s11490_s1 + $0x70] sm:$0xff]  ;;  %v6153_v21 = vld [vmem:[%s11490_s1 + $0x78] sm:$0xff]  ;;  %p11522_p1 = scmp.ne.s32.totalorder %s11507_s11, 0 }
  0x57   : > { %8686 = vmatpush3.bf16.msra.mxu0 %v8683_v7  ;;  %8624 = vmatprep.subr.bf16.mxu1 %v8623_v8  ;;  %v8691_v19 = vpack.c.bf16 %v6271_v15, %v6270_v14  ;;  %v6272_v22 = vld [vmem:[%s11490_s1 + $0x130] sm:$0xff]  ;;  %v6273_v23 = vld [vmem:[%s11490_s1 + $0x138] sm:$0xff]  ;;  %v8631_v24 = vpack.c.bf16 %v6153_v21, %v6152_v20  ;;  %v323_v26 = vld [vmem:[%s11490_s1] sm:$0xff] }
  0x58   : > { %s10135_s23 = scalar_lea.vmem %s11489_s0, %s9739_s18  ;;  %8688 = vmatprep.subr.bf16.mxu0 %v8687_v12  ;;  %v8695_v25 = vpack.c.bf16 %v6273_v23, %v6272_v22  ;;  %v324_v27 = vld [vmem:[%s11490_s1 + $0x8] sm:$0xff]  ;;  %v6306_v28 = vld [vmem:[%s11490_s1 + $0x140] sm:$0xff]  ;;  %v6308_v32 = vld [vmem:[%s11490_s1 + $0x150] sm:$0xff]  ;;  %s6144_s18 = sshll.u32 %s299_s15, 7 }
  0x59   : > { %v331_v17 = vld [vmem:[%s10135_s23 + $0x1] sm:$0xff]  ;;  %v6250_v18 = vld [vmem:[%s10135_s23 + $0x19] sm:$0xff]  ;;  %v8635_v30 = vpack.c.bf16 %v324_v27, %v323_v26  ;;  %v332_v34 = vld [vmem:[%s10135_s23 + $0x9] sm:$0xff]  ;;  %s11405_s16 = scalar_lea.vmem [#allocation9], %s6144_s18 }
  0x5a   : > { %7267 = vmatprep.mubr.msk.f32.mxu1 %vm356_vm0, %v331_v17  ;;  %7427 = vmatprep.mubr.msk.f32.mxu0 %vm356_vm0, %v6250_v18  ;;  %v6307_v29 = vld [vmem:[%s11490_s1 + $0x148] sm:$0xff]  ;;  %v6309_v33 = vld [vmem:[%s11490_s1 + $0x158] sm:$0xff]  ;;  %v325_v35 = vld [vmem:[%s11490_s1 + $0x10] sm:$0xff]  ;;  %s6052_s13 = sshll.u32 %s11405_s16, 4  ;;  %s11442_s13 = int_to_ptr.vmem [resolvable:$true] %s6052_s13 }
  0x5b   : > { %8626 = vmatpush3.bf16.msra.mxu1 %v8623_v8  ;;  %8690 = vmatpush3.bf16.msra.mxu0 %v8687_v12  ;;  %v8699_v31 = vpack.c.bf16 %v6307_v29, %v6306_v28  ;;  %v326_v36 = vld [vmem:[%s11490_s1 + $0x18] sm:$0xff]  ;;  %v6251_v37 = vld [vmem:[%s10135_s23 + $0x21] sm:$0xff]  ;;  %v8703_v39 = vpack.c.bf16 %v6309_v33, %v6308_v32  ;;  %v10212_v46 = vld [vmem:[%s10135_s23 + $0x49] sm:$0xff]  ;;  %s9863_s22 = scalar_lea.vmem %s11442_s13, 2048 }
  0x5c   : > { %8628 = vmatprep.subr.bf16.mxu1 %v8627_v16  ;;  %8692 = vmatprep.subr.bf16.mxu0 %v8691_v19  ;;  %v10189_v38 = vld [vmem:[%s10135_s23 + $0x31] sm:$0xff]  ;;  %v6310_v40 = vld [vmem:[%s11490_s1 + $0x160] sm:$0xff]  ;;  %v6311_v41 = vld [vmem:[%s11490_s1 + $0x168] sm:$0xff]  ;;  %v8639_v42 = vpack.c.bf16 %v326_v36, %v325_v35  ;;  %p9864_p12 = scmp.ne.s32.totalorder %s11442_s13, %s9863_s22 }
  0x5d   : > { %v327_v43 = vld [vmem:[%s11490_s1 + $0x20] sm:$0xff]  ;;  %v328_v44 = vld [vmem:[%s11490_s1 + $0x28] sm:$0xff]  ;;  %v8707_v47 = vpack.c.bf16 %v6311_v41, %v6310_v40  ;;  %v6312_v49 = vld [vmem:[%s11490_s1 + $0x170] sm:$0xff] }
  0x5e   : > { %v10209_v45 = vld [vmem:[%s10135_s23 + $0x39] sm:$0xff]  ;;  %v8643_v48 = vpack.c.bf16 %v328_v44, %v327_v43  ;;  %v329_v51 = vld [vmem:[%s11490_s1 + $0x30] sm:$0xff]  ;;  %v10237_v54 = vld [vmem:[%s10135_s23 + $0x61] sm:$0xff]  ;;  %p9865_p2 = pnand %p9864_p12, %p11522_p1 }
  0x5f   : > { %8630 = vmatpush3.bf16.msra.mxu1 %v8627_v16  ;;  %8694 = vmatpush3.bf16.msra.mxu0 %v8691_v19  ;;  %v6313_v50 = vld [vmem:[%s11490_s1 + $0x178] sm:$0xff]  ;;  %v6346_v57 = vld [vmem:[%s11490_s1 + $0x180] sm:$0xff]  ;;  %v6347_v58 = vld [vmem:[%s11490_s1 + $0x188] sm:$0xff] }
  0x60   : > { %8632 = vmatprep.subr.bf16.mxu1 %v8631_v24  ;;  %8696 = vmatprep.subr.bf16.mxu0 %v8695_v25  ;;  %v330_v52 = vld [vmem:[%s11490_s1 + $0x38] sm:$0xff]  ;;  %v8711_v55 = vpack.c.bf16 %v6313_v50, %v6312_v49  ;;  %v6186_v59 = vld [vmem:[%s11490_s1 + $0x80] sm:$0xff]  ;;  %v6187_v60 = vld [vmem:[%s11490_s1 + $0x88] sm:$0xff]  ;;  %v8715_v63 = vpack.c.bf16 %v6347_v58, %v6346_v57  ;;  %p9866_p3 = pneg %p9865_p2 }
  0x61   : > { %v10234_v53 = vld [vmem:[%s10135_s23 + $0x51] sm:$0xff]  ;;  %v8647_v56 = vpack.c.bf16 %v330_v52, %v329_v51  ;;  %v10260_v61 = vld [vmem:[%s10135_s23 + $0x69] sm:$0xff]  ;;  %v10263_v62 = vld [vmem:[%s10135_s23 + $0x79] sm:$0xff]  ;;  %v8651_v0 = vpack.c.bf16 %v6187_v60, %v6186_v59 }
  0x62   : > { %v10274_v1 = vld [vmem:[%s10135_s23 + $0x81] sm:$0xff]  ;;  %v10277_v2 = vld [vmem:[%s10135_s23 + $0x91] sm:$0xff]  ;;  %v10288_v3 = vld [vmem:[%s10135_s23 + $0x99] sm:$0xff] }
  0x63   : > { %8634 = vmatpush3.bf16.msra.mxu1 %v8631_v24  ;;  %8698 = vmatpush3.bf16.msra.mxu0 %v8695_v25  ;;  %v10291_v4 = vld [vmem:[%s10135_s23 + $0xa9] sm:$0xff]  ;;  %v10302_v5 = vld [vmem:[%s10135_s23 + $0xb1] sm:$0xff]  ;;  %v10305_v6 = vld [vmem:[%s10135_s23 + $0xc1] sm:$0xff] }
  0x64   : > { %8636 = vmatprep.subr.bf16.mxu1 %v8635_v30  ;;  %8700 = vmatprep.subr.bf16.mxu0 %v8699_v31  ;;  %v10316_v7 = vld [vmem:[%s10135_s23 + $0xc9] sm:$0xff]  ;;  %v307_v8 = vld [vmem:[%s10135_s23] sm:$0xff]  ;;  %v6349_v11 = vld [vmem:[%s11490_s1 + $0x198] sm:$0xff] }
  0x65   : > { %v10320_v9 = vld [vmem:[%s10135_s23 + $0x1a] sm:$0xff]  ;;  %v6348_v10 = vld [vmem:[%s11490_s1 + $0x190] sm:$0xff]  ;;  %v308_v12 = vld [vmem:[%s10135_s23 + $0x8] sm:$0xff] }
  0x66   : > { %7268 = vmatmul.mubr.msk.f32.vlgmr.msra.gmra.mrb[0].mxu1 %vm356_vm0, %v332_v34  ;;  %7428 = vmatmul.mubr.msk.f32.vlgmr.msra.gmra.mrb[0].mxu0 %vm356_vm0, %v6251_v37  ;;  %v6188_v13 = vld [vmem:[%s11490_s1 + $0x90] sm:$0xff]  ;;  %v6189_v14 = vld [vmem:[%s11490_s1 + $0x98] sm:$0xff]  ;;  %v10343_v15 = vld [vmem:[%s10135_s23 + $0x22] sm:$0xff] }
  0x67   : > { %7270 = vmatprep.mubr.msk.f32.mxu1 %vm356_vm0, %v6250_v18  ;;  %8702 = vmatpush3.bf16.msra.mxu0 %v8699_v31  ;;  %v10346_v16 = vld [vmem:[%s10135_s23 + $0x18] sm:$0xff]  ;;  %v8719_v18 = vpack.c.bf16 %v6349_v11, %v6348_v10  ;;  %v6350_v19 = vld [vmem:[%s11490_s1 + $0x1a0] sm:$0xff]  ;;  %v6351_v20 = vld [vmem:[%s11490_s1 + $0x1a8] sm:$0xff]  ;;  %v8655_v21 = vpack.c.bf16 %v6189_v14, %v6188_v13 }
  0x68   : > { %7430 = vmatprep.mubr.msk.f32.mxu0 %vm356_vm0, %v10189_v38  ;;  %8704 = vmatprep.subr.bf16.mxu0 %v8703_v39  ;;  %v10349_v17 = vld [vmem:[%s10135_s23 + $0x32] sm:$0xff]  ;;  %v10363_v22 = vld [vmem:[%s10135_s23 + $0x20] sm:$0xff]  ;;  %v6191_v24 = vld [vmem:[%s11490_s1 + $0xa8] sm:$0xff]  ;;  %v8723_v28 = vpack.c.bf16 %v6351_v20, %v6350_v19 }
  0x69   : > { %8638 = vmatpush3.bf16.msra.mxu1 %v8635_v30  ;;  %v6190_v23 = vld [vmem:[%s11490_s1 + $0xa0] sm:$0xff]  ;;  %v10377_v26 = vld [vmem:[%s10135_s23 + $0x30] sm:$0xff]  ;;  %v6353_v31 = vld [vmem:[%s11490_s1 + $0x1b8] sm:$0xff] }
  0x6a   : > { %7271 = vmatmul.mubr.msk.f32.gmra.mrb[2].mxu1 %vm356_vm0, %v6251_v37  ;;  %8640 = vmatprep.subr.bf16.mxu1 %v8639_v42  ;;  %v10374_v25 = vld [vmem:[%s10135_s23 + $0x3a] sm:$0xff]  ;;  %v10380_v27 = vld [vmem:[%s10135_s23 + $0x4a] sm:$0xff]  ;;  %v8659_v29 = vpack.c.bf16 %v6191_v24, %v6190_v23  ;;  %v10406_v35 = vld [vmem:[%s10135_s23 + $0x52] sm:$0xff] }
  0x6b   : > { %7431 = vmatmul.mubr.msk.f32.gmra.mrb[2].mxu0 %vm356_vm0, %v10209_v45  ;;  %7273 = vmatprep.mubr.msk.f32.mxu1 %vm356_vm0, %v10189_v38  ;;  %v6352_v30 = vld [vmem:[%s11490_s1 + $0x1b0] sm:$0xff]  ;;  %v10395_v32 = vld [vmem:[%s10135_s23 + $0x38] sm:$0xff]  ;;  %v10409_v36 = vld [vmem:[%s10135_s23 + $0x48] sm:$0xff] }
  0x6c   : > { %7433 = vmatprep.mubr.msk.f32.mxu0 %vm356_vm0, %v10212_v46  ;;  %8706 = vmatpush3.bf16.msra.mxu0 %v8703_v39  ;;  %v6192_v33 = vld [vmem:[%s11490_s1 + $0xb0] sm:$0xff]  ;;  %v6193_v34 = vld [vmem:[%s11490_s1 + $0xb8] sm:$0xff]  ;;  %v10412_v37 = vld [vmem:[%s10135_s23 + $0x62] sm:$0xff]  ;;  %v8727_v39 = vpack.c.bf16 %v6353_v31, %v6352_v30 }
  0x6d   : > { %8708 = vmatprep.subr.bf16.mxu0 %v8707_v47  ;;  %8642 = vmatpush3.bf16.msra.mxu1 %v8639_v42  ;;  %v8663_v40 = vpack.c.bf16 %v6193_v34, %v6192_v33  ;;  %v6386_v41 = vld [vmem:[%s11490_s1 + $0x1c0] sm:$0xff]  ;;  %v6387_v42 = vld [vmem:[%s11490_s1 + $0x1c8] sm:$0xff]  ;;  %v10427_v43 = vld [vmem:[%s10135_s23 + $0x50] sm:$0xff] }
  0x6e   : > { %7274 = vmatmul.mubr.msk.f32.gmra.mrb[4].mxu1 %vm356_vm0, %v10209_v45  ;;  %8644 = vmatprep.subr.bf16.mxu1 %v8643_v48  ;;  %v6226_v44 = vld [vmem:[%s11490_s1 + $0xc0] sm:$0xff]  ;;  %v8731_v51 = vpack.c.bf16 %v6387_v42, %v6386_v41  ;;  %v10461_v57 = vld [vmem:[%s10135_s23 + $0x78] sm:$0xff]  ;;  %v10501_v11 = vld [vmem:[%s10135_s23 + $0xa8] sm:$0xff] }
  0x6f   : > { %7434 = vmatmul.mubr.msk.f32.gmra.mrb[4].mxu0 %vm356_vm0, %v10234_v53  ;;  %7276 = vmatprep.mubr.msk.f32.mxu1 %vm356_vm0, %v10212_v46  ;;  %v10441_v49 = vld [vmem:[%s10135_s23 + $0x60] sm:$0xff]  ;;  %v10464_v58 = vld [vmem:[%s10135_s23 + $0x92] sm:$0xff]  ;;  %v10518_v14 = vld [vmem:[%s10135_s23 + $0xca] sm:$0xff] }
  0x70   : > { %7436 = vmatprep.mubr.msk.f32.mxu0 %vm356_vm0, %v10237_v54  ;;  %8710 = vmatpush3.bf16.msra.mxu0 %v8707_v47  ;;  %v6227_v47 = vld [vmem:[%s11490_s1 + $0xc8] sm:$0xff]  ;;  %v10444_v50 = vld [vmem:[%s10135_s23 + $0x7a] sm:$0xff]  ;;  %v10498_v10 = vld [vmem:[%s10135_s23 + $0xb2] sm:$0xff] }
  0x71   : > { %8712 = vmatprep.subr.bf16.mxu0 %v8711_v55  ;;  %8646 = vmatpush3.bf16.msra.mxu1 %v8643_v48  ;;  %v10438_v48 = vld [vmem:[%s10135_s23 + $0x6a] sm:$0xff]  ;;  %v8667_v52 = vpack.c.bf16 %v6227_v47, %v6226_v44  ;;  %v10473_v59 = vld [vmem:[%s10135_s23 + $0x80] sm:$0xff]  ;;  %v6389_v20 = vld [vmem:[%s11490_s1 + $0x1d8] sm:$0xff] }
  0x72   : > { %7277 = vmatmul.mubr.msk.f32.gmra.mrb[6].mxu1 %vm356_vm0, %v10234_v53  ;;  %8648 = vmatprep.subr.bf16.mxu1 %v8647_v56  ;;  %v10478_v60 = vld [vmem:[%s10135_s23 + $0x9a] sm:$0xff]  ;;  %v10513_v13 = vld [vmem:[%s10135_s23 + $0xb0] sm:$0xff]  ;;  %v6391_v30 = vld [vmem:[%s11490_s1 + $0x1e8] sm:$0xff] }
  0x73   : > { %7437 = vmatmul.mubr.msk.f32.gmra.mrb[6].mxu0 %vm356_vm0, %v10260_v61  ;;  %7279 = vmatprep.mubr.msk.f32.mxu1 %vm356_vm0, %v10237_v54  ;;  %v6388_v19 = vld [vmem:[%s11490_s1 + $0x1d0] sm:$0xff]  ;;  %v6229_v24 = vld [vmem:[%s11490_s1 + $0xd8] sm:$0xff]  ;;  %v6230_v33 = vld [vmem:[%s11490_s1 + $0xe0] sm:$0xff] }
  0x74   : > { %7439 = vmatprep.mubr.msk.f32.mxu0 %vm356_vm0, %v10263_v62  ;;  %8714 = vmatpush3.bf16.msra.mxu0 %v8711_v55  ;;  %v10453_v55 = vld [vmem:[%s10135_s23 + $0x68] sm:$0xff]  ;;  %v6228_v23 = vld [vmem:[%s11490_s1 + $0xd0] sm:$0xff]  ;;  %v6393_v41 = vld [vmem:[%s11490_s1 + $0x1f8] sm:$0xff] }
  0x75   : > { %8650 = vmatpush3.bf16.msra.mxu1 %v8647_v56  ;;  %8716 = vmatprep.subr.bf16.mxu0 %v8715_v63  ;;  %v10458_v56 = vld [vmem:[%s10135_s23 + $0x82] sm:$0xff]  ;;  %v8671_v31 = vpack.c.bf16 %v6229_v24, %v6228_v23  ;;  %v6233_v42 = vld [vmem:[%s11490_s1 + $0xf8] sm:$0xff]  ;;  %v6428_v24 = vld [vmem:[%s11490_s1 + $0x210] sm:$0xff] }
  0x76   : > { %7280 = vmatmul.mubr.msk.f32.gmra.mrb[8].mxu1 %vm356_vm0, %v10260_v61  ;;  %8652 = vmatprep.subr.bf16.mxu1 %v8651_v0  ;;  %v6231_v34 = vld [vmem:[%s11490_s1 + $0xe8] sm:$0xff]  ;;  %v6345_v23 = vld [vmem:[%s10135_s23 + $0xe0] sm:$0xff] }
  0x77   : > { %7440 = vmatmul.mubr.msk.f32.gmra.mrb[8].mxu0 %vm356_vm0, %v10274_v1  ;;  %7282 = vmatprep.mubr.msk.f32.mxu1 %vm356_vm0, %v10263_v62 }
  0x78   : > { %7442 = vmatprep.mubr.msk.f32.mxu0 %vm356_vm0, %v10277_v2 }
  0x7a   : > { %7283 = vmatmul.mubr.msk.f32.gmra.mrb[10].mxu1 %vm356_vm0, %v10274_v1 }
  0x7b   : > { %7443 = vmatmul.mubr.msk.f32.gmra.mrb[10].mxu0 %vm356_vm0, %v10288_v3  ;;  %7285 = vmatprep.mubr.msk.f32.mxu1 %vm356_vm0, %v10277_v2 }
  0x7c   : > { %7445 = vmatprep.mubr.msk.f32.mxu0 %vm356_vm0, %v10291_v4 }
  0x7e   : > { %7286 = vmatmul.mubr.msk.f32.gmra.mrb[12].mxu1 %vm356_vm0, %v10288_v3 }
  0x7f   : > { %7446 = vmatmul.mubr.msk.f32.gmra.mrb[12].mxu0 %vm356_vm0, %v10302_v5  ;;  %7288 = vmatprep.mubr.msk.f32.mxu1 %vm356_vm0, %v10291_v4 }
  0x80   : > { %7448 = vmatprep.mubr.msk.f32.mxu0 %vm356_vm0, %v10305_v6 }
  0x82   : > { %7289 = vmatmul.mubr.msk.f32.gmra.mrb[14].mxu1 %vm356_vm0, %v10302_v5 }
  0x83   : > { %7449 = vmatmul.mubr.msk.f32.gmra.mrb[14].mxu0 %vm356_vm0, %v10316_v7  ;;  %7307 = vmatprep.mubr.msk.f32.mxu1 %vm356_vm0, %v307_v8  ;;  %v10493_v8 = vld [vmem:[%s10135_s23 + $0x98] sm:$0xff] }
  0x84   : > { %7467 = vmatprep.mubr.msk.f32.mxu0 %vm356_vm0, %v10320_v9 }
  0x86   : > { %7308 = vmatmul.mubr.msk.f32.vlgmr.msra.gmra.mrb[0].mxu1 %vm356_vm0, %v308_v12  ;;  %v10504_v12 = vld [vmem:[%s10135_s23 + $0xc2] sm:$0xff] }
  0x87   : > { %7468 = vmatmul.mubr.msk.f32.vlgmr.msra.gmra.mrb[0].mxu0 %vm356_vm0, %v10343_v15  ;;  %7310 = vmatprep.mubr.msk.f32.mxu1 %vm356_vm0, %v10346_v16 }
  0x88   : > { %8718 = vmatpush3.bf16.msra.mxu0 %v8715_v63  ;;  %7470 = vmatprep.mubr.msk.f32.mxu0 %vm356_vm0, %v10349_v17  ;;  %v10481_v63 = vld [vmem:[%s10135_s23 + $0x90] sm:$0xff] }
  0x89   : > { %8720 = vmatprep.subr.bf16.mxu0 %v8719_v18  ;;  %8654 = vmatpush3.bf16.msra.mxu1 %v8651_v0  ;;  %v10484_v0 = vld [vmem:[%s10135_s23 + $0xaa] sm:$0xff] }
  0x8a   : > { %7311 = vmatmul.mubr.msk.f32.gmra.mrb[2].mxu1 %vm356_vm0, %v10363_v22  ;;  %8656 = vmatprep.subr.bf16.mxu1 %v8655_v21 }
  0x8b   : > { %7471 = vmatmul.mubr.msk.f32.gmra.mrb[2].mxu0 %vm356_vm0, %v10374_v25  ;;  %7313 = vmatprep.mubr.msk.f32.mxu1 %vm356_vm0, %v10377_v26 }
  0x8c   : > { %7473 = vmatprep.mubr.msk.f32.mxu0 %vm356_vm0, %v10380_v27  ;;  %8722 = vmatpush3.bf16.msra.mxu0 %v8719_v18  ;;  %v743_v18 = vld [vmem:[%s10135_s23 + $0x2] sm:$0xff] }
  0x8d   : > { %8724 = vmatprep.subr.bf16.mxu0 %v8723_v28  ;;  %8658 = vmatpush3.bf16.msra.mxu1 %v8655_v21  ;;  %v744_v21 = vld [vmem:[%s10135_s23 + $0xa] sm:$0xff] }
  0x8e   : > { %7314 = vmatmul.mubr.msk.f32.gmra.mrb[4].mxu1 %vm356_vm0, %v10395_v32  ;;  %8660 = vmatprep.subr.bf16.mxu1 %v8659_v29 }
  0x8f   : > { %7474 = vmatmul.mubr.msk.f32.gmra.mrb[4].mxu0 %vm356_vm0, %v10406_v35  ;;  %7316 = vmatprep.mubr.msk.f32.mxu1 %vm356_vm0, %v10409_v36 }
  0x90   : > { %7476 = vmatprep.mubr.msk.f32.mxu0 %vm356_vm0, %v10412_v37  ;;  %8726 = vmatpush3.bf16.msra.mxu0 %v8723_v28  ;;  %v8735_v28 = vpack.c.bf16 %v6389_v20, %v6388_v19  ;;  %v6342_v19 = vld [vmem:[%s10135_s23 + $0xc0] sm:$0xff]  ;;  %v6343_v20 = vld [vmem:[%s10135_s23 + $0xc8] sm:$0xff] }
  0x91   : > { %8728 = vmatprep.subr.bf16.mxu0 %v8727_v39  ;;  %8662 = vmatpush3.bf16.msra.mxu1 %v8659_v29  ;;  %v6390_v29 = vld [vmem:[%s11490_s1 + $0x1e0] sm:$0xff] }
  0x92   : > { %7317 = vmatmul.mubr.msk.f32.gmra.mrb[6].mxu1 %vm356_vm0, %v10427_v43  ;;  %8664 = vmatprep.subr.bf16.mxu1 %v8663_v40 }
  0x93   : > { %7477 = vmatmul.mubr.msk.f32.gmra.mrb[6].mxu0 %vm356_vm0, %v10438_v48  ;;  %7319 = vmatprep.mubr.msk.f32.mxu1 %vm356_vm0, %v10441_v49 }
  0x94   : > { %7479 = vmatprep.mubr.msk.f32.mxu0 %vm356_vm0, %v10444_v50  ;;  %8730 = vmatpush3.bf16.msra.mxu0 %v8727_v39  ;;  %v8739_v39 = vpack.c.bf16 %v6391_v30, %v6390_v29  ;;  %v6430_v30 = vld [vmem:[%s11490_s1 + $0x220] sm:$0xff] }
  0x95   : > { %8666 = vmatpush3.bf16.msra.mxu1 %v8663_v40  ;;  %8732 = vmatprep.subr.bf16.mxu0 %v8731_v51  ;;  %v6392_v40 = vld [vmem:[%s11490_s1 + $0x1f0] sm:$0xff] }
  0x96   : > { %7320 = vmatmul.mubr.msk.f32.gmra.mrb[8].mxu1 %vm356_vm0, %v10453_v55  ;;  %8668 = vmatprep.subr.bf16.mxu1 %v8667_v52  ;;  %v8743_v44 = vpack.c.bf16 %v6393_v41, %v6392_v40  ;;  %v2493_v41 = vld [vmem:[#allocation4 + $0x40] sm:$0xff] }
  0x97   : > { %7480 = vmatmul.mubr.msk.f32.gmra.mrb[8].mxu0 %vm356_vm0, %v10458_v56  ;;  %7322 = vmatprep.mubr.msk.f32.mxu1 %vm356_vm0, %v10461_v57 }
  0x98   : > { %7482 = vmatprep.mubr.msk.f32.mxu0 %vm356_vm0, %v10464_v58 }
  0x9a   : > { %7323 = vmatmul.mubr.msk.f32.gmra.mrb[10].mxu1 %vm356_vm0, %v10473_v59 }
  0x9b   : > { %7483 = vmatmul.mubr.msk.f32.gmra.mrb[10].mxu0 %vm356_vm0, %v10478_v60  ;;  %7325 = vmatprep.mubr.msk.f32.mxu1 %vm356_vm0, %v10481_v63 }
  0x9c   : > { %7485 = vmatprep.mubr.msk.f32.mxu0 %vm356_vm0, %v10484_v0 }
  0x9e   : > { %7326 = vmatmul.mubr.msk.f32.gmra.mrb[12].mxu1 %vm356_vm0, %v10493_v8 }
  0x9f   : > { %7486 = vmatmul.mubr.msk.f32.gmra.mrb[12].mxu0 %vm356_vm0, %v10498_v10  ;;  %7328 = vmatprep.mubr.msk.f32.mxu1 %vm356_vm0, %v10501_v11 }
  0xa0   : > { %7488 = vmatprep.mubr.msk.f32.mxu0 %vm356_vm0, %v10504_v12 }
  0xa2   : > { %7329 = vmatmul.mubr.msk.f32.gmra.mrb[14].mxu1 %vm356_vm0, %v10513_v13 }
  0xa3   : > { %7489 = vmatmul.mubr.msk.f32.gmra.mrb[14].mxu0 %vm356_vm0, %v10518_v14  ;;  %7347 = vmatprep.mubr.msk.f32.mxu1 %vm356_vm0, %v743_v18 }
  0xa4   : > { %7507 = vmatprep.mubr.msk.f32.mxu0 %vm356_vm0, %v10377_v26 }
  0xa6   : > { %7348 = vmatmul.mubr.msk.f32.vlgmr.msra.gmra.mrb[0].mxu1 %vm356_vm0, %v744_v21  ;;  %v6344_v21 = vld [vmem:[%s10135_s23 + $0xd8] sm:$0xff] }
  0xa7   : > { %7508 = vmatmul.mubr.msk.f32.vlgmr.msra.gmra.mrb[0].mxu0 %vm356_vm0, %v10395_v32  ;;  %7350 = vmatprep.mubr.msk.f32.mxu1 %vm356_vm0, %v10320_v9  ;;  %v8675_v9 = vpack.c.bf16 %v6231_v34, %v6230_v33  ;;  %v2490_v33 = vld [vmem:[#allocation4 + $0x28] sm:$0xff] }
  0xa8   : > { %8734 = vmatpush3.bf16.msra.mxu0 %v8731_v51  ;;  %7510 = vmatprep.mubr.msk.f32.mxu0 %vm356_vm0, %v10409_v36  ;;  %v6426_v51 = vld [vmem:[%s11490_s1 + $0x200] sm:$0xff] }
  0xa9   : > { %8736 = vmatprep.subr.bf16.mxu0 %v8735_v28  ;;  %8670 = vmatpush3.bf16.msra.mxu1 %v8667_v52  ;;  %v6427_v52 = vld [vmem:[%s11490_s1 + $0x208] sm:$0xff] }
  0xaa   : > { %7351 = vmatmul.mubr.msk.f32.gmra.mrb[2].mxu1 %vm356_vm0, %v10343_v15  ;;  %8672 = vmatprep.subr.bf16.mxu1 %v8671_v31  ;;  %v6232_v15 = vld [vmem:[%s11490_s1 + $0xf0] sm:$0xff]  ;;  %v8747_v18 = vpack.c.bf16 %v6427_v52, %v6426_v51  ;;  %v2497_v52 = vld [vmem:[#allocation4 + $0x60] sm:$0xff] }
  0xab   : > { %7511 = vmatmul.mubr.msk.f32.gmra.mrb[2].mxu0 %vm356_vm0, %v10427_v43  ;;  %7353 = vmatprep.mubr.msk.f32.mxu1 %vm356_vm0, %v10349_v17  ;;  %v8679_v47 = vpack.c.bf16 %v6233_v42, %v6232_v15  ;;  %v2494_v15 = vld [vmem:[#allocation4 + $0x48] sm:$0xff] }
  0xac   : > { %7513 = vmatprep.mubr.msk.f32.mxu0 %vm356_vm0, %v10441_v49  ;;  %8738 = vmatpush3.bf16.msra.mxu0 %v8735_v28  ;;  %v6429_v28 = vld [vmem:[%s11490_s1 + $0x218] sm:$0xff]  ;;  %v8811_v42 = vpack.c.bf16 %v2494_v15, %v2493_v41 }
  0xad   : > { %8740 = vmatprep.subr.bf16.mxu0 %v8739_v39  ;;  %8674 = vmatpush3.bf16.msra.mxu1 %v8671_v31  ;;  %v8751_v29 = vpack.c.bf16 %v6429_v28, %v6428_v24  ;;  %v6431_v31 = vld [vmem:[%s11490_s1 + $0x228] sm:$0xff]  ;;  %v2841_v24 = vld [vmem:[#allocation4 + $0x100] sm:$0xff] }
  0xae   : > { %7354 = vmatmul.mubr.msk.f32.gmra.mrb[4].mxu1 %vm356_vm0, %v10374_v25  ;;  %8676 = vmatprep.subr.bf16.mxu1 %v8675_v9  ;;  %v2842_v28 = vld [vmem:[#allocation4 + $0x108] sm:$0xff] }
  0xaf   : > { %7514 = vmatmul.mubr.msk.f32.gmra.mrb[4].mxu0 %vm356_vm0, %v10453_v55  ;;  %7356 = vmatprep.mubr.msk.f32.mxu1 %vm356_vm0, %v10380_v27 }
  0xb0   : > { %7516 = vmatprep.mubr.msk.f32.mxu0 %vm356_vm0, %v10461_v57  ;;  %8742 = vmatpush3.bf16.msra.mxu0 %v8739_v39  ;;  %v2491_v39 = vld [vmem:[#allocation4 + $0x30] sm:$0xff] }
  0xb1   : > { %8744 = vmatprep.subr.bf16.mxu0 %v8743_v44  ;;  %8678 = vmatpush3.bf16.msra.mxu1 %v8675_v9  ;;  %v2492_v9 = vld [vmem:[#allocation4 + $0x38] sm:$0xff] }
  0xb2   : > { %7357 = vmatmul.mubr.msk.f32.gmra.mrb[6].mxu1 %vm356_vm0, %v10406_v35  ;;  %8680 = vmatprep.subr.bf16.mxu1 %v8679_v47  ;;  %v8807_v40 = vpack.c.bf16 %v2492_v9, %v2491_v39 }
  0xb3   : > { %7517 = vmatmul.mubr.msk.f32.gmra.mrb[6].mxu0 %vm356_vm0, %v10473_v59  ;;  %7359 = vmatprep.mubr.msk.f32.mxu1 %vm356_vm0, %v10412_v37 }
  0xb4   : > { %7519 = vmatprep.mubr.msk.f32.mxu0 %vm356_vm0, %v10481_v63  ;;  %8746 = vmatpush3.bf16.msra.mxu0 %v8743_v44  ;;  %v2495_v44 = vld [vmem:[#allocation4 + $0x50] sm:$0xff] }
  0xb5   : > { %8682 = vmatpush3.bf16.msra.mxu1 %v8679_v47  ;;  %8748 = vmatprep.subr.bf16.mxu0 %v8747_v18  ;;  %v2496_v47 = vld [vmem:[#allocation4 + $0x58] sm:$0xff] }
  0xb6   : > { %7360 = vmatmul.mubr.msk.f32.gmra.mrb[8].mxu1 %vm356_vm0, %v10438_v48  ;;  %v8815_v51 = vpack.c.bf16 %v2496_v47, %v2495_v44 }
  0xb7   : > { %7520 = vmatmul.mubr.msk.f32.gmra.mrb[8].mxu0 %vm356_vm0, %v10493_v8  ;;  %7362 = vmatprep.mubr.msk.f32.mxu1 %vm356_vm0, %v10444_v50 }
  0xb8   : > { %7522 = vmatprep.mubr.msk.f32.mxu0 %vm356_vm0, %v10501_v11 }
  0xba   : > { %7363 = vmatmul.mubr.msk.f32.gmra.mrb[10].mxu1 %vm356_vm0, %v10458_v56 }
  0xbb   : > { %7523 = vmatmul.mubr.msk.f32.gmra.mrb[10].mxu0 %vm356_vm0, %v10513_v13  ;;  %7365 = vmatprep.mubr.msk.f32.mxu1 %vm356_vm0, %v10464_v58 }
  0xbc   : > { %7525 = vmatprep.mubr.msk.f32.mxu0 %vm356_vm0, %v6342_v19 }
  0xbe   : > { %7366 = vmatmul.mubr.msk.f32.gmra.mrb[12].mxu1 %vm356_vm0, %v10478_v60 }
  0xbf   : > { %7526 = vmatmul.mubr.msk.f32.gmra.mrb[12].mxu0 %vm356_vm0, %v6343_v20  ;;  %7368 = vmatprep.mubr.msk.f32.mxu1 %vm356_vm0, %v10484_v0 }
  0xc0   : > { %7528 = vmatprep.mubr.msk.f32.mxu0 %vm356_vm0, %v6344_v21  ;;  %v2500_v21 = vld [vmem:[#allocation4 + $0x78] sm:$0xff] }
  0xc2   : > { %7369 = vmatmul.mubr.msk.f32.gmra.mrb[14].mxu1 %vm356_vm0, %v10498_v10 }
  0xc3   : > { %7529 = vmatmul.mubr.msk.f32.gmra.mrb[14].mxu0 %vm356_vm0, %v6345_v23  ;;  %7387 = vmatprep.mubr.msk.f32.mxu1 %vm356_vm0, %v10346_v16  ;;  %v6432_v16 = vld [vmem:[%s11490_s1 + $0x230] sm:$0xff] }
  0xc4   : > { %7547 = vmatprep.mubr.msk.f32.mxu0 %vm356_vm0, %v10189_v38  ;;  %v8755_v38 = vpack.c.bf16 %v6431_v31, %v6430_v30 }
  0xc6   : > { %7388 = vmatmul.mubr.msk.f32.vlgmr.msra.gmra.mrb[0].mxu1 %vm356_vm0, %v10363_v22 }
  0xc7   : > { %7548 = vmatmul.mubr.msk.f32.vlgmr.msra.gmra.mrb[0].mxu0 %vm356_vm0, %v10209_v45  ;;  %7390 = vmatprep.mubr.msk.f32.mxu1 %vm356_vm0, %v10377_v26  ;;  %v6433_v45 = vld [vmem:[%s11490_s1 + $0x238] sm:$0xff] }
  0xc8   : > { %8750 = vmatpush3.bf16.msra.mxu0 %v8747_v18  ;;  %7550 = vmatprep.mubr.msk.f32.mxu0 %vm356_vm0, %v10212_v46  ;;  %v8759_v46 = vpack.c.bf16 %v6433_v45, %v6432_v16  ;;  %v2525_v26 = vld [vmem:[#allocation4 + $0xb8] sm:$0xff]  ;;  %v2498_v18 = vld [vmem:[#allocation4 + $0x68] sm:$0xff] }
  0xc9   : > { %8752 = vmatprep.subr.bf16.mxu0 %v8751_v29 }
  0xca   : > { %7391 = vmatmul.mubr.msk.f32.gmra.mrb[2].mxu1 %vm356_vm0, %v10395_v32  ;;  %v2526_v32 = vld [vmem:[#allocation4 + $0xc0] sm:$0xff] }
  0xcb   : > { %7551 = vmatmul.mubr.msk.f32.gmra.mrb[2].mxu0 %vm356_vm0, %v10234_v53  ;;  %7393 = vmatprep.mubr.msk.f32.mxu1 %vm356_vm0, %v10409_v36  ;;  %v6384_v53 = vld [vmem:[%s10135_s23 + $0xd9] sm:$0xff] }
  0xcc   : > { %7553 = vmatprep.mubr.msk.f32.mxu0 %vm356_vm0, %v10237_v54  ;;  %8754 = vmatpush3.bf16.msra.mxu0 %v8751_v29  ;;  %v6385_v54 = vld [vmem:[%s10135_s23 + $0xe1] sm:$0xff]  ;;  %v10802_v29 = vpack.c.bf16 %v2842_v28, %v2841_v24 }
  0xcd   : > { %8756 = vmatprep.subr.bf16.mxu0 %v8755_v38 }
  0xce   : > { %7394 = vmatmul.mubr.msk.f32.gmra.mrb[4].mxu1 %vm356_vm0, %v10427_v43  ;;  %v2529_v43 = vld [vmem:[#allocation4 + $0xd8] sm:$0xff] }
  0xcf   : > { %7554 = vmatmul.mubr.msk.f32.gmra.mrb[4].mxu0 %vm356_vm0, %v10260_v61  ;;  %7396 = vmatprep.mubr.msk.f32.mxu1 %vm356_vm0, %v10441_v49  ;;  %v6424_v61 = vld [vmem:[%s10135_s23 + $0xda] sm:$0xff] }
  0xd0   : > { %7556 = vmatprep.mubr.msk.f32.mxu0 %vm356_vm0, %v10263_v62  ;;  %8758 = vmatpush3.bf16.msra.mxu0 %v8755_v38  ;;  %v6425_v62 = vld [vmem:[%s10135_s23 + $0xe2] sm:$0xff]  ;;  %s9940_s23 = smov [#allocation9]  }
  0xd1   : > { %8760 = vmatprep.subr.bf16.mxu0 %v8759_v46  ;;  %v2530_v49 = vld [vmem:[#allocation4 + $0xe0] sm:$0xff]  ;;  %s9867_s29 = sshll.u32 %s9940_s23, 4  ;;  %s9868_s29 = int_to_ptr.vmem [resolvable:$false] %s9867_s29 }
  0xd2   : > { %7397 = vmatmul.mubr.msk.f32.gmra.mrb[6].mxu1 %vm356_vm0, %v10453_v55  ;;  %s9869_s8 = scalar_lea.vmem %s9868_s29, 4096  ;;  %p9870_p4 = scmp.lt.s32.totalorder %s11442_s13, %s9868_s29 }
  0xd3   : > { %7557 = vmatmul.mubr.msk.f32.gmra.mrb[6].mxu0 %vm356_vm0, %v10274_v1  ;;  %7399 = vmatprep.mubr.msk.f32.mxu1 %vm356_vm0, %v10461_v57  ;;  %v2518_v1 = vld [vmem:[#allocation4 + $0x80] sm:$0xff]  ;;  %v2532_v57 = vld [vmem:[#allocation4 + $0xf0] sm:$0xff]  ;;  %p9871_p7 = scmp.lt.s32.totalorder %s9869_s8, %s9863_s22 }
  0xd4   : > { %7559 = vmatprep.mubr.msk.f32.mxu0 %vm356_vm0, %v10277_v2  ;;  %8762 = vmatpush3.bf16.msra.mxu0 %v8759_v46  ;;  %v2519_v2 = vld [vmem:[#allocation4 + $0x88] sm:$0xff] }
  0xd5   : > { %p9872_p8 = por %p9871_p7, %p9870_p4 }
  0xd6   : > { %7400 = vmatmul.mubr.msk.f32.gmra.mrb[8].mxu1 %vm356_vm0, %v10473_v59 }
  0xd7   : > { %7560 = vmatmul.mubr.msk.f32.gmra.mrb[8].mxu0 %vm356_vm0, %v10288_v3  ;;  %7402 = vmatprep.mubr.msk.f32.mxu1 %vm356_vm0, %v10481_v63  ;;  %v8763_v3 = vpack.c.bf16 %v2519_v2, %v2518_v1  ;;  %v2486_v63 = vld [vmem:[#allocation4 + $0x8] sm:$0xff]  ;;  %p9873_p11 = pnand %p9872_p8, %p9866_p3 }
  0xd8   : > { %7562 = vmatprep.mubr.msk.f32.mxu0 %vm356_vm0, %v10291_v4  ;;  %v2520_v4 = vld [vmem:[#allocation4 + $0x90] sm:$0xff] }
  0xd9   : > { %8764 = vmatprep.subr.bf16.mxu1 %v8763_v3 }
  0xda   : > { %7403 = vmatmul.mubr.msk.f32.gmra.mrb[10].mxu1 %vm356_vm0, %v10493_v8 }
  0xdb   : > { %7563 = vmatmul.mubr.msk.f32.gmra.mrb[10].mxu0 %vm356_vm0, %v10302_v5  ;;  %7405 = vmatprep.mubr.msk.f32.mxu1 %vm356_vm0, %v10501_v11  ;;  %v2521_v5 = vld [vmem:[#allocation4 + $0x98] sm:$0xff]  ;;  %v2487_v11 = vld [vmem:[#allocation4 + $0x10] sm:$0xff] }
  0xdc   : > { %7565 = vmatprep.mubr.msk.f32.mxu0 %vm356_vm0, %v10305_v6  ;;  %8766 = vmatpush3.bf16.msra.mxu1 %v8763_v3  ;;  %v8767_v6 = vpack.c.bf16 %v2521_v5, %v2520_v4 }
  0xde   : > { %7406 = vmatmul.mubr.msk.f32.gmra.mrb[12].mxu1 %vm356_vm0, %v10513_v13  ;;  %8768 = vmatprep.subr.bf16.mxu1 %v8767_v6 }
  0xdf   : > { %7566 = vmatmul.mubr.msk.f32.gmra.mrb[12].mxu0 %vm356_vm0, %v10316_v7  ;;  %7408 = vmatprep.mubr.msk.f32.mxu1 %vm356_vm0, %v6342_v19  ;;  %v2522_v7 = vld [vmem:[#allocation4 + $0xa0] sm:$0xff]  ;;  %v8819_v19 = vpack.c.bf16 %v2498_v18, %v2497_v52 }
  0xe0   : > { %7568 = vmatprep.mubr.msk.f32.mxu0 %vm356_vm0, %v6384_v53  ;;  %8770 = vmatpush3.bf16.msra.mxu1 %v8767_v6 }
  0xe2   : > { %7409 = vmatmul.mubr.msk.f32.gmra.mrb[14].mxu1 %vm356_vm0, %v6343_v20  ;;  %v2499_v20 = vld [vmem:[#allocation4 + $0x70] sm:$0xff] }
  0xe3   : > { %7569 = vmatmul.mubr.msk.f32.gmra.mrb[14].mxu0 %vm356_vm0, %v6385_v54  ;;  %v8823_v23 = vpack.c.bf16 %v2500_v21, %v2499_v20 }
  0xe4   : > { %7587 = vmatprep.mubr.msk.f32.mxu0 %vm356_vm0, %v10349_v17  ;;  %v2523_v17 = vld [vmem:[#allocation4 + $0xa8] sm:$0xff] }
  0xe5   : > { %v8771_v22 = vpack.c.bf16 %v2523_v17, %v2522_v7  ;;  %v10818_v17 = vld [vmem:[%s11491_s2] ss:$0 sm:$0xff] }
  0xe7   : > { %7588 = vmatmul.mubr.msk.f32.vlgmr.msra.gmra.mrb[0].mxu0 %vm356_vm0, %v10374_v25  ;;  %8772 = vmatprep.subr.bf16.mxu1 %v8771_v22  ;;  %v2524_v25 = vld [vmem:[#allocation4 + $0xb0] sm:$0xff] }
  0xe8   : > { %7590 = vmatprep.mubr.msk.f32.mxu0 %vm356_vm0, %v10380_v27  ;;  %8774 = vmatpush3.bf16.msra.mxu1 %v8771_v22  ;;  %v8775_v27 = vpack.c.bf16 %v2525_v26, %v2524_v25 }
  0xea   : > { %8776 = vmatprep.subr.bf16.mxu1 %v8775_v27 }
  0xeb   : > { %7591 = vmatmul.mubr.msk.f32.gmra.mrb[2].mxu0 %vm356_vm0, %v10406_v35  ;;  %v2527_v35 = vld [vmem:[#allocation4 + $0xc8] sm:$0xff] }
  0xec   : > { %7593 = vmatprep.mubr.msk.f32.mxu0 %vm356_vm0, %v10412_v37  ;;  %8778 = vmatpush3.bf16.msra.mxu1 %v8775_v27  ;;  %v8779_v36 = vpack.c.bf16 %v2527_v35, %v2526_v32  ;;  %v2528_v37 = vld [vmem:[#allocation4 + $0xd0] sm:$0xff] }
  0xee   : > { %8780 = vmatprep.subr.bf16.mxu1 %v8779_v36 }
  0xef   : > { %7594 = vmatmul.mubr.msk.f32.gmra.mrb[4].mxu0 %vm356_vm0, %v10438_v48  ;;  %v8783_v48 = vpack.c.bf16 %v2529_v43, %v2528_v37 }
  0xf0   : > { %7596 = vmatprep.mubr.msk.f32.mxu0 %vm356_vm0, %v10444_v50  ;;  %8782 = vmatpush3.bf16.msra.mxu1 %v8779_v36  ;;  %v2531_v50 = vld [vmem:[#allocation4 + $0xe8] sm:$0xff] }
  0xf1   : > { %8784 = vmatprep.subr.bf16.mxu1 %v8783_v48  ;;  %v8787_v55 = vpack.c.bf16 %v2531_v50, %v2530_v49 }
  0xf3   : > { %7597 = vmatmul.mubr.msk.f32.gmra.mrb[6].mxu0 %vm356_vm0, %v10458_v56  ;;  %v9939_v56 = vmov 0.0  }
  0xf4   : > { %7599 = vmatprep.mubr.msk.f32.mxu0 %vm356_vm0, %v10464_v58  ;;  %8786 = vmatpush3.bf16.msra.mxu1 %v8783_v48  ;;  %2426 = vst [vmem:[#allocation2 + $0x20] sm:$0xff] %v9939_v56  ;;  %2427 = vst [vmem:[#allocation2 + $0x28] sm:$0x3] %v9939_v56  ;;  %v2533_v58 = vld [vmem:[#allocation4 + $0xf8] sm:$0xff] }
  0xf5   : > { %2422 = vst [vmem:[#allocation2] sm:$0xff] %v9939_v56  ;;  %2423 = vst [vmem:[#allocation2 + $0x8] sm:$0xff] %v9939_v56  ;;  %8788 = vmatprep.subr.bf16.mxu1 %v8787_v55  ;;  %v8791_v59 = vpack.c.bf16 %v2533_v58, %v2532_v57 }
  0xf6   : > { %2424 = vst [vmem:[#allocation2 + $0x10] sm:$0x3] %v9939_v56  ;;  %2425 = vst [vmem:[#allocation2 + $0x18] sm:$0xff] %v9939_v56 }
  0xf7   : > { %7600 = vmatmul.mubr.msk.f32.gmra.mrb[8].mxu0 %vm356_vm0, %v10478_v60  ;;  %2428 = vst [vmem:[#allocation2 + $0x30] sm:$0xff] %v9939_v56  ;;  %2429 = vst [vmem:[#allocation2 + $0x38] sm:$0xff] %v9939_v56  ;;  %v2485_v60 = vld [vmem:[#allocation4] sm:$0xff] }
  0xf8   : > { %7602 = vmatprep.mubr.msk.f32.mxu0 %vm356_vm0, %v10484_v0  ;;  %2430 = vst [vmem:[#allocation2 + $0x40] sm:$0x3] %v9939_v56  ;;  %2431 = vst [vmem:[#allocation2 + $0x48] sm:$0xff] %v9939_v56  ;;  %8790 = vmatpush3.bf16.msra.mxu1 %v8787_v55  ;;  %v8795_v8 = vpack.c.bf16 %v2486_v63, %v2485_v60 }
  0xf9   : > { %2432 = vst [vmem:[#allocation2 + $0x50] sm:$0xff] %v9939_v56  ;;  %2433 = vst [vmem:[#allocation2 + $0x58] sm:$0x3] %v9939_v56  ;;  %8792 = vmatprep.subr.bf16.mxu1 %v8791_v59 }
  0xfa   : > { %2434 = vst [vmem:[#allocation2 + $0x60] sm:$0xff] %v9939_v56  ;;  %2435 = vst [vmem:[#allocation2 + $0x68] sm:$0xff] %v9939_v56 }
  0xfb   : > { %7603 = vmatmul.mubr.msk.f32.gmra.mrb[10].mxu0 %vm356_vm0, %v10498_v10  ;;  %2436 = vst [vmem:[#allocation2 + $0x70] sm:$0x3] %v9939_v56  ;;  %2437 = vst [vmem:[#allocation2 + $0x78] sm:$0xff] %v9939_v56 }
  0xfc   : > { %7605 = vmatprep.mubr.msk.f32.mxu0 %vm356_vm0, %v10504_v12  ;;  %2438 = vst [vmem:[#allocation2 + $0x80] sm:$0xff] %v9939_v56  ;;  %2439 = vst [vmem:[#allocation2 + $0x88] sm:$0x3] %v9939_v56  ;;  %8794 = vmatpush3.bf16.msra.mxu1 %v8791_v59  ;;  %v2501_v0 = vld [vmem:[#allocation2 + $0x1] sm:$0xff]  ;;  %v2488_v12 = vld [vmem:[#allocation4 + $0x18] sm:$0xff] }
  0xfd   : > { %2440 = vst [vmem:[#allocation2 + $0x90] sm:$0xff] %v9939_v56  ;;  %2441 = vst [vmem:[#allocation2 + $0x98] sm:$0xff] %v9939_v56  ;;  %7643 = vmatprep.mubr.f32.mxu1 %v2501_v0  ;;  %v2502_v10 = vld [vmem:[#allocation2 + $0x9] sm:$0xff]  ;;  %8796 = vmatprep.subr.bf16.mxu1 %v8795_v8  ;;  %v8799_v13 = vpack.c.bf16 %v2488_v12, %v2487_v11 }
  0xfe   : > { %2442 = vst [vmem:[#allocation2 + $0xa0] sm:$0x3] %v9939_v56  ;;  %2443 = vst [vmem:[#allocation2 + $0xa8] sm:$0xff] %v9939_v56 }
  0xff   : > { %7606 = vmatmul.mubr.msk.f32.gmra.mrb[12].mxu0 %vm356_vm0, %v10518_v14  ;;  %2444 = vst [vmem:[#allocation2 + $0xb0] sm:$0xff] %v9939_v56  ;;  %2445 = vst [vmem:[#allocation2 + $0xb8] sm:$0x3] %v9939_v56  ;;  %7644 = vmatmul.mubr.f32.vlgmr.msra.gmra.mrb[16].mxu1 %v2502_v10  ;;  %v2489_v14 = vld [vmem:[#allocation4 + $0x20] sm:$0xff] }
 0x100   : > { %7608 = vmatprep.mubr.msk.f32.mxu0 %vm356_vm0, %v6424_v61  ;;  %2446 = vst [vmem:[#allocation2 + $0xc0] sm:$0xff] %v9939_v56  ;;  %2447 = vst [vmem:[#allocation2 + $0xc8] sm:$0xff] %v9939_v56  ;;  %8798 = vmatpush3.bf16.msra.mxu1 %v8795_v8  ;;  %v8803_v34 = vpack.c.bf16 %v2490_v33, %v2489_v14 }
 0x101   : > { %2448 = vst [vmem:[#allocation2 + $0xd0] sm:$0x3] %v9939_v56  ;;  %2449 = vst [vmem:[#allocation2 + $0xd8] sm:$0xff] %v9939_v56  ;;  %8800 = vmatprep.subr.bf16.mxu1 %v8799_v13 }
 0x102   : > { %2450 = vst [vmem:[#allocation2 + $0xe0] sm:$0xff] %v9939_v56  ;;  %2451 = vst [vmem:[#allocation2 + $0xe8] sm:$0x3] %v9939_v56 }
 0x103   : > { %7609 = vmatmul.mubr.msk.f32.gmra.mrb[14].mxu0 %vm356_vm0, %v6425_v62  ;;  %4222 = vst [vmem:[#allocation3] sm:$0xff] %v9939_v56  ;;  %4223 = vst [vmem:[#allocation3 + $0x8] sm:$0xff] %v9939_v56 }
 0x104   : > { %4224 = vst [vmem:[#allocation3 + $0x10] sm:$0x3] %v9939_v56  ;;  %4225 = vst [vmem:[#allocation3 + $0x18] sm:$0xff] %v9939_v56  ;;  %8802 = vmatpush3.bf16.msra.mxu1 %v8799_v13 }
 0x105   : > { %4226 = vst [vmem:[#allocation3 + $0x20] sm:$0xff] %v9939_v56  ;;  %4227 = vst [vmem:[#allocation3 + $0x28] sm:$0x3] %v9939_v56  ;;  %8804 = vmatprep.subr.bf16.mxu1 %v8803_v34 }
 0x106   : > { %4228 = vst [vmem:[#allocation3 + $0x30] sm:$0xff] %v9939_v56  ;;  %4229 = vst [vmem:[#allocation3 + $0x38] sm:$0xff] %v9939_v56 }
 0x107   : > { %4230 = vst [vmem:[#allocation3 + $0x40] sm:$0x3] %v9939_v56  ;;  %4231 = vst [vmem:[#allocation3 + $0x48] sm:$0xff] %v9939_v56 }
 0x108   : > { %4232 = vst [vmem:[#allocation3 + $0x50] sm:$0xff] %v9939_v56  ;;  %4233 = vst [vmem:[#allocation3 + $0x58] sm:$0x3] %v9939_v56  ;;  %8806 = vmatpush3.bf16.msra.mxu1 %v8803_v34 }
 0x109   : > { %4234 = vst [vmem:[#allocation3 + $0x60] sm:$0xff] %v9939_v56  ;;  %4235 = vst [vmem:[#allocation3 + $0x68] sm:$0xff] %v9939_v56  ;;  %8808 = vmatprep.subr.bf16.mxu1 %v8807_v40 }
 0x10a   : > { %4236 = vst [vmem:[#allocation3 + $0x70] sm:$0x3] %v9939_v56  ;;  %4237 = vst [vmem:[#allocation3 + $0x78] sm:$0xff] %v9939_v56 }
 0x10b   : > { %4238 = vst [vmem:[#allocation3 + $0x80] sm:$0xff] %v9939_v56  ;;  %4239 = vst [vmem:[#allocation3 + $0x88] sm:$0x3] %v9939_v56 }
 0x10c   : > { %4240 = vst [vmem:[#allocation3 + $0x90] sm:$0xff] %v9939_v56  ;;  %4241 = vst [vmem:[#allocation3 + $0x98] sm:$0xff] %v9939_v56  ;;  %8810 = vmatpush3.bf16.msra.mxu1 %v8807_v40 }
 0x10d   : > { %4242 = vst [vmem:[#allocation3 + $0xa0] sm:$0x3] %v9939_v56  ;;  %4243 = vst [vmem:[#allocation3 + $0xa8] sm:$0xff] %v9939_v56  ;;  %8812 = vmatprep.subr.bf16.mxu1 %v8811_v42 }
 0x10e   : > { %4244 = vst [vmem:[#allocation3 + $0xb0] sm:$0xff] %v9939_v56  ;;  %4245 = vst [vmem:[#allocation3 + $0xb8] sm:$0x3] %v9939_v56 }
 0x10f   : > { %4246 = vst [vmem:[#allocation3 + $0xc0] sm:$0xff] %v9939_v56  ;;  %4247 = vst [vmem:[#allocation3 + $0xc8] sm:$0xff] %v9939_v56 }
 0x110   : > { %4248 = vst [vmem:[#allocation3 + $0xd0] sm:$0x3] %v9939_v56  ;;  %4249 = vst [vmem:[#allocation3 + $0xd8] sm:$0xff] %v9939_v56  ;;  %8814 = vmatpush3.bf16.msra.mxu1 %v8811_v42 }
 0x111   : > { %4250 = vst [vmem:[#allocation3 + $0xe0] sm:$0xff] %v9939_v56  ;;  %4251 = vst [vmem:[#allocation3 + $0xe8] sm:$0x3] %v9939_v56  ;;  %8816 = vmatprep.subr.bf16.mxu1 %v8815_v51 }
 0x114   : > { %8818 = vmatpush3.bf16.msra.mxu1 %v8815_v51 }
 0x115   : > { %8820 = vmatprep.subr.bf16.mxu1 %v8819_v19 }
 0x118   : > { %8822 = vmatpush3.bf16.msra.mxu1 %v8819_v19 }
 0x119   : > { %8824 = vmatprep.subr.bf16.mxu1 %v8823_v23 }
 0x11c   : > { %8826 = vmatpush3.bf16.msra.mxu1 %v8823_v23 }
 0x11d   : > { %8828 = vmatprep.subr.bf16.mxu1 %v10802_v29 }
 0x199   : > { %v7389_v30 = vpop.f32.mrb[0].mxu1 }
 0x19a   : > { %v1117_v31 = vpop.f32.mrb[1].mxu1 }
 0x19d   : > { %v7392_v38 = vpop.f32.mrb[2].mxu1 }
 0x19e   : > { %v1127_v16 = vpop.f32.mrb[3].mxu1 }
 0x1a1   : > { %v7395_v45 = vpop.f32.mrb[4].mxu1 }
 0x1a2   : > { %v1137_v46 = vpop.f32.mrb[5].mxu1 }
 0x1a5   : > { %v7398_v53 = vpop.f32.mrb[6].mxu1 }
 0x1a6   : > { %v1147_v54 = vpop.f32.mrb[7].mxu1 }
 0x1a9   : > { %v7401_v61 = vpop.f32.mrb[8].mxu1 }
 0x1aa   : > { %v1157_v62 = vpop.f32.mrb[9].mxu1 }
 0x1ad   : > { %v7404_v1 = vpop.f32.mrb[10].mxu1 }
 0x1ae   : > { %v10805_v2 = vpop.f32.mrb[11].mxu1 }
 0x1b1   : > { %v10807_v3 = vpop.f32.mrb[12].mxu1 }
 0x1b2   : > { %v10809_v4 = vpop.f32.mrb[13].mxu1 }
 0x1b5   : > { %v10811_v5 = vpop.f32.mrb[14].mxu1 }
 0x1b6   : > { %v10813_v6 = vpop.f32.mrb[15].mxu1 }
 0x1ba   : > { %v7589_v7 = vpop.f32.mrb[0].mxu0 }
 0x1bb   : > { %v9355_v22 = vadd.f32 %v7589_v7, %v7389_v30  ;;  %v2288_v25 = vpop.f32.mrb[1].mxu0 }
 0x1bc   : > { %v9356_v26 = vadd.f32 %v2288_v25, %v1117_v31 }
 0x1bd   : > { %v2391_v27 = vadd.f32 %v9355_v22, %v10818_v17 }
 0x1be   : > { %v2390_v32 = vadd.f32 %v9356_v26, %v10818_v17  ;;  %v7592_v35 = vpop.f32.mrb[2].mxu0  ;;  %v2844_v26 = vld [vmem:[#allocation4 + $0x118] sm:$0xff] }
 0x1bf   : > { %v10822_v36 = vmax.f32 %v2391_v27, 0.0  ;;  %v9357_v37 = vadd.f32 %v7592_v35, %v7392_v38  ;;  %v2298_v43 = vpop.f32.mrb[3].mxu0  ;;  %v2846_v35 = vld [vmem:[#allocation4 + $0x128] sm:$0xff] }
 0x1c0   : > { %v10824_v48 = vmax.f32 %v2390_v32, 0.0  ;;  %v9358_v49 = vadd.f32 %v2298_v43, %v1127_v16 }
 0x1c1   : > { %2454 = vst [vmem:[#allocation2 + $0x21] sm:$0xff] %v10822_v36  ;;  %v2393_v50 = vadd.f32 %v9357_v37, %v10818_v17 }
 0x1c2   : > { %2453 = vst [vmem:[#allocation2 + $0x19] sm:$0xff] %v10824_v48  ;;  %v2392_v55 = vadd.f32 %v9358_v49, %v10818_v17  ;;  %v7595_v57 = vpop.f32.mrb[4].mxu0  ;;  %7646 = vmatprep.mubr.f32.mxu1 %v10824_v48 }
 0x1c3   : > { %v10831_v58 = vmax.f32 %v2393_v50, 0.0  ;;  %v9359_v59 = vadd.f32 %v7595_v57, %v7395_v45  ;;  %v2308_v60 = vpop.f32.mrb[5].mxu0  ;;  %7647 = vmatmul.mubr.f32.gmra.mrb[18].mxu1 %v10822_v36  ;;  %v2847_v50 = vld [vmem:[#allocation4 + $0x130] sm:$0xff] }
 0x1c4   : > { %v10834_v63 = vmax.f32 %v2392_v55, 0.0  ;;  %v9360_v0 = vadd.f32 %v2308_v60, %v1137_v46  ;;  %v2848_v55 = vld [vmem:[#allocation4 + $0x138] sm:$0xff]  ;;  %v2849_v60 = vld [vmem:[#allocation4 + $0x140] sm:$0xff] }
 0x1c5   : > { %2456 = vst [vmem:[#allocation2 + $0x39] sm:$0xff] %v10831_v58  ;;  %v2395_v8 = vadd.f32 %v9359_v59, %v10818_v17 }
 0x1c6   : > { %2455 = vst [vmem:[#allocation2 + $0x31] sm:$0xff] %v10834_v63  ;;  %v2394_v10 = vadd.f32 %v9360_v0, %v10818_v17  ;;  %v7598_v11 = vpop.f32.mrb[6].mxu0  ;;  %7649 = vmatprep.mubr.f32.mxu1 %v10834_v63  ;;  %v2850_v0 = vld [vmem:[#allocation4 + $0x148] sm:$0xff] }
 0x1c7   : > { %v10841_v12 = vmax.f32 %v2395_v8, 0.0  ;;  %v9361_v13 = vadd.f32 %v7598_v11, %v7398_v53  ;;  %v2318_v14 = vpop.f32.mrb[7].mxu0  ;;  %7650 = vmatmul.mubr.f32.gmra.mrb[20].mxu1 %v10831_v58  ;;  %v8843_v8 = vpack.c.bf16 %v2850_v0, %v2849_v60  ;;  %v2851_v11 = vld [vmem:[#allocation4 + $0x150] sm:$0xff] }
 0x1c8   : > { %v10844_v33 = vmax.f32 %v2394_v10, 0.0  ;;  %v9362_v34 = vadd.f32 %v2318_v14, %v1147_v54 }
 0x1c9   : > { %2458 = vst [vmem:[#allocation2 + $0x51] sm:$0xff] %v10841_v12  ;;  %v2397_v39 = vadd.f32 %v9361_v13, %v10818_v17  ;;  %v10909_v37 = vld [vmem:[#allocation2 + $0x18] sm:$0xff]  ;;  %v10913_v49 = vld [vmem:[#allocation2 + $0x20] sm:$0xff] }
 0x1ca   : > { %2457 = vst [vmem:[#allocation2 + $0x49] sm:$0xff] %v10844_v33  ;;  %v2396_v9 = vadd.f32 %v9362_v34, %v10818_v17  ;;  %v7601_v40 = vpop.f32.mrb[8].mxu0  ;;  %7652 = vmatprep.mubr.f32.mxu1 %v10844_v33  ;;  %v2852_v13 = vld [vmem:[#allocation4 + $0x158] sm:$0xff] }
 0x1cb   : > { %v10851_v41 = vmax.f32 %v2397_v39, 0.0  ;;  %v9363_v15 = vadd.f32 %v7601_v40, %v7401_v61  ;;  %v2328_v42 = vpop.f32.mrb[9].mxu0  ;;  %7653 = vmatmul.mubr.f32.gmra.mrb[22].mxu1 %v10841_v12  ;;  %v8847_v34 = vpack.c.bf16 %v2852_v13, %v2851_v11  ;;  %v2854_v40 = vld [vmem:[#allocation4 + $0x168] sm:$0xff]  ;;  %v3045_v11 = vld [vmem:[#allocation4 + $0x1d0] sm:$0xff]  ;;  %v3046_v13 = vld [vmem:[#allocation4 + $0x1d8] sm:$0xff] }
 0x1cc   : > { %v10854_v44 = vmax.f32 %v2396_v9, 0.0  ;;  %v9364_v47 = vadd.f32 %v2328_v42, %v1157_v62  ;;  %v2853_v9 = vld [vmem:[#allocation4 + $0x160] sm:$0xff] }
 0x1cd   : > { %2460 = vst [vmem:[#allocation2 + $0x69] sm:$0xff] %v10851_v41  ;;  %v2399_v51 = vadd.f32 %v9363_v15, %v10818_v17  ;;  %v10916_v57 = vld [vmem:[#allocation2 + $0x30] sm:$0xff]  ;;  %v10919_v59 = vld [vmem:[#allocation2 + $0x38] sm:$0xff]  ;;  %v8851_v42 = vpack.c.bf16 %v2854_v40, %v2853_v9  ;;  %v8879_v9 = vpack.c.bf16 %v3046_v13, %v3045_v11 }
 0x1ce   : > { %2459 = vst [vmem:[#allocation2 + $0x61] sm:$0xff] %v10854_v44  ;;  %v2398_v52 = vadd.f32 %v9364_v47, %v10818_v17  ;;  %v7604_v18 = vpop.f32.mrb[10].mxu0  ;;  %7655 = vmatprep.mubr.f32.mxu1 %v10854_v44  ;;  %v3235_v11 = vld [vmem:[#allocation4 + $0x230] sm:$0xff]  ;;  %v3236_v13 = vld [vmem:[#allocation4 + $0x238] sm:$0xff] }
 0x1cf   : > { %v10861_v19 = vmax.f32 %v2399_v51, 0.0  ;;  %v9365_v20 = vadd.f32 %v7604_v18, %v7404_v1  ;;  %v2338_v21 = vpop.f32.mrb[11].mxu0  ;;  %7656 = vmatmul.mubr.f32.gmra.mrb[24].mxu1 %v10851_v41  ;;  %v2855_v51 = vld [vmem:[#allocation4 + $0x170] sm:$0xff] }
 0x1d0   : > { %v10864_v23 = vmax.f32 %v2398_v52, 0.0  ;;  %v9366_v24 = vadd.f32 %v2338_v21, %v10805_v2  ;;  %v2856_v52 = vld [vmem:[#allocation4 + $0x178] sm:$0xff] }
 0x1d1   : > { %2462 = vst [vmem:[#allocation2 + $0x81] sm:$0xff] %v10861_v19  ;;  %v2401_v28 = vadd.f32 %v9365_v20, %v10818_v17  ;;  %v10925_v10 = vld [vmem:[#allocation2 + $0x50] sm:$0xff]  ;;  %v8855_v20 = vpack.c.bf16 %v2856_v52, %v2855_v51  ;;  %v3048_v51 = vld [vmem:[#allocation4 + $0x1e8] sm:$0xff] }
 0x1d2   : > { %2461 = vst [vmem:[#allocation2 + $0x79] sm:$0xff] %v10864_v23  ;;  %v2400_v30 = vadd.f32 %v9366_v24, %v10818_v17  ;;  %v7607_v31 = vpop.f32.mrb[12].mxu0  ;;  %7658 = vmatprep.mubr.f32.mxu1 %v10864_v23  ;;  %v3035_v24 = vld [vmem:[#allocation4 + $0x180] sm:$0xff]  ;;  %v10964_v60 = vld [vmem:[#allocation2 + $0x4a] sm:$0xff] }
 0x1d3   : > { %v10872_v38 = vmax.f32 %v2401_v28, 0.0  ;;  %v9367_v16 = vadd.f32 %v7607_v31, %v10807_v3  ;;  %v2348_v45 = vpop.f32.mrb[13].mxu0  ;;  %7659 = vmatmul.mubr.f32.gmra.mrb[26].mxu1 %v10861_v19  ;;  %v3036_v28 = vld [vmem:[#allocation4 + $0x188] sm:$0xff] }
 0x1d4   : > { %v10876_v46 = vmax.f32 %v2400_v30, 0.0  ;;  %v9368_v53 = vadd.f32 %v2348_v45, %v10809_v4  ;;  %v2824_v31 = vld [vmem:[#allocation2 + $0x2] sm:$0xff]  ;;  %v10973_v40 = vld [vmem:[#allocation2 + $0x6a] sm:$0xff] }
 0x1d5   : > { %2464 = vst [vmem:[#allocation2 + $0x99] sm:$0xff] %v10872_v38  ;;  %v2403_v54 = vadd.f32 %v9367_v16, %v10818_v17  ;;  %v10928_v14 = vld [vmem:[#allocation2 + $0x60] sm:$0xff]  ;;  %v10931_v39 = vld [vmem:[#allocation2 + $0x68] sm:$0xff]  ;;  %v8859_v16 = vpack.c.bf16 %v3036_v28, %v3035_v24  ;;  %v3049_v28 = vld [vmem:[#allocation4 + $0x1f0] sm:$0xff] }
 0x1d6   : > { %2463 = vst [vmem:[#allocation2 + $0x91] sm:$0xff] %v10876_v46  ;;  %v2402_v61 = vadd.f32 %v9368_v53, %v10818_v17  ;;  %v7610_v62 = vpop.f32.mrb[14].mxu0  ;;  %7661 = vmatprep.mubr.f32.mxu1 %v10876_v46  ;;  %v3037_v53 = vld [vmem:[#allocation4 + $0x190] sm:$0xff] }
 0x1d7   : > { %v10884_v1 = vmax.f32 %v2403_v54, 0.0  ;;  %v9369_v2 = vadd.f32 %v7610_v62, %v10811_v5  ;;  %v2358_v3 = vpop.f32.mrb[15].mxu0  ;;  %7662 = vmatmul.mubr.f32.gmra.mrb[28].mxu1 %v10872_v38  ;;  %v2843_v5 = vld [vmem:[#allocation4 + $0x110] sm:$0xff]  ;;  %v3038_v54 = vld [vmem:[#allocation4 + $0x198] sm:$0xff] }
 0x1d8   : > { %v10888_v7 = vmax.f32 %v2402_v61, 0.0  ;;  %v9370_v4 = vadd.f32 %v2358_v3, %v10813_v6  ;;  %v8831_v32 = vpack.c.bf16 %v2844_v26, %v2843_v5  ;;  %v2825_v61 = vld [vmem:[#allocation2 + $0xa] sm:$0xff]  ;;  %v8863_v62 = vpack.c.bf16 %v3038_v54, %v3037_v53  ;;  %v10955_v26 = vld [vmem:[#allocation2 + $0x22] sm:$0xff] }
 0x1d9   : > { %2466 = vst [vmem:[#allocation2 + $0xb1] sm:$0xff] %v10884_v1  ;;  %v10893_v22 = vadd.f32 %v9369_v2, %v10818_v17  ;;  %v10934_v15 = vld [vmem:[#allocation2 + $0x78] sm:$0xff]  ;;  %v10937_v47 = vld [vmem:[#allocation2 + $0x80] sm:$0xff]  ;;  %v3040_v3 = vld [vmem:[#allocation4 + $0x1a8] sm:$0xff] }
 0x1da   : > { %2465 = vst [vmem:[#allocation2 + $0xa9] sm:$0xff] %v10888_v7  ;;  %v10897_v25 = vadd.f32 %v9370_v4, %v10818_v17  ;;  %7664 = vmatprep.mubr.f32.mxu1 %v10888_v7  ;;  %v2845_v17 = vld [vmem:[#allocation4 + $0x120] sm:$0xff] }
 0x1db   : > { %v2421_v27 = vmax.f32 %v10893_v22, 0.0  ;;  %7665 = vmatmul.mubr.f32.gmra.mrb[30].mxu1 %v10884_v1  ;;  %v8835_v43 = vpack.c.bf16 %v2846_v35, %v2845_v17  ;;  %v3039_v2 = vld [vmem:[#allocation4 + $0x1a0] sm:$0xff]  ;;  %v3042_v17 = vld [vmem:[#allocation4 + $0x1b8] sm:$0xff] }
 0x1dc   : > { %v2420_v6 = vmax.f32 %v10897_v25, 0.0  ;;  %7699 = vmatprep.mubr.f32.mxu1 %v9939_v56  ;;  %v10952_v4 = vld [vmem:[#allocation2 + $0x1a] sm:$0xff]  ;;  %v8867_v5 = vpack.c.bf16 %v3040_v3, %v3039_v2  ;;  %v10958_v35 = vld [vmem:[#allocation2 + $0x32] sm:$0xff]  ;;  %v10979_v24 = vld [vmem:[#allocation2 + $0x82] sm:$0xff] }
 0x1dd   : > { %2468 = vst [vmem:[#allocation2 + $0xc9] sm:$0xff] %v2421_v27  ;;  %v10940_v18 = vld [vmem:[#allocation2 + $0x90] sm:$0xff]  ;;  %v10943_v21 = vld [vmem:[#allocation2 + $0x98] sm:$0xff]  ;;  %v3622_v25 = vld [vmem:[#allocation4 + $0x320] sm:$0xff] }
 0x1de   : > { %2467 = vst [vmem:[#allocation2 + $0xc1] sm:$0xff] %v2420_v6  ;;  %v10976_v52 = vld [vmem:[#allocation2 + $0x7a] sm:$0xff] }
 0x1df   : > { %7700 = vmatmul.mubr.f32.vlgmr.msra.gmra.mrb[16].mxu1 %v9939_v56  ;;  %v8839_v56 = vpack.c.bf16 %v2848_v55, %v2847_v50  ;;  %v10961_v50 = vld [vmem:[#allocation2 + $0x3a] sm:$0xff] }
 0x1e0   : > { %7702 = vmatprep.mubr.f32.mxu1 %v10909_v37  ;;  %8830 = vmatpush3.bf16.msra.mxu1 %v10802_v29  ;;  %v10922_v29 = vld [vmem:[#allocation2 + $0x48] sm:$0xff]  ;;  %v3043_v55 = vld [vmem:[#allocation4 + $0x1c0] sm:$0xff] }
 0x1e1   : > { %8832 = vmatprep.subr.bf16.mxu1 %v8831_v32  ;;  %v10946_v30 = vld [vmem:[#allocation2 + $0xa8] sm:$0xff]  ;;  %v10949_v45 = vld [vmem:[#allocation2 + $0xb0] sm:$0xff]  ;;  %v10985_v54 = vld [vmem:[#allocation2 + $0x9a] sm:$0xff] }
 0x1e2   : > { %v10988_v2 = vld [vmem:[#allocation2 + $0xaa] sm:$0xff] }
 0x1e3   : > { %7703 = vmatmul.mubr.f32.gmra.mrb[18].mxu1 %v10913_v49 }
 0x1e4   : > { %7705 = vmatprep.mubr.f32.mxu1 %v10916_v57  ;;  %8834 = vmatpush3.bf16.msra.mxu1 %v8831_v32  ;;  %v3041_v32 = vld [vmem:[#allocation4 + $0x1b0] sm:$0xff] }
 0x1e5   : > { %8836 = vmatprep.subr.bf16.mxu1 %v8835_v43 }
 0x1e7   : > { %7706 = vmatmul.mubr.f32.gmra.mrb[20].mxu1 %v10919_v59 }
 0x1e8   : > { %7708 = vmatprep.mubr.f32.mxu1 %v10922_v29  ;;  %8838 = vmatpush3.bf16.msra.mxu1 %v8835_v43  ;;  %v8871_v43 = vpack.c.bf16 %v3042_v17, %v3041_v32  ;;  %v3231_v32 = vld [vmem:[#allocation4 + $0x210] sm:$0xff]  ;;  %v3232_v17 = vld [vmem:[#allocation4 + $0x218] sm:$0xff] }
 0x1e9   : > { %8840 = vmatprep.subr.bf16.mxu1 %v8839_v56 }
 0x1eb   : > { %7709 = vmatmul.mubr.f32.gmra.mrb[22].mxu1 %v10925_v10 }
 0x1ec   : > { %7711 = vmatprep.mubr.f32.mxu1 %v10928_v14  ;;  %8842 = vmatpush3.bf16.msra.mxu1 %v8839_v56  ;;  %v3044_v56 = vld [vmem:[#allocation4 + $0x1c8] sm:$0xff] }
 0x1ed   : > { %8844 = vmatprep.subr.bf16.mxu1 %v8843_v8  ;;  %v8875_v0 = vpack.c.bf16 %v3044_v56, %v3043_v55  ;;  %v3233_v55 = vld [vmem:[#allocation4 + $0x220] sm:$0xff]  ;;  %v3234_v56 = vld [vmem:[#allocation4 + $0x228] sm:$0xff] }
 0x1ef   : > { %7712 = vmatmul.mubr.f32.gmra.mrb[24].mxu1 %v10931_v39 }
 0x1f0   : > { %7714 = vmatprep.mubr.f32.mxu1 %v10934_v15  ;;  %8846 = vmatpush3.bf16.msra.mxu1 %v8843_v8  ;;  %v10967_v8 = vld [vmem:[#allocation2 + $0x52] sm:$0xff] }
 0x1f1   : > { %8848 = vmatprep.subr.bf16.mxu1 %v8847_v34 }
 0x1f3   : > { %7715 = vmatmul.mubr.f32.gmra.mrb[26].mxu1 %v10937_v47 }
 0x1f4   : > { %7717 = vmatprep.mubr.f32.mxu1 %v10940_v18  ;;  %8850 = vmatpush3.bf16.msra.mxu1 %v8847_v34  ;;  %v10970_v34 = vld [vmem:[#allocation2 + $0x62] sm:$0xff] }
 0x1f5   : > { %8852 = vmatprep.subr.bf16.mxu1 %v8851_v42 }
 0x1f7   : > { %7718 = vmatmul.mubr.f32.gmra.mrb[28].mxu1 %v10943_v21 }
 0x1f8   : > { %7720 = vmatprep.mubr.f32.mxu1 %v10946_v30  ;;  %8854 = vmatpush3.bf16.msra.mxu1 %v8851_v42  ;;  %v3047_v42 = vld [vmem:[#allocation4 + $0x1e0] sm:$0xff] }
 0x1f9   : > { %8856 = vmatprep.subr.bf16.mxu1 %v8855_v20 }
 0x1fb   : > { %7721 = vmatmul.mubr.f32.gmra.mrb[30].mxu1 %v10949_v45 }
 0x1fc   : > { %8858 = vmatpush3.bf16.msra.mxu1 %v8855_v20  ;;  %7755 = vmatprep.mubr.f32.mxu1 %v2824_v31  ;;  %v8883_v20 = vpack.c.bf16 %v3048_v51, %v3047_v42  ;;  %v3050_v31 = vld [vmem:[#allocation4 + $0x1f8] sm:$0xff]  ;;  %v3238_v42 = vld [vmem:[#allocation4 + $0x248] sm:$0xff]  ;;  %v3239_v51 = vld [vmem:[#allocation4 + $0x250] sm:$0xff] }
 0x1fd   : > { %8860 = vmatprep.subr.bf16.mxu1 %v8859_v16  ;;  %v8887_v53 = vpack.c.bf16 %v3050_v31, %v3049_v28  ;;  %v3241_v31 = vld [vmem:[#allocation4 + $0x260] sm:$0xff] }
 0x1ff   : > { %7756 = vmatmul.mubr.f32.vlgmr.msra.gmra.mrb[16].mxu1 %v2825_v61  ;;  %v3229_v61 = vld [vmem:[#allocation4 + $0x200] sm:$0xff] }
 0x200   : > { %7758 = vmatprep.mubr.f32.mxu1 %v10952_v4  ;;  %8862 = vmatpush3.bf16.msra.mxu1 %v8859_v16  ;;  %v10982_v16 = vld [vmem:[#allocation2 + $0x92] sm:$0xff] }
 0x201   : > { %8864 = vmatprep.subr.bf16.mxu1 %v8863_v62 }
 0x203   : > { %7759 = vmatmul.mubr.f32.gmra.mrb[18].mxu1 %v10955_v26 }
 0x204   : > { %7761 = vmatprep.mubr.f32.mxu1 %v10958_v35  ;;  %8866 = vmatpush3.bf16.msra.mxu1 %v8863_v62  ;;  %v3230_v62 = vld [vmem:[#allocation4 + $0x208] sm:$0xff] }
 0x205   : > { %8868 = vmatprep.subr.bf16.mxu1 %v8867_v5  ;;  %v8891_v3 = vpack.c.bf16 %v3230_v62, %v3229_v61  ;;  %v3243_v62 = vld [vmem:[#allocation4 + $0x270] sm:$0xff] }
 0x207   : > { %7762 = vmatmul.mubr.f32.gmra.mrb[20].mxu1 %v10961_v50 }
 0x208   : > { %7764 = vmatprep.mubr.f32.mxu1 %v10964_v60  ;;  %8870 = vmatpush3.bf16.msra.mxu1 %v8867_v5  ;;  %v10991_v5 = vld [vmem:[#allocation2 + $0xb2] sm:$0xff] }
 0x209   : > { %8872 = vmatprep.subr.bf16.mxu1 %v8871_v43 }
 0x20b   : > { %7765 = vmatmul.mubr.f32.gmra.mrb[22].mxu1 %v10967_v8 }
 0x20c   : > { %7767 = vmatprep.mubr.f32.mxu1 %v10970_v34  ;;  %8874 = vmatpush3.bf16.msra.mxu1 %v8871_v43  ;;  %v8895_v43 = vpack.c.bf16 %v3232_v17, %v3231_v32  ;;  %v3423_v17 = vld [vmem:[#allocation4 + $0x280] sm:$0xff] }
 0x20d   : > { %8876 = vmatprep.subr.bf16.mxu1 %v8875_v0 }
 0x20f   : > { %7768 = vmatmul.mubr.f32.gmra.mrb[24].mxu1 %v10973_v40 }
 0x210   : > { %7770 = vmatprep.mubr.f32.mxu1 %v10976_v52  ;;  %8878 = vmatpush3.bf16.msra.mxu1 %v8875_v0  ;;  %v8899_v0 = vpack.c.bf16 %v3234_v56, %v3233_v55  ;;  %v11008_v55 = vld [vmem:[#allocation2 + $0xc0] sm:$0xff] }
 0x211   : > { %8880 = vmatprep.subr.bf16.mxu1 %v8879_v9 }
 0x213   : > { %7771 = vmatmul.mubr.f32.gmra.mrb[26].mxu1 %v10979_v24 }
 0x214   : > { %7773 = vmatprep.mubr.f32.mxu1 %v10982_v16  ;;  %8882 = vmatpush3.bf16.msra.mxu1 %v8879_v9  ;;  %v3237_v9 = vld [vmem:[#allocation4 + $0x240] sm:$0xff] }
 0x215   : > { %8884 = vmatprep.subr.bf16.mxu1 %v8883_v20 }
 0x217   : > { %7774 = vmatmul.mubr.f32.gmra.mrb[28].mxu1 %v10985_v54 }
 0x218   : > { %7776 = vmatprep.mubr.f32.mxu1 %v10988_v2  ;;  %8886 = vmatpush3.bf16.msra.mxu1 %v8883_v20  ;;  %v3240_v20 = vld [vmem:[#allocation4 + $0x258] sm:$0xff] }
 0x219   : > { %8888 = vmatprep.subr.bf16.mxu1 %v8887_v53  ;;  %v8911_v28 = vpack.c.bf16 %v3240_v20, %v3239_v51  ;;  %v3429_v51 = vld [vmem:[#allocation4 + $0x2b0] sm:$0xff]  ;;  %v3430_v20 = vld [vmem:[#allocation4 + $0x2b8] sm:$0xff] }
 0x21b   : > { %7777 = vmatmul.mubr.f32.gmra.mrb[30].mxu1 %v10991_v5 }
 0x21c   : > { %8890 = vmatpush3.bf16.msra.mxu1 %v8887_v53  ;;  %7811 = vmatprep.mubr.f32.mxu1 %v10909_v37  ;;  %v8903_v37 = vpack.c.bf16 %v3236_v13, %v3235_v11  ;;  %v3242_v53 = vld [vmem:[#allocation4 + $0x268] sm:$0xff]  ;;  %v3425_v11 = vld [vmem:[#allocation4 + $0x290] sm:$0xff]  ;;  %v3426_v13 = vld [vmem:[#allocation4 + $0x298] sm:$0xff] }
 0x21d   : > { %8892 = vmatprep.subr.bf16.mxu1 %v8891_v3  ;;  %v8915_v61 = vpack.c.bf16 %v3242_v53, %v3241_v31  ;;  %v3432_v31 = vld [vmem:[#allocation4 + $0x2c8] sm:$0xff]  ;;  %v3434_v53 = vld [vmem:[#allocation4 + $0x2d8] sm:$0xff] }
 0x21f   : > { %7812 = vmatmul.mubr.f32.vlgmr.msra.gmra.mrb[16].mxu1 %v10913_v49  ;;  %v8907_v49 = vpack.c.bf16 %v3238_v42, %v3237_v9  ;;  %v3427_v9 = vld [vmem:[#allocation4 + $0x2a0] sm:$0xff]  ;;  %v3428_v42 = vld [vmem:[#allocation4 + $0x2a8] sm:$0xff] }
 0x220   : > { %7814 = vmatprep.mubr.f32.mxu1 %v10916_v57  ;;  %8894 = vmatpush3.bf16.msra.mxu1 %v8891_v3  ;;  %v3244_v3 = vld [vmem:[#allocation4 + $0x278] sm:$0xff] }
 0x221   : > { %8896 = vmatprep.subr.bf16.mxu1 %v8895_v43  ;;  %v8919_v32 = vpack.c.bf16 %v3244_v3, %v3243_v62  ;;  %v3438_v62 = vld [vmem:[#allocation4 + $0x2f8] sm:$0xff]  ;;  %v3619_v3 = vld [vmem:[#allocation4 + $0x308] sm:$0xff] }
 0x223   : > { %7815 = vmatmul.mubr.f32.gmra.mrb[18].mxu1 %v10919_v59 }
 0x224   : > { %7817 = vmatprep.mubr.f32.mxu1 %v10922_v29  ;;  %8898 = vmatpush3.bf16.msra.mxu1 %v8895_v43  ;;  %v3424_v43 = vld [vmem:[#allocation4 + $0x288] sm:$0xff] }
 0x225   : > { %8900 = vmatprep.subr.bf16.mxu1 %v8899_v0  ;;  %v8923_v56 = vpack.c.bf16 %v3424_v43, %v3423_v17  ;;  %v4320_v17 = vld [vmem:[#allocation7 + $0x90] sm:$0xff] }
 0x227   : > { %7818 = vmatmul.mubr.f32.gmra.mrb[20].mxu1 %v10925_v10 }
 0x228   : > { %7820 = vmatprep.mubr.f32.mxu1 %v10928_v14  ;;  %8902 = vmatpush3.bf16.msra.mxu1 %v8899_v0  ;;  %v11011_v0 = vld [vmem:[#allocation2 + $0xc8] sm:$0xff] }
 0x229   : > { %8904 = vmatprep.subr.bf16.mxu1 %v8903_v37 }
 0x22b   : > { %7821 = vmatmul.mubr.f32.gmra.mrb[22].mxu1 %v10931_v39 }
 0x22c   : > { %7823 = vmatprep.mubr.f32.mxu1 %v10934_v15  ;;  %8906 = vmatpush3.bf16.msra.mxu1 %v8903_v37  ;;  %v8927_v37 = vpack.c.bf16 %v3426_v13, %v3425_v11  ;;  %v3623_v11 = vld [vmem:[#allocation4 + $0x328] sm:$0xff]  ;;  %v4322_v13 = vld [vmem:[#allocation7 + $0xa0] sm:$0xff] }
 0x22d   : > { %8908 = vmatprep.subr.bf16.mxu1 %v8907_v49  ;;  %v8963_v22 = vpack.c.bf16 %v3623_v11, %v3622_v25  ;;  %v3817_v11 = vld [vmem:[#allocation4 + $0x3a8] sm:$0xff] }
 0x22f   : > { %7824 = vmatmul.mubr.f32.gmra.mrb[24].mxu1 %v10937_v47 }
 0x230   : > { %7826 = vmatprep.mubr.f32.mxu1 %v10940_v18  ;;  %8910 = vmatpush3.bf16.msra.mxu1 %v8907_v49  ;;  %v8931_v49 = vpack.c.bf16 %v3428_v42, %v3427_v9  ;;  %v3625_v9 = vld [vmem:[#allocation4 + $0x338] sm:$0xff]  ;;  %v4324_v42 = vld [vmem:[#allocation7 + $0xb0] sm:$0xff] }
 0x231   : > { %8912 = vmatprep.subr.bf16.mxu1 %v8911_v28 }
 0x233   : > { %7827 = vmatmul.mubr.f32.gmra.mrb[26].mxu1 %v10943_v21 }
 0x234   : > { %7829 = vmatprep.mubr.f32.mxu1 %v10946_v30  ;;  %8914 = vmatpush3.bf16.msra.mxu1 %v8911_v28  ;;  %v3431_v28 = vld [vmem:[#allocation4 + $0x2c0] sm:$0xff] }
 0x235   : > { %8916 = vmatprep.subr.bf16.mxu1 %v8915_v61 }
 0x237   : > { %7830 = vmatmul.mubr.f32.gmra.mrb[28].mxu1 %v10949_v45 }
 0x238   : > { %7832 = vmatprep.mubr.f32.mxu1 %v11008_v55  ;;  %8918 = vmatpush3.bf16.msra.mxu1 %v8915_v61  ;;  %v3436_v61 = vld [vmem:[#allocation4 + $0x2e8] sm:$0xff] }
 0x239   : > { %8920 = vmatprep.subr.bf16.mxu1 %v8919_v32 }
 0x23b   : > { %7833 = vmatmul.mubr.f32.gmra.mrb[30].mxu1 %v11011_v0 }
 0x23c   : > { %8922 = vmatpush3.bf16.msra.mxu1 %v8919_v32  ;;  %7867 = vmatprep.mubr.f32.mxu1 %v10824_v48  ;;  %v8935_v48 = vpack.c.bf16 %v3430_v20, %v3429_v51  ;;  %v3621_v32 = vld [vmem:[#allocation4 + $0x318] sm:$0xff]  ;;  %v3626_v51 = vld [vmem:[#allocation4 + $0x340] sm:$0xff] }
 0x23d   : > { %8924 = vmatprep.subr.bf16.mxu1 %v8923_v56 }
 0x23f   : > { %7868 = vmatmul.mubr.f32.vlgmr.msra.gmra.mrb[16].mxu1 %v10822_v36  ;;  %v8939_v36 = vpack.c.bf16 %v3432_v31, %v3431_v28  ;;  %v4326_v28 = vld [vmem:[#allocation7 + $0xc0] sm:$0xff]  ;;  %v4327_v31 = vld [vmem:[#allocation7 + $0xc8] sm:$0xff] }
 0x240   : > { %7870 = vmatprep.mubr.f32.mxu1 %v10834_v63  ;;  %8926 = vmatpush3.bf16.msra.mxu1 %v8923_v56  ;;  %v3433_v63 = vld [vmem:[#allocation4 + $0x2d0] sm:$0xff]  ;;  %v4321_v56 = vld [vmem:[#allocation7 + $0x98] sm:$0xff] }
 0x241   : > { %8928 = vmatprep.subr.bf16.mxu1 %v8927_v37 }
 0x243   : > { %7871 = vmatmul.mubr.f32.gmra.mrb[18].mxu1 %v10831_v58  ;;  %v8943_v58 = vpack.c.bf16 %v3434_v53, %v3433_v63  ;;  %v3628_v63 = vld [vmem:[#allocation4 + $0x350] sm:$0xff]  ;;  %v9067_v53 = vpack.c.bf16 %v4327_v31, %v4326_v28  ;;  %v4010_v28 = vld [vmem:[#allocation4 + $0x420] sm:$0xff]  ;;  %v4011_v31 = vld [vmem:[#allocation4 + $0x428] sm:$0xff] }
 0x244   : > { %7873 = vmatprep.mubr.f32.mxu1 %v10844_v33  ;;  %8930 = vmatpush3.bf16.msra.mxu1 %v8927_v37  ;;  %v3435_v33 = vld [vmem:[#allocation4 + $0x2e0] sm:$0xff]  ;;  %v4323_v37 = vld [vmem:[#allocation7 + $0xa8] sm:$0xff] }
 0x245   : > { %8932 = vmatprep.subr.bf16.mxu1 %v8931_v49 }
 0x247   : > { %7874 = vmatmul.mubr.f32.gmra.mrb[20].mxu1 %v10841_v12  ;;  %v8947_v12 = vpack.c.bf16 %v3436_v61, %v3435_v33  ;;  %v4328_v33 = vld [vmem:[#allocation7 + $0xd0] sm:$0xff]  ;;  %v4329_v61 = vld [vmem:[#allocation7 + $0xd8] sm:$0xff] }
 0x248   : > { %7876 = vmatprep.mubr.f32.mxu1 %v10854_v44  ;;  %8934 = vmatpush3.bf16.msra.mxu1 %v8931_v49  ;;  %v3437_v44 = vld [vmem:[#allocation4 + $0x2f0] sm:$0xff]  ;;  %v4325_v49 = vld [vmem:[#allocation7 + $0xb8] sm:$0xff] }
 0x249   : > { %8936 = vmatprep.subr.bf16.mxu1 %v8935_v48  ;;  %v9063_v20 = vpack.c.bf16 %v4325_v49, %v4324_v42  ;;  %v3825_v42 = vld [vmem:[#allocation4 + $0x3e8] sm:$0xff]  ;;  %v3827_v49 = vld [vmem:[#allocation4 + $0x3f8] sm:$0xff] }
 0x24b   : > { %7877 = vmatmul.mubr.f32.gmra.mrb[22].mxu1 %v10851_v41  ;;  %v8951_v41 = vpack.c.bf16 %v3438_v62, %v3437_v44  ;;  %v9071_v44 = vpack.c.bf16 %v4329_v61, %v4328_v33  ;;  %v3630_v62 = vld [vmem:[#allocation4 + $0x360] sm:$0xff] }
 0x24c   : > { %7879 = vmatprep.mubr.f32.mxu1 %v10864_v23  ;;  %8938 = vmatpush3.bf16.msra.mxu1 %v8935_v48  ;;  %v3618_v23 = vld [vmem:[#allocation4 + $0x300] sm:$0xff]  ;;  %v3627_v48 = vld [vmem:[#allocation4 + $0x348] sm:$0xff] }
 0x24d   : > { %8940 = vmatprep.subr.bf16.mxu1 %v8939_v36  ;;  %v3799_v33 = vld [vmem:[#allocation2 + $0x61] sm:$0xff] }
 0x24f   : > { %7880 = vmatmul.mubr.f32.gmra.mrb[24].mxu1 %v10861_v19  ;;  %v8955_v19 = vpack.c.bf16 %v3619_v3, %v3618_v23  ;;  %v3632_v3 = vld [vmem:[#allocation4 + $0x370] sm:$0xff] }
 0x250   : > { %7882 = vmatprep.mubr.f32.mxu1 %v10876_v46  ;;  %8942 = vmatpush3.bf16.msra.mxu1 %v8939_v36  ;;  %v3620_v46 = vld [vmem:[#allocation4 + $0x310] sm:$0xff]  ;;  %v8971_v36 = vpack.c.bf16 %v3627_v48, %v3626_v51  ;;  %v3796_v48 = vld [vmem:[#allocation2 + $0x39] sm:$0xff] }
 0x251   : > { %8944 = vmatprep.subr.bf16.mxu1 %v8943_v58  ;;  %v4008_v51 = vld [vmem:[#allocation4 + $0x410] sm:$0xff] }
 0x253   : > { %7883 = vmatmul.mubr.f32.gmra.mrb[26].mxu1 %v10872_v38  ;;  %v4318_v38 = vld [vmem:[#allocation7 + $0x80] sm:$0xff] }
 0x254   : > { %7885 = vmatprep.mubr.f32.mxu1 %v10888_v7  ;;  %8946 = vmatpush3.bf16.msra.mxu1 %v8943_v58  ;;  %v4319_v7 = vld [vmem:[#allocation7 + $0x88] sm:$0xff]  ;;  %v3629_v58 = vld [vmem:[#allocation4 + $0x358] sm:$0xff] }
 0x255   : > { %8948 = vmatprep.subr.bf16.mxu1 %v8947_v12  ;;  %v9051_v43 = vpack.c.bf16 %v4319_v7, %v4318_v38  ;;  %v3813_v38 = vld [vmem:[#allocation4 + $0x388] sm:$0xff] }
 0x256   : > { %v11046_v7 = vld [vmem:[#allocation2 + $0xc2] sm:$0xff] }
 0x257   : > { %7886 = vmatmul.mubr.f32.gmra.mrb[28].mxu1 %v10884_v1  ;;  %v8959_v1 = vpack.c.bf16 %v3621_v32, %v3620_v46  ;;  %9052 = vmatprep.subr.bf16.mxu0 %v9051_v43  ;;  %v3812_v32 = vld [vmem:[#allocation4 + $0x380] sm:$0xff] }
 0x258   : > { %7888 = vmatprep.mubr.f32.mxu1 %v2420_v6  ;;  %8950 = vmatpush3.bf16.msra.mxu1 %v8947_v12  ;;  %v9055_v6 = vpack.c.bf16 %v4321_v56, %v4320_v17  ;;  %v8975_v12 = vpack.c.bf16 %v3629_v58, %v3628_v63  ;;  %v8987_v17 = vpack.c.bf16 %v3813_v38, %v3812_v32  ;;  %v3814_v56 = vld [vmem:[#allocation4 + $0x390] sm:$0xff]  ;;  %v4013_v58 = vld [vmem:[#allocation4 + $0x438] sm:$0xff] }
 0x259   : > { %8952 = vmatprep.subr.bf16.mxu1 %v8951_v41  ;;  %9054 = vmatpush3.bf16.msra.mxu0 %v9051_v43  ;;  %v11049_v43 = vld [vmem:[#allocation2 + $0xca] sm:$0xff] }
 0x25a   : > { %9056 = vmatprep.subr.bf16.mxu0 %v9055_v6  ;;  %v3798_v63 = vld [vmem:[#allocation2 + $0x51] sm:$0xff] }
 0x25b   : > { %7889 = vmatmul.mubr.f32.gmra.mrb[30].mxu1 %v2421_v27  ;;  %v3624_v27 = vld [vmem:[#allocation4 + $0x330] sm:$0xff] }
 0x25c   : > { %8954 = vmatpush3.bf16.msra.mxu1 %v8951_v41  ;;  %7923 = vmatprep.mubr.f32.mxu1 %v10952_v4  ;;  %v9059_v4 = vpack.c.bf16 %v4323_v37, %v4322_v13  ;;  %v3631_v41 = vld [vmem:[#allocation4 + $0x368] sm:$0xff]  ;;  %v3818_v37 = vld [vmem:[#allocation4 + $0x3b0] sm:$0xff] }
 0x25d   : > { %8956 = vmatprep.subr.bf16.mxu1 %v8955_v19  ;;  %9058 = vmatpush3.bf16.msra.mxu0 %v9055_v6  ;;  %v8979_v23 = vpack.c.bf16 %v3631_v41, %v3630_v62  ;;  %v3816_v6 = vld [vmem:[#allocation4 + $0x3a0] sm:$0xff]  ;;  %v4015_v62 = vld [vmem:[#allocation4 + $0x448] sm:$0xff]  ;;  %v3803_v32 = vld [vmem:[#allocation2 + $0x91] sm:$0xff] }
 0x25e   : > { %9060 = vmatprep.subr.bf16.mxu0 %v9059_v4  ;;  %v8995_v13 = vpack.c.bf16 %v3817_v11, %v3816_v6  ;;  %v3801_v41 = vld [vmem:[#allocation2 + $0x79] sm:$0xff]  ;;  %v3806_v11 = vld [vmem:[#allocation2 + $0xb1] sm:$0xff] }
 0x25f   : > { %7924 = vmatmul.mubr.f32.vlgmr.msra.gmra.mrb[16].mxu1 %v10955_v26  ;;  %v8967_v26 = vpack.c.bf16 %v3625_v9, %v3624_v27  ;;  %v3820_v27 = vld [vmem:[#allocation4 + $0x3c0] sm:$0xff]  ;;  %v3823_v9 = vld [vmem:[#allocation4 + $0x3d8] sm:$0xff] }
 0x260   : > { %7926 = vmatprep.mubr.f32.mxu1 %v10958_v35  ;;  %8958 = vmatpush3.bf16.msra.mxu1 %v8955_v19  ;;  %v3633_v19 = vld [vmem:[#allocation4 + $0x378] sm:$0xff] }
 0x261   : > { %8960 = vmatprep.subr.bf16.mxu1 %v8959_v1  ;;  %9062 = vmatpush3.bf16.msra.mxu0 %v9059_v4  ;;  %v8983_v46 = vpack.c.bf16 %v3633_v19, %v3632_v3  ;;  %v3821_v4 = vld [vmem:[#allocation4 + $0x3c8] sm:$0xff]  ;;  %v4016_v19 = vld [vmem:[#allocation4 + $0x450] sm:$0xff] }
 0x262   : > { %9064 = vmatprep.subr.bf16.mxu0 %v9063_v20  ;;  %v3802_v3 = vld [vmem:[#allocation2 + $0x81] sm:$0xff] }
 0x263   : > { %7927 = vmatmul.mubr.f32.gmra.mrb[18].mxu1 %v10961_v50 }
 0x264   : > { %7929 = vmatprep.mubr.f32.mxu1 %v10964_v60  ;;  %8962 = vmatpush3.bf16.msra.mxu1 %v8959_v1  ;;  %v3815_v1 = vld [vmem:[#allocation4 + $0x398] sm:$0xff] }
 0x265   : > { %8964 = vmatprep.subr.bf16.mxu1 %v8963_v22  ;;  %9066 = vmatpush3.bf16.msra.mxu0 %v9063_v20  ;;  %v8991_v25 = vpack.c.bf16 %v3815_v1, %v3814_v56  ;;  %v4009_v20 = vld [vmem:[#allocation4 + $0x418] sm:$0xff]  ;;  %v4018_v56 = vld [vmem:[#allocation4 + $0x460] sm:$0xff]  ;;  %v4019_v1 = vld [vmem:[#allocation4 + $0x468] sm:$0xff] }
 0x266   : > { %9068 = vmatprep.subr.bf16.mxu0 %v9067_v53  ;;  %v9043_v6 = vpack.c.bf16 %v4019_v1, %v4018_v56  ;;  %v5820_v1 = vld [vmem:[#allocation7 + $0x470] sm:$0xff] }
 0x267   : > { %7930 = vmatmul.mubr.f32.gmra.mrb[20].mxu1 %v10967_v8 }
 0x268   : > { %7932 = vmatprep.mubr.f32.mxu1 %v10970_v34  ;;  %8966 = vmatpush3.bf16.msra.mxu1 %v8963_v22  ;;  %v3819_v22 = vld [vmem:[#allocation4 + $0x3b8] sm:$0xff] }
 0x269   : > { %8968 = vmatprep.subr.bf16.mxu1 %v8967_v26  ;;  %9070 = vmatpush3.bf16.msra.mxu0 %v9067_v53  ;;  %v4012_v53 = vld [vmem:[#allocation4 + $0x430] sm:$0xff] }
 0x26a   : > { %9072 = vmatprep.subr.bf16.mxu0 %v9071_v44  ;;  %v9031_v61 = vpack.c.bf16 %v4013_v58, %v4012_v53  ;;  %v4293_v53 = vld [vmem:[#allocation7 + $0x40] sm:$0xff] }
 0x26b   : > { %7933 = vmatmul.mubr.f32.gmra.mrb[22].mxu1 %v10973_v40 }
 0x26c   : > { %7935 = vmatprep.mubr.f32.mxu1 %v10976_v52  ;;  %8970 = vmatpush3.bf16.msra.mxu1 %v8967_v26  ;;  %v4007_v26 = vld [vmem:[#allocation4 + $0x408] sm:$0xff] }
 0x26d   : > { %8972 = vmatprep.subr.bf16.mxu1 %v8971_v36  ;;  %9074 = vmatpush3.bf16.msra.mxu0 %v9071_v44  ;;  %v4014_v44 = vld [vmem:[#allocation4 + $0x440] sm:$0xff] }
 0x26f   : > { %7936 = vmatmul.mubr.f32.gmra.mrb[24].mxu1 %v10979_v24 }
 0x270   : > { %7938 = vmatprep.mubr.f32.mxu1 %v10982_v16  ;;  %8974 = vmatpush3.bf16.msra.mxu1 %v8971_v36  ;;  %v9027_v36 = vpack.c.bf16 %v4011_v31, %v4010_v28  ;;  %v4292_v31 = vld [vmem:[#allocation7 + $0x38] sm:$0xff] }
 0x271   : > { %8976 = vmatprep.subr.bf16.mxu1 %v8975_v12 }
 0x273   : > { %7939 = vmatmul.mubr.f32.gmra.mrb[26].mxu1 %v10985_v54 }
 0x274   : > { %7941 = vmatprep.mubr.f32.mxu1 %v10988_v2  ;;  %8978 = vmatpush3.bf16.msra.mxu1 %v8975_v12  ;;  %v3800_v12 = vld [vmem:[#allocation2 + $0x69] sm:$0xff] }
 0x275   : > { %8980 = vmatprep.subr.bf16.mxu1 %v8979_v23 }
 0x277   : > { %7942 = vmatmul.mubr.f32.gmra.mrb[28].mxu1 %v10991_v5 }
 0x278   : > { %7944 = vmatprep.mubr.f32.mxu1 %v11046_v7  ;;  %8982 = vmatpush3.bf16.msra.mxu1 %v8979_v23  ;;  %v9035_v23 = vpack.c.bf16 %v4015_v62, %v4014_v44  ;;  %v5817_v44 = vld [vmem:[#allocation7 + $0x458] sm:$0xff]  ;;  %v4295_v62 = vld [vmem:[#allocation7 + $0x50] sm:$0xff] }
 0x279   : > { %8984 = vmatprep.subr.bf16.mxu1 %v8983_v46 }
 0x27b   : > { %7945 = vmatmul.mubr.f32.gmra.mrb[30].mxu1 %v11049_v43 }
 0x27c   : > { %8986 = vmatpush3.bf16.msra.mxu1 %v8983_v46  ;;  %7979 = vmatprep.mubr.f32.mxu1 %v10916_v57  ;;  %v8999_v57 = vpack.c.bf16 %v3819_v22, %v3818_v37  ;;  %v4017_v46 = vld [vmem:[#allocation4 + $0x458] sm:$0xff]  ;;  %v3807_v22 = vld [vmem:[#allocation2 + $0xc1] sm:$0xff] }
 0x27d   : > { %8988 = vmatprep.subr.bf16.mxu1 %v8987_v17  ;;  %v9039_v38 = vpack.c.bf16 %v4017_v46, %v4016_v19  ;;  %v4021_v37 = vld [vmem:[#allocation4 + $0x478] sm:$0xff]  ;;  %v5818_v19 = vld [vmem:[#allocation7 + $0x460] sm:$0xff]  ;;  %v5819_v46 = vld [vmem:[#allocation7 + $0x468] sm:$0xff] }
 0x27f   : > { %7980 = vmatmul.mubr.f32.vlgmr.msra.gmra.mrb[16].mxu1 %v10919_v59  ;;  %v9003_v59 = vpack.c.bf16 %v3821_v4, %v3820_v27  ;;  %v3808_v4 = vld [vmem:[#allocation2 + $0xc9] sm:$0xff] }
 0x280   : > { %7982 = vmatprep.mubr.f32.mxu1 %v10922_v29  ;;  %8990 = vmatpush3.bf16.msra.mxu1 %v8987_v17  ;;  %v3822_v29 = vld [vmem:[#allocation4 + $0x3d0] sm:$0xff]  ;;  %v3804_v17 = vld [vmem:[#allocation2 + $0x99] sm:$0xff] }
 0x281   : > { %8992 = vmatprep.subr.bf16.mxu1 %v8991_v25 }
 0x283   : > { %7983 = vmatmul.mubr.f32.gmra.mrb[18].mxu1 %v10925_v10  ;;  %v9007_v10 = vpack.c.bf16 %v3823_v9, %v3822_v29  ;;  %v4302_v29 = vld [vmem:[#allocation3 + $0x9] sm:$0xff] }
 0x284   : > { %7985 = vmatprep.mubr.f32.mxu1 %v10928_v14  ;;  %8994 = vmatpush3.bf16.msra.mxu1 %v8991_v25  ;;  %v3824_v14 = vld [vmem:[#allocation4 + $0x3e0] sm:$0xff]  ;;  %v3805_v25 = vld [vmem:[#allocation2 + $0xa9] sm:$0xff] }
 0x285   : > { %8996 = vmatprep.subr.bf16.mxu1 %v8995_v13 }
 0x287   : > { %7986 = vmatmul.mubr.f32.gmra.mrb[20].mxu1 %v10931_v39  ;;  %v9011_v39 = vpack.c.bf16 %v3825_v42, %v3824_v14  ;;  %v5809_v14 = vld [vmem:[#allocation7 + $0x418] sm:$0xff]  ;;  %v4287_v42 = vld [vmem:[#allocation7 + $0x10] sm:$0xff] }
 0x288   : > { %7988 = vmatprep.mubr.f32.mxu1 %v10934_v15  ;;  %8998 = vmatpush3.bf16.msra.mxu1 %v8995_v13  ;;  %v3826_v15 = vld [vmem:[#allocation4 + $0x3f0] sm:$0xff] }
 0x289   : > { %9000 = vmatprep.subr.bf16.mxu1 %v8999_v57  ;;  %v4020_v13 = vld [vmem:[#allocation4 + $0x470] sm:$0xff] }
 0x28a   : > { %v9047_v27 = vpack.c.bf16 %v4021_v37, %v4020_v13  ;;  %v4300_v13 = vld [vmem:[#allocation7 + $0x78] sm:$0xff] }
 0x28b   : > { %7989 = vmatmul.mubr.f32.gmra.mrb[22].mxu1 %v10937_v47  ;;  %v9015_v47 = vpack.c.bf16 %v3827_v49, %v3826_v15  ;;  %v4288_v15 = vld [vmem:[#allocation7 + $0x18] sm:$0xff] }
 0x28c   : > { %7991 = vmatprep.mubr.f32.mxu1 %v10940_v18  ;;  %9002 = vmatpush3.bf16.msra.mxu1 %v8999_v57  ;;  %v4006_v18 = vld [vmem:[#allocation4 + $0x400] sm:$0xff]  ;;  %v9087_v49 = vpack.c.bf16 %v4288_v15, %v4287_v42 }
 0x28d   : > { %9004 = vmatprep.subr.bf16.mxu1 %v9003_v59  ;;  %v3809_v57 = vld [vmem:[#allocation2 + $0xd9] sm:$0xff] }
 0x28f   : > { %7992 = vmatmul.mubr.f32.gmra.mrb[24].mxu1 %v10943_v21  ;;  %v11066_v21 = vld [vmem:[#allocation2] sm:$0xff] }
 0x290   : > { %7994 = vmatprep.mubr.f32.mxu1 %v10946_v30  ;;  %9006 = vmatpush3.bf16.msra.mxu1 %v9003_v59  ;;  %v9019_v30 = vpack.c.bf16 %v4007_v26, %v4006_v18  ;;  %v3810_v59 = vld [vmem:[#allocation2 + $0xe1] sm:$0xff] }
 0x291   : > { %9008 = vmatprep.subr.bf16.mxu1 %v9007_v10  ;;  %v5811_v18 = vld [vmem:[#allocation7 + $0x428] sm:$0xff]  ;;  %v4289_v26 = vld [vmem:[#allocation7 + $0x20] sm:$0xff] }
 0x293   : > { %7995 = vmatmul.mubr.f32.gmra.mrb[26].mxu1 %v10949_v45  ;;  %v3795_v45 = vld [vmem:[#allocation2 + $0x31] sm:$0xff] }
 0x294   : > { %7997 = vmatprep.mubr.f32.mxu1 %v11008_v55  ;;  %9010 = vmatpush3.bf16.msra.mxu1 %v9007_v10  ;;  %v9023_v55 = vpack.c.bf16 %v4009_v20, %v4008_v51  ;;  %v5808_v10 = vld [vmem:[#allocation7 + $0x410] sm:$0xff]  ;;  %v4290_v51 = vld [vmem:[#allocation7 + $0x28] sm:$0xff] }
 0x295   : > { %9012 = vmatprep.subr.bf16.mxu1 %v9011_v39  ;;  %v9091_v20 = vpack.c.bf16 %v4290_v51, %v4289_v26 }
 0x297   : > { %7998 = vmatmul.mubr.f32.gmra.mrb[28].mxu1 %v11011_v0  ;;  %v3797_v0 = vld [vmem:[#allocation2 + $0x49] sm:$0xff] }
 0x298   : > { %9014 = vmatpush3.bf16.msra.mxu1 %v9011_v39  ;;  %8000 = vmatprep.mubr.f32.mxu1 %v11066_v21  ;;  %v11088_v39 = vpack.c.bf16 %v5809_v14, %v5808_v10 }
 0x299   : > { %9016 = vmatprep.subr.bf16.mxu1 %v9015_v47 }
 0x29b   : > { %8001 = vmatmul.mubr.f32.gmra.mrb[30].mxu1 %v11066_v21 }
 0x29c   : > { %9018 = vmatpush3.bf16.msra.mxu1 %v9015_v47  ;;  %8035 = vmatprep.mubr.f32.mxu1 %v3795_v45  ;;  %v5810_v47 = vld [vmem:[#allocation7 + $0x420] sm:$0xff]  ;;  %v5812_v45 = vld [vmem:[#allocation7 + $0x430] sm:$0xff] }
 0x29d   : > { %9020 = vmatprep.subr.bf16.mxu1 %v9019_v30 }
 0x29f   : > { %8036 = vmatmul.mubr.f32.vlgmr.msra.gmra.mrb[16].mxu1 %v3796_v48  ;;  %v4291_v48 = vld [vmem:[#allocation7 + $0x30] sm:$0xff] }
 0x2a0   : > { %8038 = vmatprep.mubr.f32.mxu1 %v3797_v0  ;;  %9022 = vmatpush3.bf16.msra.mxu1 %v9019_v30  ;;  %v11092_v30 = vpack.c.bf16 %v5811_v18, %v5810_v47  ;;  %v9095_v0 = vpack.c.bf16 %v4292_v31, %v4291_v48 }
 0x2a1   : > { %9024 = vmatprep.subr.bf16.mxu1 %v9023_v55 }
 0x2a3   : > { %8039 = vmatmul.mubr.f32.gmra.mrb[18].mxu1 %v3798_v63  ;;  %v5815_v63 = vld [vmem:[#allocation7 + $0x448] sm:$0xff] }
 0x2a4   : > { %8041 = vmatprep.mubr.f32.mxu1 %v3799_v33  ;;  %9026 = vmatpush3.bf16.msra.mxu1 %v9023_v55  ;;  %v5813_v55 = vld [vmem:[#allocation7 + $0x438] sm:$0xff]  ;;  %v4294_v33 = vld [vmem:[#allocation7 + $0x48] sm:$0xff] }
 0x2a5   : > { %9028 = vmatprep.subr.bf16.mxu1 %v9027_v36  ;;  %v11096_v28 = vpack.c.bf16 %v5813_v55, %v5812_v45 }
 0x2a7   : > { %8042 = vmatmul.mubr.f32.gmra.mrb[20].mxu1 %v3800_v12  ;;  %v5816_v12 = vld [vmem:[#allocation7 + $0x450] sm:$0xff] }
 0x2a8   : > { %8044 = vmatprep.mubr.f32.mxu1 %v3801_v41  ;;  %9030 = vmatpush3.bf16.msra.mxu1 %v9027_v36  ;;  %v5814_v36 = vld [vmem:[#allocation7 + $0x440] sm:$0xff]  ;;  %v11104_v41 = vpack.c.bf16 %v5817_v44, %v5816_v12 }
 0x2a9   : > { %9032 = vmatprep.subr.bf16.mxu1 %v9031_v61  ;;  %v11100_v58 = vpack.c.bf16 %v5815_v63, %v5814_v36 }
 0x2ab   : > { %8045 = vmatmul.mubr.f32.gmra.mrb[22].mxu1 %v3802_v3 }
 0x2ac   : > { %8047 = vmatprep.mubr.f32.mxu1 %v3803_v32  ;;  %9034 = vmatpush3.bf16.msra.mxu1 %v9031_v61  ;;  %v9099_v61 = vpack.c.bf16 %v4294_v33, %v4293_v53  ;;  %v4297_v32 = vld [vmem:[#allocation7 + $0x60] sm:$0xff] }
 0x2ad   : > { %9036 = vmatprep.subr.bf16.mxu1 %v9035_v23 }
 0x2af   : > { %8048 = vmatmul.mubr.f32.gmra.mrb[24].mxu1 %v3804_v17  ;;  %v4298_v17 = vld [vmem:[#allocation7 + $0x68] sm:$0xff] }
 0x2b0   : > { %8050 = vmatprep.mubr.f32.mxu1 %v3805_v25  ;;  %9038 = vmatpush3.bf16.msra.mxu1 %v9035_v23  ;;  %v4296_v23 = vld [vmem:[#allocation7 + $0x58] sm:$0xff]  ;;  %v9107_v56 = vpack.c.bf16 %v4298_v17, %v4297_v32 }
 0x2b1   : > { %9040 = vmatprep.subr.bf16.mxu1 %v9039_v38  ;;  %v9103_v3 = vpack.c.bf16 %v4296_v23, %v4295_v62  ;;  %v5821_v25 = vld [vmem:[#allocation7 + $0x478] sm:$0xff] }
 0x2b3   : > { %8051 = vmatmul.mubr.f32.gmra.mrb[26].mxu1 %v3806_v11  ;;  %v11112_v11 = vpack.c.bf16 %v5821_v25, %v5820_v1  ;;  %v4643_v1 = vld [vmem:[#allocation7 + $0x110] sm:$0xff]  ;;  %v4644_v25 = vld [vmem:[#allocation7 + $0x118] sm:$0xff] }
 0x2b4   : > { %8053 = vmatprep.mubr.f32.mxu1 %v3807_v22  ;;  %9042 = vmatpush3.bf16.msra.mxu1 %v9039_v38  ;;  %v11108_v38 = vpack.c.bf16 %v5819_v46, %v5818_v19  ;;  %v4641_v22 = vld [vmem:[#allocation7 + $0x100] sm:$0xff] }
 0x2b5   : > { %9044 = vmatprep.subr.bf16.mxu1 %v9043_v6  ;;  %11517 = vst [vmem:[#allocation15_spill] sm:$0xff] %v11112_v11 }
 0x2b6   : > { %11516 = vst [vmem:[#allocation14_spill] sm:$0xff] %v11108_v38 }
 0x2b7   : > { %8054 = vmatmul.mubr.f32.gmra.mrb[28].mxu1 %v3808_v4  ;;  %v11122_v4 = vld [vmem:[%s11493_s4] ss:$0 sm:$0xff] }
 0x2b8   : > { %9046 = vmatpush3.bf16.msra.mxu1 %v9043_v6  ;;  %8056 = vmatprep.mubr.f32.mxu1 %v3809_v57  ;;  %v4299_v6 = vld [vmem:[#allocation7 + $0x70] sm:$0xff]  ;;  %v4642_v57 = vld [vmem:[#allocation7 + $0x108] sm:$0xff] }
 0x2b9   : > { %9048 = vmatprep.subr.bf16.mxu1 %v9047_v27  ;;  %v9111_v37 = vpack.c.bf16 %v4300_v13, %v4299_v6 }
 0x2bb   : > { %8057 = vmatmul.mubr.f32.gmra.mrb[30].mxu1 %v3810_v59 }
 0x2bc   : > { %9050 = vmatpush3.bf16.msra.mxu1 %v9047_v27  ;;  %8091 = vmatprep.mubr.f32.mxu1 %v10958_v35  ;;  %v4003_v35 = vld [vmem:[#allocation2 + $0xda] sm:$0xff]  ;;  %v11116_v27 = vpack.c.bf16 %v4642_v57, %v4641_v22  ;;  %v9119_v22 = vpack.c.bf16 %v4644_v25, %v4643_v1 }
 0x2bd   : > { %v4835_v25 = vld [vmem:[#allocation7 + $0x180] sm:$0xff] }
 0x2bf   : > { %8092 = vmatmul.mubr.f32.vlgmr.msra.gmra.mrb[16].mxu1 %v10961_v50  ;;  %v4004_v50 = vld [vmem:[#allocation2 + $0xe2] sm:$0xff] }
 0x2c0   : > { %8094 = vmatprep.mubr.f32.mxu1 %v10964_v60  ;;  %v4330_v60 = vld [vmem:[#allocation7 + $0xe0] sm:$0xff] }
 0x2c3   : > { %8095 = vmatmul.mubr.f32.gmra.mrb[18].mxu1 %v10967_v8  ;;  %v4331_v8 = vld [vmem:[#allocation7 + $0xe8] sm:$0xff] }
 0x2c4   : > { %8097 = vmatprep.mubr.f32.mxu1 %v10970_v34  ;;  %v9075_v34 = vpack.c.bf16 %v4331_v8, %v4330_v60 }
 0x2c6   : > { %9076 = vmatprep.subr.bf16.mxu0 %v9075_v34 }
 0x2c7   : > { %8098 = vmatmul.mubr.f32.gmra.mrb[20].mxu1 %v10973_v40  ;;  %9078 = vmatpush3.bf16.msra.mxu0 %v9075_v34  ;;  %v4332_v40 = vld [vmem:[#allocation7 + $0xf0] sm:$0xff] }
 0x2c8   : > { %8100 = vmatprep.mubr.f32.mxu1 %v10976_v52  ;;  %v4333_v52 = vld [vmem:[#allocation7 + $0xf8] sm:$0xff] }
 0x2cb   : > { %8101 = vmatmul.mubr.f32.gmra.mrb[22].mxu1 %v10979_v24  ;;  %v9079_v24 = vpack.c.bf16 %v4333_v52, %v4332_v40 }
 0x2cc   : > { %8103 = vmatprep.mubr.f32.mxu1 %v10982_v16  ;;  %v5806_v16 = vld [vmem:[#allocation7 + $0x400] sm:$0xff] }
 0x2cd   : > { %9080 = vmatprep.subr.bf16.mxu0 %v9079_v24 }
 0x2ce   : > { %9082 = vmatpush3.bf16.msra.mxu0 %v9079_v24 }
 0x2cf   : > { %8104 = vmatmul.mubr.f32.gmra.mrb[24].mxu1 %v10985_v54  ;;  %v5807_v54 = vld [vmem:[#allocation7 + $0x408] sm:$0xff] }
 0x2d0   : > { %8106 = vmatprep.mubr.f32.mxu1 %v10988_v2  ;;  %v4285_v2 = vld [vmem:[#allocation7] sm:$0xff] }
 0x2d3   : > { %8107 = vmatmul.mubr.f32.gmra.mrb[26].mxu1 %v10991_v5  ;;  %v11084_v5 = vpack.c.bf16 %v5807_v54, %v5806_v16 }
 0x2d4   : > { %8109 = vmatprep.mubr.f32.mxu1 %v11046_v7  ;;  %v4301_v7 = vld [vmem:[#allocation3 + $0x1] sm:$0xff] }
 0x2d5   : > { %8147 = vmatprep.mubr.f32.mxu0 %v4301_v7  ;;  %9339 = vmatprep.subr.bf16.mxu1 %v11084_v5 }
 0x2d6   : > { %8148 = vmatmul.mubr.f32.vlgmr.msra.gmra.mrb[16].mxu0 %v4302_v29  ;;  %9347 = vmatpush3.bf16.msra.mxu1 %v11084_v5 }
 0x2d7   : > { %8110 = vmatmul.mubr.f32.gmra.mrb[28].mxu1 %v11049_v43  ;;  %v4286_v43 = vld [vmem:[#allocation7 + $0x8] sm:$0xff]  ;;  %9340 = vmatprep.subr.bf16.mxu1 %v11088_v39 }
 0x2d8   : > { %8112 = vmatprep.mubr.f32.mxu1 %v4003_v35  ;;  %v9083_v9 = vpack.c.bf16 %v4286_v43, %v4285_v2 }
 0x2da   : > { %9084 = vmatprep.subr.bf16.mxu0 %v9083_v9  ;;  %9348 = vmatpush3.bf16.msra.mxu1 %v11088_v39 }
 0x2db   : > { %8113 = vmatmul.mubr.f32.gmra.mrb[30].mxu1 %v4004_v50  ;;  %9086 = vmatpush3.bf16.msra.mxu0 %v9083_v9 }
 0x2dc   : > { %9088 = vmatprep.subr.bf16.mxu0 %v9087_v49  ;;  %9341 = vmatprep.subr.bf16.mxu1 %v11092_v30 }
 0x2de   : > { %9349 = vmatpush3.bf16.msra.mxu1 %v11092_v30 }
 0x2df   : > { %9090 = vmatpush3.bf16.msra.mxu0 %v9087_v49  ;;  %9342 = vmatprep.subr.bf16.mxu1 %v11096_v28 }
 0x2e0   : > { %9092 = vmatprep.subr.bf16.mxu0 %v9091_v20 }
 0x2e2   : > { %9350 = vmatpush3.bf16.msra.mxu1 %v11096_v28 }
 0x2e3   : > { %9094 = vmatpush3.bf16.msra.mxu0 %v9091_v20  ;;  %9343 = vmatprep.subr.bf16.mxu1 %v11100_v58 }
 0x2e4   : > { %9096 = vmatprep.subr.bf16.mxu0 %v9095_v0 }
 0x2e6   : > { %9351 = vmatpush3.bf16.msra.mxu1 %v11100_v58 }
 0x2e7   : > { %9098 = vmatpush3.bf16.msra.mxu0 %v9095_v0  ;;  %9344 = vmatprep.subr.bf16.mxu1 %v11104_v41 }
 0x2e8   : > { %9100 = vmatprep.subr.bf16.mxu0 %v9099_v61 }
 0x2ea   : > { %9352 = vmatpush3.bf16.msra.mxu1 %v11104_v41 }
 0x2eb   : > { %9102 = vmatpush3.bf16.msra.mxu0 %v9099_v61  ;;  %9345 = vmatprep.subr.bf16.mxu1 %v11108_v38 }
 0x2ec   : > { %9104 = vmatprep.subr.bf16.mxu0 %v9103_v3 }
 0x2ee   : > { %9353 = vmatpush3.bf16.msra.mxu1 %v11108_v38  ;;  %v5228_v38 = vld [vmem:[#allocation7 + $0x2a8] sm:$0xff] }
 0x2ef   : > { %9106 = vmatpush3.bf16.msra.mxu0 %v9103_v3  ;;  %9346 = vmatprep.subr.bf16.mxu1 %v11112_v11 }
 0x2f0   : > { %9108 = vmatprep.subr.bf16.mxu0 %v9107_v56 }
 0x2f2   : > { %9354 = vmatpush3.bf16.msra.mxu1 %v11112_v11  ;;  %v5033_v11 = vld [vmem:[#allocation7 + $0x220] sm:$0xff] }
 0x2f3   : > { %9110 = vmatpush3.bf16.msra.mxu0 %v9107_v56 }
 0x2f4   : > { %9112 = vmatprep.subr.bf16.mxu0 %v9111_v37 }
 0x2f7   : > { %9114 = vmatpush3.bf16.msra.mxu0 %v9111_v37 }
 0x2f8   : > { %9116 = vmatprep.subr.bf16.mxu0 %v11116_v27 }
 0x392   : > { %v8093_v59 = vpop.f32.mrb[16].mxu1 }
 0x393   : > { %v4191_v35 = vadd.f32 %v8093_v59, %v11122_v4  ;;  %v4088_v50 = vpop.f32.mrb[17].mxu1  ;;  %v4646_v59 = vld [vmem:[#allocation7 + $0x128] sm:$0xff] }
 0x394   : > { %v4190_v60 = vadd.f32 %v11122_v4, %v4088_v50 }
 0x395   : > { %v11126_v8 = vmax.f32 %v4191_v35, 0.0 }
 0x396   : > { %v11128_v34 = vmax.f32 %v4190_v60, 0.0  ;;  %v8096_v40 = vpop.f32.mrb[18].mxu1 }
 0x397   : > { %4254 = vst [vmem:[#allocation3 + $0x21] sm:$0xff] %v11126_v8  ;;  %v4193_v52 = vadd.f32 %v8096_v40, %v11122_v4  ;;  %v4098_v24 = vpop.f32.mrb[19].mxu1  ;;  %v4647_v40 = vld [vmem:[#allocation7 + $0x130] sm:$0xff] }
 0x398   : > { %4253 = vst [vmem:[#allocation3 + $0x19] sm:$0xff] %v11128_v34  ;;  %v4192_v16 = vadd.f32 %v11122_v4, %v4098_v24  ;;  %8150 = vmatprep.mubr.f32.mxu0 %v11128_v34 }
 0x399   : > { %v11135_v54 = vmax.f32 %v4193_v52, 0.0  ;;  %8151 = vmatmul.mubr.f32.gmra.mrb[18].mxu0 %v11126_v8 }
 0x39a   : > { %v11138_v2 = vmax.f32 %v4192_v16, 0.0  ;;  %v8099_v7 = vpop.f32.mrb[20].mxu1  ;;  %v4648_v16 = vld [vmem:[#allocation7 + $0x138] sm:$0xff] }
 0x39b   : > { %4256 = vst [vmem:[#allocation3 + $0x39] sm:$0xff] %v11135_v54  ;;  %v4195_v43 = vadd.f32 %v8099_v7, %v11122_v4  ;;  %v4108_v29 = vpop.f32.mrb[21].mxu1  ;;  %v9127_v7 = vpack.c.bf16 %v4648_v16, %v4647_v40  ;;  %v4837_v16 = vld [vmem:[#allocation7 + $0x190] sm:$0xff] }
 0x39c   : > { %4255 = vst [vmem:[#allocation3 + $0x31] sm:$0xff] %v11138_v2  ;;  %v4194_v9 = vadd.f32 %v11122_v4, %v4108_v29  ;;  %8153 = vmatprep.mubr.f32.mxu0 %v11138_v2 }
 0x39d   : > { %v11145_v10 = vmax.f32 %v4195_v43, 0.0  ;;  %8154 = vmatmul.mubr.f32.gmra.mrb[20].mxu0 %v11135_v54  ;;  %v4649_v43 = vld [vmem:[#allocation7 + $0x140] sm:$0xff] }
 0x39e   : > { %v11148_v14 = vmax.f32 %v4194_v9, 0.0  ;;  %v8102_v42 = vpop.f32.mrb[22].mxu1 }
 0x39f   : > { %4258 = vst [vmem:[#allocation3 + $0x51] sm:$0xff] %v11145_v10  ;;  %v4197_v15 = vadd.f32 %v8102_v42, %v11122_v4  ;;  %v4118_v49 = vpop.f32.mrb[23].mxu1  ;;  %v11214_v35 = vld [vmem:[#allocation3 + $0x18] sm:$0xff]  ;;  %v11223_v24 = vld [vmem:[#allocation3 + $0x20] sm:$0xff] }
 0x3a0   : > { %4257 = vst [vmem:[#allocation3 + $0x49] sm:$0xff] %v11148_v14  ;;  %v4196_v47 = vadd.f32 %v11122_v4, %v4118_v49  ;;  %8156 = vmatprep.mubr.f32.mxu0 %v11148_v14  ;;  %v4650_v42 = vld [vmem:[#allocation7 + $0x148] sm:$0xff] }
 0x3a1   : > { %v11155_v18 = vmax.f32 %v4197_v15, 0.0  ;;  %8157 = vmatmul.mubr.f32.gmra.mrb[22].mxu0 %v11145_v10  ;;  %v9131_v49 = vpack.c.bf16 %v4650_v42, %v4649_v43  ;;  %v4625_v43 = vld [vmem:[#allocation3 + $0xa] sm:$0xff] }
 0x3a2   : > { %v11158_v26 = vmax.f32 %v4196_v47, 0.0  ;;  %v8105_v51 = vpop.f32.mrb[24].mxu1 }
 0x3a3   : > { %4260 = vst [vmem:[#allocation3 + $0x69] sm:$0xff] %v11155_v18  ;;  %v4199_v20 = vadd.f32 %v8105_v51, %v11122_v4  ;;  %v4128_v45 = vpop.f32.mrb[25].mxu1  ;;  %v11235_v9 = vld [vmem:[#allocation3 + $0x38] sm:$0xff]  ;;  %v4651_v51 = vld [vmem:[#allocation7 + $0x150] sm:$0xff] }
 0x3a4   : > { %4259 = vst [vmem:[#allocation3 + $0x61] sm:$0xff] %v11158_v26  ;;  %v4198_v55 = vadd.f32 %v11122_v4, %v4128_v45  ;;  %8159 = vmatprep.mubr.f32.mxu0 %v11158_v26 }
 0x3a5   : > { %v11165_v48 = vmax.f32 %v4199_v20, 0.0  ;;  %8160 = vmatmul.mubr.f32.gmra.mrb[24].mxu0 %v11155_v18  ;;  %v4652_v20 = vld [vmem:[#allocation7 + $0x158] sm:$0xff] }
 0x3a6   : > { %v11168_v31 = vmax.f32 %v4198_v55, 0.0  ;;  %v8108_v0 = vpop.f32.mrb[26].mxu1  ;;  %v9135_v55 = vpack.c.bf16 %v4652_v20, %v4651_v51  ;;  %v4840_v51 = vld [vmem:[#allocation7 + $0x1a8] sm:$0xff] }
 0x3a7   : > { %4262 = vst [vmem:[#allocation3 + $0x81] sm:$0xff] %v11165_v48  ;;  %v4201_v36 = vadd.f32 %v8108_v0, %v11122_v4  ;;  %v4138_v63 = vpop.f32.mrb[27].mxu1  ;;  %v11239_v15 = vld [vmem:[#allocation3 + $0x48] sm:$0xff]  ;;  %v11242_v47 = vld [vmem:[#allocation3 + $0x50] sm:$0xff]  ;;  %v11269_v20 = vld [vmem:[#allocation3 + $0x1a] sm:$0xff] }
 0x3a8   : > { %4261 = vst [vmem:[#allocation3 + $0x79] sm:$0xff] %v11168_v31  ;;  %v4200_v53 = vadd.f32 %v11122_v4, %v4138_v63  ;;  %8162 = vmatprep.mubr.f32.mxu0 %v11168_v31  ;;  %v4654_v63 = vld [vmem:[#allocation7 + $0x168] sm:$0xff] }
 0x3a9   : > { %v11175_v33 = vmax.f32 %v4201_v36, 0.0  ;;  %8163 = vmatmul.mubr.f32.gmra.mrb[26].mxu0 %v11165_v48  ;;  %v4653_v36 = vld [vmem:[#allocation7 + $0x160] sm:$0xff] }
 0x3aa   : > { %v11178_v61 = vmax.f32 %v4200_v53, 0.0  ;;  %v8111_v12 = vpop.f32.mrb[28].mxu1 }
 0x3ab   : > { %4264 = vst [vmem:[#allocation3 + $0x99] sm:$0xff] %v11175_v33  ;;  %v4203_v44 = vadd.f32 %v8111_v12, %v11122_v4  ;;  %v4148_v62 = vpop.f32.mrb[29].mxu1  ;;  %v11245_v45 = vld [vmem:[#allocation3 + $0x60] sm:$0xff]  ;;  %v11248_v0 = vld [vmem:[#allocation3 + $0x68] sm:$0xff]  ;;  %v9139_v12 = vpack.c.bf16 %v4654_v63, %v4653_v36 }
 0x3ac   : > { %4263 = vst [vmem:[#allocation3 + $0x91] sm:$0xff] %v11178_v61  ;;  %v4202_v23 = vadd.f32 %v11122_v4, %v4148_v62  ;;  %8165 = vmatprep.mubr.f32.mxu0 %v11178_v61  ;;  %v4655_v62 = vld [vmem:[#allocation7 + $0x170] sm:$0xff] }
 0x3ad   : > { %v11185_v3 = vmax.f32 %v4203_v44, 0.0  ;;  %8166 = vmatmul.mubr.f32.gmra.mrb[28].mxu0 %v11175_v33  ;;  %v11272_v36 = vld [vmem:[#allocation3 + $0x22] sm:$0xff] }
 0x3ae   : > { %v11188_v19 = vmax.f32 %v4202_v23, 0.0  ;;  %v8114_v46 = vpop.f32.mrb[30].mxu1  ;;  %v4656_v23 = vld [vmem:[#allocation7 + $0x178] sm:$0xff]  ;;  %v4841_v63 = vld [vmem:[#allocation7 + $0x1b0] sm:$0xff] }
 0x3af   : > { %4266 = vst [vmem:[#allocation3 + $0xb1] sm:$0xff] %v11185_v3  ;;  %v11192_v32 = vadd.f32 %v8114_v46, %v11122_v4  ;;  %v4158_v17 = vpop.f32.mrb[31].mxu1  ;;  %v11251_v53 = vld [vmem:[#allocation3 + $0x78] sm:$0xff]  ;;  %v11254_v44 = vld [vmem:[#allocation3 + $0x80] sm:$0xff] }
 0x3b0   : > { %4265 = vst [vmem:[#allocation3 + $0xa9] sm:$0xff] %v11188_v19  ;;  %v11196_v56 = vadd.f32 %v11122_v4, %v4158_v17  ;;  %8168 = vmatprep.mubr.f32.mxu0 %v11188_v19  ;;  %v4645_v4 = vld [vmem:[#allocation7 + $0x120] sm:$0xff]  ;;  %v9143_v17 = vpack.c.bf16 %v4656_v23, %v4655_v62 }
 0x3b1   : > { %v11500_v6 = vmax.f32 %v11192_v32, 0.0  ;;  %8169 = vmatmul.mubr.f32.gmra.mrb[30].mxu0 %v11185_v3  ;;  %v9123_v60 = vpack.c.bf16 %v4646_v59, %v4645_v4  ;;  %v4624_v59 = vld [vmem:[#allocation3 + $0x2] sm:$0xff]  ;;  %v11275_v62 = vld [vmem:[#allocation3 + $0x32] sm:$0xff] }
 0x3b2   : > { %v11501_v13 = vmax.f32 %v11196_v56, 0.0  ;;  %8203 = vmatprep.mubr.f32.mxu0 %v11066_v21  ;;  %v11210_v57 = vld [vmem:[#allocation3 + $0x9a] sm:$0xff] }
 0x3b3   : > { %4268 = vst [vmem:[#allocation3 + $0xc9] sm:$0xff] %v11500_v6  ;;  %v11205_v37 = vld [vmem:[#allocation3 + $0x92] sm:$0xff]  ;;  %v4849_v6 = vld [vmem:[#allocation7 + $0x1f0] sm:$0xff] }
 0x3b4   : > { %4267 = vst [vmem:[#allocation3 + $0xc1] sm:$0xff] %v11501_v13  ;;  %8607 = vmatprep.mubr.f32.mxu1 %v11205_v37  ;;  %v11257_v46 = vld [vmem:[#allocation3 + $0x90] sm:$0xff]  ;;  %v11260_v1 = vld [vmem:[#allocation3 + $0x98] sm:$0xff]  ;;  %v4850_v13 = vld [vmem:[#allocation7 + $0x1f8] sm:$0xff] }
 0x3b5   : > { %8608 = vmatmul.mubr.f32.vlgmr.msra.gmra.mrb[32].mxu1 %v11210_v57  ;;  %8204 = vmatmul.mubr.f32.vlgmr.msra.gmra.mrb[16].mxu0 %v11066_v21  ;;  %v11227_v21 = vld [vmem:[#allocation3 + $0x30] sm:$0xff] }
 0x3b6   : > { %8206 = vmatprep.mubr.f32.mxu0 %v11214_v35  ;;  %9118 = vmatpush3.bf16.msra.mxu0 %v11116_v27  ;;  %v11221_v52 = vld [vmem:[#allocation3 + $0xb2] sm:$0xff] }
 0x3b7   : > { %v11218_v50 = vld [vmem:[#allocation3 + $0xaa] sm:$0xff]  ;;  %9120 = vmatprep.subr.bf16.mxu0 %v9119_v22 }
 0x3b8   : > { %8610 = vmatprep.mubr.f32.mxu1 %v11218_v50  ;;  %v11263_v4 = vld [vmem:[#allocation3 + $0xa8] sm:$0xff]  ;;  %v11266_v40 = vld [vmem:[#allocation3 + $0xb0] sm:$0xff] }
 0x3b9   : > { %8611 = vmatmul.mubr.f32.gmra.mrb[34].mxu1 %v11221_v52  ;;  %8207 = vmatmul.mubr.f32.gmra.mrb[18].mxu0 %v11223_v24 }
 0x3ba   : > { %8209 = vmatprep.mubr.f32.mxu0 %v11227_v21  ;;  %9122 = vmatpush3.bf16.msra.mxu0 %v9119_v22  ;;  %v11233_v29 = vld [vmem:[#allocation3 + $0xca] sm:$0xff]  ;;  %v4836_v22 = vld [vmem:[#allocation7 + $0x188] sm:$0xff] }
 0x3bb   : > { %v11230_v27 = vld [vmem:[#allocation3 + $0xc2] sm:$0xff]  ;;  %9124 = vmatprep.subr.bf16.mxu0 %v9123_v60 }
 0x3bc   : > { %8613 = vmatprep.mubr.f32.mxu1 %v11230_v27 }
 0x3bd   : > { %8614 = vmatmul.mubr.f32.gmra.mrb[36].mxu1 %v11233_v29  ;;  %8210 = vmatmul.mubr.f32.gmra.mrb[20].mxu0 %v11235_v9 }
 0x3be   : > { %8212 = vmatprep.mubr.f32.mxu0 %v11239_v15  ;;  %9126 = vmatpush3.bf16.msra.mxu0 %v9123_v60  ;;  %v9147_v60 = vpack.c.bf16 %v4836_v22, %v4835_v25  ;;  %v4843_v25 = vld [vmem:[#allocation7 + $0x1c0] sm:$0xff]  ;;  %v4844_v22 = vld [vmem:[#allocation7 + $0x1c8] sm:$0xff] }
 0x3bf   : > { %9128 = vmatprep.subr.bf16.mxu0 %v9127_v7 }
 0x3c1   : > { %8213 = vmatmul.mubr.f32.gmra.mrb[22].mxu0 %v11242_v47 }
 0x3c2   : > { %8215 = vmatprep.mubr.f32.mxu0 %v11245_v45  ;;  %9130 = vmatpush3.bf16.msra.mxu0 %v9127_v7  ;;  %v4838_v7 = vld [vmem:[#allocation7 + $0x198] sm:$0xff] }
 0x3c3   : > { %9132 = vmatprep.subr.bf16.mxu0 %v9131_v49  ;;  %v9151_v42 = vpack.c.bf16 %v4838_v7, %v4837_v16  ;;  %v11284_v16 = vld [vmem:[#allocation3 + $0x52] sm:$0xff]  ;;  %v4845_v7 = vld [vmem:[#allocation7 + $0x1d0] sm:$0xff] }
 0x3c5   : > { %8216 = vmatmul.mubr.f32.gmra.mrb[24].mxu0 %v11248_v0 }
 0x3c6   : > { %8218 = vmatprep.mubr.f32.mxu0 %v11251_v53  ;;  %9134 = vmatpush3.bf16.msra.mxu0 %v9131_v49  ;;  %v4839_v49 = vld [vmem:[#allocation7 + $0x1a0] sm:$0xff] }
 0x3c7   : > { %9136 = vmatprep.subr.bf16.mxu0 %v9135_v55 }
 0x3c9   : > { %8219 = vmatmul.mubr.f32.gmra.mrb[26].mxu0 %v11254_v44 }
 0x3ca   : > { %8221 = vmatprep.mubr.f32.mxu0 %v11257_v46  ;;  %9138 = vmatpush3.bf16.msra.mxu0 %v9135_v55  ;;  %v9155_v55 = vpack.c.bf16 %v4840_v51, %v4839_v49  ;;  %v11290_v51 = vld [vmem:[#allocation3 + $0x6a] sm:$0xff] }
 0x3cb   : > { %9140 = vmatprep.subr.bf16.mxu0 %v9139_v12 }
 0x3cd   : > { %8222 = vmatmul.mubr.f32.gmra.mrb[28].mxu0 %v11260_v1 }
 0x3ce   : > { %8224 = vmatprep.mubr.f32.mxu0 %v11263_v4  ;;  %9142 = vmatpush3.bf16.msra.mxu0 %v9139_v12  ;;  %v4842_v12 = vld [vmem:[#allocation7 + $0x1b8] sm:$0xff] }
 0x3cf   : > { %9144 = vmatprep.subr.bf16.mxu0 %v9143_v17  ;;  %v9159_v23 = vpack.c.bf16 %v4842_v12, %v4841_v63  ;;  %v4847_v63 = vld [vmem:[#allocation7 + $0x1e0] sm:$0xff]  ;;  %v4848_v12 = vld [vmem:[#allocation7 + $0x1e8] sm:$0xff] }
 0x3d1   : > { %8225 = vmatmul.mubr.f32.gmra.mrb[30].mxu0 %v11266_v40 }
 0x3d2   : > { %9146 = vmatpush3.bf16.msra.mxu0 %v9143_v17  ;;  %8259 = vmatprep.mubr.f32.mxu0 %v4624_v59  ;;  %v11278_v17 = vld [vmem:[#allocation3 + $0x3a] sm:$0xff]  ;;  %v11281_v59 = vld [vmem:[#allocation3 + $0x4a] sm:$0xff] }
 0x3d3   : > { %9148 = vmatprep.subr.bf16.mxu0 %v9147_v60 }
 0x3d5   : > { %8260 = vmatmul.mubr.f32.vlgmr.msra.gmra.mrb[16].mxu0 %v4625_v43  ;;  %v4846_v43 = vld [vmem:[#allocation7 + $0x1d8] sm:$0xff] }
 0x3d6   : > { %8262 = vmatprep.mubr.f32.mxu0 %v11269_v20  ;;  %9150 = vmatpush3.bf16.msra.mxu0 %v9147_v60  ;;  %v9163_v60 = vpack.c.bf16 %v4844_v22, %v4843_v25  ;;  %v9167_v49 = vpack.c.bf16 %v4846_v43, %v4845_v7  ;;  %v9171_v25 = vpack.c.bf16 %v4848_v12, %v4847_v63  ;;  %v11296_v22 = vld [vmem:[#allocation3 + $0x82] sm:$0xff]  ;;  %v5029_v7 = vld [vmem:[#allocation7 + $0x200] sm:$0xff]  ;;  %v5030_v43 = vld [vmem:[#allocation7 + $0x208] sm:$0xff] }
 0x3d7   : > { %9152 = vmatprep.subr.bf16.mxu0 %v9151_v42  ;;  %v5031_v63 = vld [vmem:[#allocation7 + $0x210] sm:$0xff]  ;;  %v5032_v12 = vld [vmem:[#allocation7 + $0x218] sm:$0xff] }
 0x3d9   : > { %8263 = vmatmul.mubr.f32.gmra.mrb[18].mxu0 %v11272_v36 }
 0x3da   : > { %8265 = vmatprep.mubr.f32.mxu0 %v11275_v62  ;;  %9154 = vmatpush3.bf16.msra.mxu0 %v9151_v42  ;;  %v11287_v42 = vld [vmem:[#allocation3 + $0x62] sm:$0xff] }
 0x3db   : > { %9156 = vmatprep.subr.bf16.mxu0 %v9155_v55 }
 0x3dd   : > { %8266 = vmatmul.mubr.f32.gmra.mrb[20].mxu0 %v11278_v17 }
 0x3de   : > { %8268 = vmatprep.mubr.f32.mxu0 %v11281_v59  ;;  %9158 = vmatpush3.bf16.msra.mxu0 %v9155_v55  ;;  %v11293_v55 = vld [vmem:[#allocation3 + $0x7a] sm:$0xff] }
 0x3df   : > { %9160 = vmatprep.subr.bf16.mxu0 %v9159_v23 }
 0x3e1   : > { %8269 = vmatmul.mubr.f32.gmra.mrb[22].mxu0 %v11284_v16 }
 0x3e2   : > { %8271 = vmatprep.mubr.f32.mxu0 %v11287_v42  ;;  %9162 = vmatpush3.bf16.msra.mxu0 %v9159_v23  ;;  %v9175_v23 = vpack.c.bf16 %v4850_v13, %v4849_v6  ;;  %v5034_v6 = vld [vmem:[#allocation7 + $0x228] sm:$0xff] }
 0x3e3   : > { %9164 = vmatprep.subr.bf16.mxu0 %v9163_v60  ;;  %v9187_v13 = vpack.c.bf16 %v5034_v6, %v5033_v11  ;;  %v5040_v11 = vld [vmem:[#allocation7 + $0x258] sm:$0xff] }
 0x3e5   : > { %8272 = vmatmul.mubr.f32.gmra.mrb[24].mxu0 %v11290_v51 }
 0x3e6   : > { %8274 = vmatprep.mubr.f32.mxu0 %v11293_v55  ;;  %9166 = vmatpush3.bf16.msra.mxu0 %v9163_v60  ;;  %v9179_v60 = vpack.c.bf16 %v5030_v43, %v5029_v7  ;;  %v5036_v7 = vld [vmem:[#allocation7 + $0x238] sm:$0xff]  ;;  %v5038_v43 = vld [vmem:[#allocation7 + $0x248] sm:$0xff] }
 0x3e7   : > { %9168 = vmatprep.subr.bf16.mxu0 %v9167_v49 }
 0x3e9   : > { %8275 = vmatmul.mubr.f32.gmra.mrb[26].mxu0 %v11296_v22 }
 0x3ea   : > { %8277 = vmatprep.mubr.f32.mxu0 %v11205_v37  ;;  %9170 = vmatpush3.bf16.msra.mxu0 %v9167_v49  ;;  %v9183_v49 = vpack.c.bf16 %v5032_v12, %v5031_v63  ;;  %v5041_v12 = vld [vmem:[#allocation7 + $0x260] sm:$0xff] }
 0x3eb   : > { %9172 = vmatprep.subr.bf16.mxu0 %v9171_v25 }
 0x3ed   : > { %8278 = vmatmul.mubr.f32.gmra.mrb[28].mxu0 %v11210_v57 }
 0x3ee   : > { %8280 = vmatprep.mubr.f32.mxu0 %v11218_v50  ;;  %9174 = vmatpush3.bf16.msra.mxu0 %v9171_v25  ;;  %v5035_v25 = vld [vmem:[#allocation7 + $0x230] sm:$0xff] }
 0x3ef   : > { %9176 = vmatprep.subr.bf16.mxu0 %v9175_v23 }
 0x3f1   : > { %8281 = vmatmul.mubr.f32.gmra.mrb[30].mxu0 %v11221_v52 }
 0x3f2   : > { %9178 = vmatpush3.bf16.msra.mxu0 %v9175_v23  ;;  %8315 = vmatprep.mubr.f32.mxu0 %v11214_v35  ;;  %v9191_v35 = vpack.c.bf16 %v5036_v7, %v5035_v25  ;;  %v5037_v23 = vld [vmem:[#allocation7 + $0x240] sm:$0xff]  ;;  %v5044_v25 = vld [vmem:[#allocation7 + $0x278] sm:$0xff] }
 0x3f3   : > { %9180 = vmatprep.subr.bf16.mxu0 %v9179_v60 }
 0x3f5   : > { %8316 = vmatmul.mubr.f32.vlgmr.msra.gmra.mrb[16].mxu0 %v11223_v24  ;;  %v9195_v24 = vpack.c.bf16 %v5038_v43, %v5037_v23  ;;  %v5224_v23 = vld [vmem:[#allocation7 + $0x288] sm:$0xff]  ;;  %v11317_v43 = vld [vmem:[#allocation3 + $0xc0] sm:$0xff] }
 0x3f6   : > { %8318 = vmatprep.mubr.f32.mxu0 %v11227_v21  ;;  %9182 = vmatpush3.bf16.msra.mxu0 %v9179_v60  ;;  %v5039_v60 = vld [vmem:[#allocation7 + $0x250] sm:$0xff] }
 0x3f7   : > { %9184 = vmatprep.subr.bf16.mxu0 %v9183_v49  ;;  %v9199_v63 = vpack.c.bf16 %v5040_v11, %v5039_v60  ;;  %v11320_v60 = vld [vmem:[#allocation3 + $0xc8] sm:$0xff]  ;;  %v5225_v11 = vld [vmem:[#allocation7 + $0x290] sm:$0xff] }
 0x3f9   : > { %8319 = vmatmul.mubr.f32.gmra.mrb[18].mxu0 %v11235_v9 }
 0x3fa   : > { %8321 = vmatprep.mubr.f32.mxu0 %v11239_v15  ;;  %9186 = vmatpush3.bf16.msra.mxu0 %v9183_v49  ;;  %v5042_v49 = vld [vmem:[#allocation7 + $0x268] sm:$0xff] }
 0x3fb   : > { %9188 = vmatprep.subr.bf16.mxu0 %v9187_v13  ;;  %v9203_v6 = vpack.c.bf16 %v5042_v49, %v5041_v12  ;;  %v5226_v12 = vld [vmem:[#allocation7 + $0x298] sm:$0xff] }
 0x3fc   : > { %v5804_v49 = vld [vmem:[#allocation3 + $0xe2] sm:$0xff] }
 0x3fd   : > { %8322 = vmatmul.mubr.f32.gmra.mrb[20].mxu0 %v11242_v47 }
 0x3fe   : > { %8324 = vmatprep.mubr.f32.mxu0 %v11245_v45  ;;  %9190 = vmatpush3.bf16.msra.mxu0 %v9187_v13  ;;  %v5043_v13 = vld [vmem:[#allocation7 + $0x270] sm:$0xff] }
 0x3ff   : > { %9192 = vmatprep.subr.bf16.mxu0 %v9191_v35  ;;  %v9207_v7 = vpack.c.bf16 %v5044_v25, %v5043_v13  ;;  %v9215_v13 = vpack.c.bf16 %v5226_v12, %v5225_v11  ;;  %v5227_v25 = vld [vmem:[#allocation7 + $0x2a0] sm:$0xff]  ;;  %v5232_v11 = vld [vmem:[#allocation7 + $0x2c8] sm:$0xff]  ;;  %v5238_v12 = vld [vmem:[#allocation7 + $0x2f8] sm:$0xff] }
 0x401   : > { %8325 = vmatmul.mubr.f32.gmra.mrb[22].mxu0 %v11248_v0 }
 0x402   : > { %8327 = vmatprep.mubr.f32.mxu0 %v11251_v53  ;;  %9194 = vmatpush3.bf16.msra.mxu0 %v9191_v35  ;;  %v5223_v35 = vld [vmem:[#allocation7 + $0x280] sm:$0xff] }
 0x403   : > { %9196 = vmatprep.subr.bf16.mxu0 %v9195_v24 }
 0x405   : > { %8328 = vmatmul.mubr.f32.gmra.mrb[24].mxu0 %v11254_v44 }
 0x406   : > { %8330 = vmatprep.mubr.f32.mxu0 %v11257_v46  ;;  %9198 = vmatpush3.bf16.msra.mxu0 %v9195_v24  ;;  %v9211_v24 = vpack.c.bf16 %v5224_v23, %v5223_v35  ;;  %v5229_v35 = vld [vmem:[#allocation7 + $0x2b0] sm:$0xff]  ;;  %v5230_v23 = vld [vmem:[#allocation7 + $0x2b8] sm:$0xff] }
 0x407   : > { %9200 = vmatprep.subr.bf16.mxu0 %v9199_v63 }
 0x409   : > { %8331 = vmatmul.mubr.f32.gmra.mrb[26].mxu0 %v11260_v1 }
 0x40a   : > { %8333 = vmatprep.mubr.f32.mxu0 %v11263_v4  ;;  %9202 = vmatpush3.bf16.msra.mxu0 %v9199_v63  ;;  %v5803_v63 = vld [vmem:[#allocation3 + $0xda] sm:$0xff] }
 0x40b   : > { %9204 = vmatprep.subr.bf16.mxu0 %v9203_v6  ;;  %8616 = vmatprep.mubr.f32.mxu1 %v5803_v63  ;;  %v5419_v63 = vld [vmem:[#allocation7 + $0x308] sm:$0xff] }
 0x40c   : > { %8617 = vmatmul.mubr.f32.gmra.mrb[38].mxu1 %v5804_v49  ;;  %v5420_v49 = vld [vmem:[#allocation7 + $0x310] sm:$0xff] }
 0x40d   : > { %8334 = vmatmul.mubr.f32.gmra.mrb[28].mxu0 %v11266_v40 }
 0x40e   : > { %8336 = vmatprep.mubr.f32.mxu0 %v11317_v43  ;;  %9206 = vmatpush3.bf16.msra.mxu0 %v9203_v6  ;;  %v9219_v6 = vpack.c.bf16 %v5228_v38, %v5227_v25  ;;  %v5234_v38 = vld [vmem:[#allocation7 + $0x2d8] sm:$0xff]  ;;  %v11519_v25 = vmax.f32 %v11192_v32, 0.0 }
 0x40f   : > { %9208 = vmatprep.subr.bf16.mxu0 %v9207_v7 }
 0x411   : > { %8337 = vmatmul.mubr.f32.gmra.mrb[30].mxu0 %v11320_v60 }
 0x412   : > { %9210 = vmatpush3.bf16.msra.mxu0 %v9207_v7  ;;  %8371 = vmatprep.mubr.f32.mxu0 %v11128_v34  ;;  %v9223_v34 = vpack.c.bf16 %v5230_v23, %v5229_v35  ;;  %v5231_v7 = vld [vmem:[#allocation7 + $0x2c0] sm:$0xff]  ;;  %v5425_v35 = vld [vmem:[#allocation7 + $0x338] sm:$0xff]  ;;  %v5427_v23 = vld [vmem:[#allocation7 + $0x348] sm:$0xff] }
 0x413   : > { %9212 = vmatprep.subr.bf16.mxu0 %v9211_v24 }
 0x415   : > { %8372 = vmatmul.mubr.f32.vlgmr.msra.gmra.mrb[16].mxu0 %v11126_v8  ;;  %v9227_v8 = vpack.c.bf16 %v5232_v11, %v5231_v7  ;;  %v5429_v7 = vld [vmem:[#allocation7 + $0x358] sm:$0xff] }
 0x416   : > { %8374 = vmatprep.mubr.f32.mxu0 %v11138_v2  ;;  %9214 = vmatpush3.bf16.msra.mxu0 %v9211_v24  ;;  %v5233_v2 = vld [vmem:[#allocation7 + $0x2d0] sm:$0xff]  ;;  %v5236_v24 = vld [vmem:[#allocation7 + $0x2e8] sm:$0xff] }
 0x417   : > { %9216 = vmatprep.subr.bf16.mxu0 %v9215_v13 }
 0x419   : > { %8375 = vmatmul.mubr.f32.gmra.mrb[18].mxu0 %v11135_v54  ;;  %v9231_v54 = vpack.c.bf16 %v5234_v38, %v5233_v2  ;;  %v5431_v2 = vld [vmem:[#allocation7 + $0x368] sm:$0xff] }
 0x41a   : > { %8377 = vmatprep.mubr.f32.mxu0 %v11148_v14  ;;  %9218 = vmatpush3.bf16.msra.mxu0 %v9215_v13  ;;  %v5235_v14 = vld [vmem:[#allocation7 + $0x2e0] sm:$0xff]  ;;  %v5421_v13 = vld [vmem:[#allocation7 + $0x318] sm:$0xff] }
 0x41b   : > { %9220 = vmatprep.subr.bf16.mxu0 %v9219_v6 }
 0x41d   : > { %8378 = vmatmul.mubr.f32.gmra.mrb[20].mxu0 %v11145_v10  ;;  %v9235_v10 = vpack.c.bf16 %v5236_v24, %v5235_v14  ;;  %v5433_v14 = vld [vmem:[#allocation7 + $0x378] sm:$0xff] }
 0x41e   : > { %8380 = vmatprep.mubr.f32.mxu0 %v11158_v26  ;;  %9222 = vmatpush3.bf16.msra.mxu0 %v9219_v6  ;;  %v5237_v26 = vld [vmem:[#allocation7 + $0x2f0] sm:$0xff]  ;;  %v5423_v6 = vld [vmem:[#allocation7 + $0x328] sm:$0xff] }
 0x41f   : > { %9224 = vmatprep.subr.bf16.mxu0 %v9223_v34 }
 0x421   : > { %8381 = vmatmul.mubr.f32.gmra.mrb[22].mxu0 %v11155_v18  ;;  %v9239_v18 = vpack.c.bf16 %v5238_v12, %v5237_v26  ;;  %v5613_v26 = vld [vmem:[#allocation7 + $0x388] sm:$0xff]  ;;  %v5614_v12 = vld [vmem:[#allocation7 + $0x390] sm:$0xff] }
 0x422   : > { %8383 = vmatprep.mubr.f32.mxu0 %v11168_v31  ;;  %9226 = vmatpush3.bf16.msra.mxu0 %v9223_v34  ;;  %v5418_v31 = vld [vmem:[#allocation7 + $0x300] sm:$0xff]  ;;  %v5428_v34 = vld [vmem:[#allocation7 + $0x350] sm:$0xff] }
 0x423   : > { %9228 = vmatprep.subr.bf16.mxu0 %v9227_v8  ;;  %v9263_v11 = vpack.c.bf16 %v5429_v7, %v5428_v34  ;;  %v11521_v34 = vld [vmem:[#allocation15_spill] sm:$0xff] }
 0x425   : > { %8384 = vmatmul.mubr.f32.gmra.mrb[24].mxu0 %v11165_v48  ;;  %v11518_v48 = vmax.f32 %v11196_v56, 0.0  ;;  %v5424_v56 = vld [vmem:[#allocation7 + $0x330] sm:$0xff] }
 0x426   : > { %8386 = vmatprep.mubr.f32.mxu0 %v11178_v61  ;;  %9230 = vmatpush3.bf16.msra.mxu0 %v9227_v8  ;;  %v9243_v61 = vpack.c.bf16 %v5419_v63, %v5418_v31  ;;  %v9255_v32 = vpack.c.bf16 %v5425_v35, %v5424_v56  ;;  %v5430_v8 = vld [vmem:[#allocation7 + $0x360] sm:$0xff]  ;;  %v5617_v31 = vld [vmem:[#allocation7 + $0x3a8] sm:$0xff]  ;;  %v5619_v63 = vld [vmem:[#allocation7 + $0x3b8] sm:$0xff] }
 0x427   : > { %9232 = vmatprep.subr.bf16.mxu0 %v9231_v54  ;;  %v9267_v38 = vpack.c.bf16 %v5431_v2, %v5430_v8  ;;  %v5607_v35 = vld [vmem:[#allocation3 + $0xc1] sm:$0xff] }
 0x429   : > { %8387 = vmatmul.mubr.f32.gmra.mrb[26].mxu0 %v11175_v33  ;;  %v9247_v33 = vpack.c.bf16 %v5421_v13, %v5420_v49  ;;  %v5625_v49 = vld [vmem:[#allocation7 + $0x3e8] sm:$0xff]  ;;  %v5627_v13 = vld [vmem:[#allocation7 + $0x3f8] sm:$0xff] }
 0x42a   : > { %8389 = vmatprep.mubr.f32.mxu0 %v11188_v19  ;;  %9234 = vmatpush3.bf16.msra.mxu0 %v9231_v54  ;;  %v5422_v19 = vld [vmem:[#allocation7 + $0x320] sm:$0xff]  ;;  %v5432_v54 = vld [vmem:[#allocation7 + $0x370] sm:$0xff] }
 0x42b   : > { %9236 = vmatprep.subr.bf16.mxu0 %v9235_v10  ;;  %v9271_v24 = vpack.c.bf16 %v5433_v14, %v5432_v54 }
 0x42d   : > { %8390 = vmatmul.mubr.f32.gmra.mrb[28].mxu0 %v11185_v3  ;;  %v9251_v3 = vpack.c.bf16 %v5423_v6, %v5422_v19  ;;  %v5602_v19 = vld [vmem:[#allocation3 + $0x81] sm:$0xff]  ;;  %v5604_v6 = vld [vmem:[#allocation3 + $0x99] sm:$0xff] }
 0x42e   : > { %8392 = vmatprep.mubr.f32.mxu0 %v11518_v48  ;;  %9238 = vmatpush3.bf16.msra.mxu0 %v9235_v10  ;;  %v5612_v10 = vld [vmem:[#allocation7 + $0x380] sm:$0xff]  ;;  %v5621_v48 = vld [vmem:[#allocation7 + $0x3c8] sm:$0xff] }
 0x42f   : > { %9240 = vmatprep.subr.bf16.mxu0 %v9239_v18 }
 0x431   : > { %8393 = vmatmul.mubr.f32.gmra.mrb[30].mxu0 %v11519_v25  ;;  %v5600_v25 = vld [vmem:[#allocation3 + $0x69] sm:$0xff] }
 0x432   : > { %9242 = vmatpush3.bf16.msra.mxu0 %v9239_v18  ;;  %8427 = vmatprep.mubr.f32.mxu0 %v11269_v20  ;;  %v5426_v20 = vld [vmem:[#allocation7 + $0x340] sm:$0xff]  ;;  %v5615_v18 = vld [vmem:[#allocation7 + $0x398] sm:$0xff] }
 0x433   : > { %9244 = vmatprep.subr.bf16.mxu0 %v9243_v61 }
 0x435   : > { %8428 = vmatmul.mubr.f32.vlgmr.msra.gmra.mrb[16].mxu0 %v11272_v36  ;;  %v9259_v36 = vpack.c.bf16 %v5427_v23, %v5426_v20  ;;  %v5608_v23 = vld [vmem:[#allocation3 + $0xc9] sm:$0xff] }
 0x436   : > { %8430 = vmatprep.mubr.f32.mxu0 %v11275_v62  ;;  %9246 = vmatpush3.bf16.msra.mxu0 %v9243_v61  ;;  %v5623_v61 = vld [vmem:[#allocation7 + $0x3d8] sm:$0xff] }
 0x437   : > { %9248 = vmatprep.subr.bf16.mxu0 %v9247_v33 }
 0x439   : > { %8431 = vmatmul.mubr.f32.gmra.mrb[18].mxu0 %v11278_v17 }
 0x43a   : > { %8433 = vmatprep.mubr.f32.mxu0 %v11281_v59  ;;  %9250 = vmatpush3.bf16.msra.mxu0 %v9247_v33  ;;  %v5601_v33 = vld [vmem:[#allocation3 + $0x79] sm:$0xff] }
 0x43b   : > { %9252 = vmatprep.subr.bf16.mxu0 %v9251_v3 }
 0x43d   : > { %8434 = vmatmul.mubr.f32.gmra.mrb[20].mxu0 %v11284_v16 }
 0x43e   : > { %8436 = vmatprep.mubr.f32.mxu0 %v11287_v42  ;;  %9254 = vmatpush3.bf16.msra.mxu0 %v9251_v3 }
 0x43f   : > { %9256 = vmatprep.subr.bf16.mxu0 %v9255_v32 }
 0x441   : > { %8437 = vmatmul.mubr.f32.gmra.mrb[22].mxu0 %v11290_v51 }
 0x442   : > { %8439 = vmatprep.mubr.f32.mxu0 %v11293_v55  ;;  %9258 = vmatpush3.bf16.msra.mxu0 %v9255_v32  ;;  %v11520_v32 = vld [vmem:[#allocation14_spill] sm:$0xff] }
 0x443   : > { %9260 = vmatprep.subr.bf16.mxu0 %v9259_v36 }
 0x445   : > { %8440 = vmatmul.mubr.f32.gmra.mrb[24].mxu0 %v11296_v22 }
 0x446   : > { %8442 = vmatprep.mubr.f32.mxu0 %v11205_v37  ;;  %9262 = vmatpush3.bf16.msra.mxu0 %v9259_v36  ;;  %v9275_v37 = vpack.c.bf16 %v5613_v26, %v5612_v10 }
 0x447   : > { %9264 = vmatprep.subr.bf16.mxu0 %v9263_v11 }
 0x449   : > { %8443 = vmatmul.mubr.f32.gmra.mrb[26].mxu0 %v11210_v57  ;;  %v9279_v57 = vpack.c.bf16 %v5615_v18, %v5614_v12 }
 0x44a   : > { %8445 = vmatprep.mubr.f32.mxu0 %v11218_v50  ;;  %9266 = vmatpush3.bf16.msra.mxu0 %v9263_v11  ;;  %v5616_v50 = vld [vmem:[#allocation7 + $0x3a0] sm:$0xff] }
 0x44b   : > { %9268 = vmatprep.subr.bf16.mxu0 %v9267_v38 }
 0x44d   : > { %8446 = vmatmul.mubr.f32.gmra.mrb[28].mxu0 %v11221_v52  ;;  %v9283_v52 = vpack.c.bf16 %v5617_v31, %v5616_v50 }
 0x44e   : > { %8448 = vmatprep.mubr.f32.mxu0 %v11230_v27  ;;  %9270 = vmatpush3.bf16.msra.mxu0 %v9267_v38  ;;  %v5618_v27 = vld [vmem:[#allocation7 + $0x3b0] sm:$0xff] }
 0x44f   : > { %9272 = vmatprep.subr.bf16.mxu0 %v9271_v24 }
 0x451   : > { %8449 = vmatmul.mubr.f32.gmra.mrb[30].mxu0 %v11233_v29  ;;  %v5620_v29 = vld [vmem:[#allocation7 + $0x3c0] sm:$0xff] }
 0x452   : > { %9274 = vmatpush3.bf16.msra.mxu0 %v9271_v24  ;;  %8483 = vmatprep.mubr.f32.mxu0 %v11227_v21  ;;  %v9287_v21 = vpack.c.bf16 %v5619_v63, %v5618_v27 }
 0x453   : > { %9276 = vmatprep.subr.bf16.mxu0 %v9275_v37 }
 0x455   : > { %8484 = vmatmul.mubr.f32.vlgmr.msra.gmra.mrb[16].mxu0 %v11235_v9  ;;  %v9291_v9 = vpack.c.bf16 %v5621_v48, %v5620_v29 }
 0x456   : > { %8486 = vmatprep.mubr.f32.mxu0 %v11239_v15  ;;  %9278 = vmatpush3.bf16.msra.mxu0 %v9275_v37  ;;  %v5622_v15 = vld [vmem:[#allocation7 + $0x3d0] sm:$0xff] }
 0x457   : > { %9280 = vmatprep.subr.bf16.mxu0 %v9279_v57 }
 0x459   : > { %8487 = vmatmul.mubr.f32.gmra.mrb[18].mxu0 %v11242_v47  ;;  %v9295_v47 = vpack.c.bf16 %v5623_v61, %v5622_v15 }
 0x45a   : > { %8489 = vmatprep.mubr.f32.mxu0 %v11245_v45  ;;  %9282 = vmatpush3.bf16.msra.mxu0 %v9279_v57  ;;  %v5624_v45 = vld [vmem:[#allocation7 + $0x3e0] sm:$0xff] }
 0x45b   : > { %9284 = vmatprep.subr.bf16.mxu0 %v9283_v52 }
 0x45d   : > { %8490 = vmatmul.mubr.f32.gmra.mrb[20].mxu0 %v11248_v0  ;;  %v9299_v0 = vpack.c.bf16 %v5625_v49, %v5624_v45 }
 0x45e   : > { %8492 = vmatprep.mubr.f32.mxu0 %v11251_v53  ;;  %9286 = vmatpush3.bf16.msra.mxu0 %v9283_v52  ;;  %v5626_v53 = vld [vmem:[#allocation7 + $0x3f0] sm:$0xff] }
 0x45f   : > { %9288 = vmatprep.subr.bf16.mxu0 %v9287_v21 }
 0x461   : > { %8493 = vmatmul.mubr.f32.gmra.mrb[22].mxu0 %v11254_v44  ;;  %v9303_v44 = vpack.c.bf16 %v5627_v13, %v5626_v53 }
 0x462   : > { %8495 = vmatprep.mubr.f32.mxu0 %v11257_v46  ;;  %9290 = vmatpush3.bf16.msra.mxu0 %v9287_v21  ;;  %v9806_v46 = vld [vmem:[#allocation2] sm:$0xff] }
 0x463   : > { %9292 = vmatprep.subr.bf16.mxu0 %v9291_v9 }
 0x465   : > { %8496 = vmatmul.mubr.f32.gmra.mrb[24].mxu0 %v11260_v1  ;;  %v5595_v1 = vld [vmem:[#allocation3 + $0x31] sm:$0xff] }
 0x466   : > { %8498 = vmatprep.mubr.f32.mxu0 %v11263_v4  ;;  %9294 = vmatpush3.bf16.msra.mxu0 %v9291_v9  ;;  %v5596_v4 = vld [vmem:[#allocation3 + $0x39] sm:$0xff] }
 0x467   : > { %9296 = vmatprep.subr.bf16.mxu0 %v9295_v47 }
 0x469   : > { %8499 = vmatmul.mubr.f32.gmra.mrb[26].mxu0 %v11266_v40  ;;  %v5597_v40 = vld [vmem:[#allocation3 + $0x49] sm:$0xff] }
 0x46a   : > { %8501 = vmatprep.mubr.f32.mxu0 %v11317_v43  ;;  %9298 = vmatpush3.bf16.msra.mxu0 %v9295_v47  ;;  %v5598_v43 = vld [vmem:[#allocation3 + $0x51] sm:$0xff] }
 0x46b   : > { %9300 = vmatprep.subr.bf16.mxu0 %v9299_v0 }
 0x46d   : > { %8502 = vmatmul.mubr.f32.gmra.mrb[28].mxu0 %v11320_v60  ;;  %v5599_v60 = vld [vmem:[#allocation3 + $0x61] sm:$0xff] }
 0x46e   : > { %9302 = vmatpush3.bf16.msra.mxu0 %v9299_v0  ;;  %8504 = vmatprep.mubr.f32.mxu0 %v9806_v46 }
 0x46f   : > { %9304 = vmatprep.subr.bf16.mxu0 %v9303_v44 }
 0x471   : > { %8505 = vmatmul.mubr.f32.gmra.mrb[30].mxu0 %v9806_v46 }
 0x472   : > { %9306 = vmatpush3.bf16.msra.mxu0 %v9303_v44  ;;  %8539 = vmatprep.mubr.f32.mxu0 %v5595_v1 }
 0x473   : > { %9308 = vmatprep.subr.bf16.mxu0 %v11084_v5 }
 0x475   : > { %8540 = vmatmul.mubr.f32.vlgmr.msra.gmra.mrb[16].mxu0 %v5596_v4 }
 0x476   : > { %8542 = vmatprep.mubr.f32.mxu0 %v5597_v40  ;;  %9310 = vmatpush3.bf16.msra.mxu0 %v11084_v5  ;;  %v5603_v5 = vld [vmem:[#allocation3 + $0x91] sm:$0xff] }
 0x477   : > { %9312 = vmatprep.subr.bf16.mxu0 %v11088_v39 }
 0x479   : > { %8543 = vmatmul.mubr.f32.gmra.mrb[18].mxu0 %v5598_v43 }
 0x47a   : > { %8545 = vmatprep.mubr.f32.mxu0 %v5599_v60  ;;  %9314 = vmatpush3.bf16.msra.mxu0 %v11088_v39  ;;  %v5605_v39 = vld [vmem:[#allocation3 + $0xa9] sm:$0xff] }
 0x47b   : > { %9316 = vmatprep.subr.bf16.mxu0 %v11092_v30 }
 0x47d   : > { %8546 = vmatmul.mubr.f32.gmra.mrb[20].mxu0 %v5600_v25 }
 0x47e   : > { %8548 = vmatprep.mubr.f32.mxu0 %v5601_v33  ;;  %9318 = vmatpush3.bf16.msra.mxu0 %v11092_v30  ;;  %v5606_v30 = vld [vmem:[#allocation3 + $0xb1] sm:$0xff] }
 0x47f   : > { %9320 = vmatprep.subr.bf16.mxu0 %v11096_v28 }
 0x481   : > { %8549 = vmatmul.mubr.f32.gmra.mrb[22].mxu0 %v5602_v19 }
 0x482   : > { %8551 = vmatprep.mubr.f32.mxu0 %v5603_v5  ;;  %9322 = vmatpush3.bf16.msra.mxu0 %v11096_v28  ;;  %v5609_v28 = vld [vmem:[#allocation3 + $0xd9] sm:$0xff] }
 0x483   : > { %9324 = vmatprep.subr.bf16.mxu0 %v11100_v58 }
 0x485   : > { %8552 = vmatmul.mubr.f32.gmra.mrb[24].mxu0 %v5604_v6 }
 0x486   : > { %8554 = vmatprep.mubr.f32.mxu0 %v5605_v39  ;;  %9326 = vmatpush3.bf16.msra.mxu0 %v11100_v58  ;;  %v5610_v58 = vld [vmem:[#allocation3 + $0xe1] sm:$0xff] }
 0x487   : > { %9328 = vmatprep.subr.bf16.mxu0 %v11104_v41 }
 0x488   : > { %v8609_v3 = vpop.f32.mrb[32].mxu1 }
 0x489   : > { %v5928_v56 = vpop.f32.mrb[33].mxu1  ;;  %8555 = vmatmul.mubr.f32.gmra.mrb[26].mxu0 %v5606_v30 }
 0x48a   : > { %8557 = vmatprep.mubr.f32.mxu0 %v5607_v35  ;;  %9330 = vmatpush3.bf16.msra.mxu0 %v11104_v41 }
 0x48b   : > { %9332 = vmatprep.subr.bf16.mxu0 %v11520_v32 }
 0x48c   : > { %v8612_v20 = vpop.f32.mrb[34].mxu1 }
 0x48d   : > { %v5938_v36 = vpop.f32.mrb[35].mxu1  ;;  %8558 = vmatmul.mubr.f32.gmra.mrb[28].mxu0 %v5608_v23 }
 0x48e   : > { %9334 = vmatpush3.bf16.msra.mxu0 %v11520_v32  ;;  %8560 = vmatprep.mubr.f32.mxu0 %v5609_v28 }
 0x48f   : > { %9336 = vmatprep.subr.bf16.mxu0 %v11521_v34 }
 0x490   : > { %v8615_v7 = vpop.f32.mrb[36].mxu1 }
 0x491   : > { %v5948_v11 = vpop.f32.mrb[37].mxu1  ;;  %8561 = vmatmul.mubr.f32.gmra.mrb[30].mxu0 %v5610_v58 }
 0x492   : > { %9338 = vmatpush3.bf16.msra.mxu0 %v11521_v34  ;;  %8595 = vmatprep.mubr.f32.mxu0 %v11275_v62  ;;  %v11399_v62 = vld [vmem:[%s11495_s6] ss:$0 sm:$0xff] }
 0x495   : > { %8596 = vmatmul.mubr.f32.vlgmr.msra.gmra.mrb[16].mxu0 %v11278_v17 }
 0x496   : > { %8598 = vmatprep.mubr.f32.mxu0 %v11281_v59 }
 0x499   : > { %8599 = vmatmul.mubr.f32.gmra.mrb[18].mxu0 %v11284_v16 }
 0x49a   : > { %8601 = vmatprep.mubr.f32.mxu0 %v11287_v42 }
 0x49d   : > { %8602 = vmatmul.mubr.f32.gmra.mrb[20].mxu0 %v11290_v51 }
 0x49e   : > { %8604 = vmatprep.mubr.f32.mxu0 %v11293_v55 }
 0x4a1   : > { %8605 = vmatmul.mubr.f32.gmra.mrb[22].mxu0 %v11296_v22 }
 0x4df   : > { %v8618_v41 = vpop.f32.mrb[38].mxu1 }
 0x4e0   : > { %v5958_v8 = vpop.f32.mrb[39].mxu1 }
 0x558   : > { %v8553_v2 = vpop.f32.mrb[24].mxu0 }
 0x559   : > { %v9371_v17 = vadd.f32 %v8609_v3, %v8553_v2  ;;  %v5734_v59 = vpop.f32.mrb[25].mxu0 }
 0x55a   : > { %v9372_v16 = vadd.f32 %v5928_v56, %v5734_v59 }
 0x55b   : > { %v5999_v42 = vadd.f32 %v9371_v17, %v11399_v62 }
 0x55c   : > { %v5998_v51 = vadd.f32 %v9372_v16, %v11399_v62  ;;  %v8556_v55 = vpop.f32.mrb[26].mxu0 }
 0x55d   : > { %v6015_v22 = vmax.f32 %v5999_v42, 0.0  ;;  %v9373_v38 = vadd.f32 %v8612_v20, %v8556_v55  ;;  %v5744_v54 = vpop.f32.mrb[27].mxu0 }
 0x55e   : > { %v6014_v14 = vmax.f32 %v5998_v51, 0.0  ;;  %v9374_v24 = vadd.f32 %v5938_v36, %v5744_v54 }
 0x55f   : > { %6031 = vst [vmem:[%s11405_s16 + $0x48] sm:$0xff] %v6015_v22  ;;  %v6001_v10 = vadd.f32 %v9373_v38, %v11399_v62 }
 0x560   : > { %6030 = vst [vmem:[%s11405_s16 + $0x40] sm:$0xff] %v6014_v14  ;;  %v6000_v26 = vadd.f32 %v9374_v24, %v11399_v62  ;;  %v8559_v37 = vpop.f32.mrb[28].mxu0 }
 0x561   : > { %v6017_v12 = vmax.f32 %v6001_v10, 0.0  ;;  %v9375_v18 = vadd.f32 %v8615_v7, %v8559_v37  ;;  %v5754_v57 = vpop.f32.mrb[29].mxu0 }
 0x562   : > { %v6016_v50 = vmax.f32 %v6000_v26, 0.0  ;;  %v9376_v31 = vadd.f32 %v5948_v11, %v5754_v57 }
 0x563   : > { %6033 = vst [vmem:[%s11405_s16 + $0x58] sm:$0xff] %v6017_v12  ;;  %v6003_v52 = vadd.f32 %v9375_v18, %v11399_v62 }
 0x564   : > { %6032 = vst [vmem:[%s11405_s16 + $0x50] sm:$0xff] %v6016_v50  ;;  %v6002_v27 = vadd.f32 %v9376_v31, %v11399_v62  ;;  %v8562_v63 = vpop.f32.mrb[30].mxu0 }
 0x565   : > { %v6019_v21 = vmax.f32 %v6003_v52, 0.0  ;;  %v9377_v29 = vadd.f32 %v8618_v41, %v8562_v63  ;;  %v5764_v48 = vpop.f32.mrb[31].mxu0 }
 0x566   : > { %v6018_v9 = vmax.f32 %v6002_v27, 0.0  ;;  %v9378_v15 = vadd.f32 %v5958_v8, %v5764_v48 }
 0x567   : > { %6035 = vst [vmem:[%s11405_s16 + $0x68] sm:$0xff] %v6019_v21  ;;  %v6005_v61 = vadd.f32 %v9377_v29, %v11399_v62 }
 0x568   : > { %6034 = vst [vmem:[%s11405_s16 + $0x60] sm:$0xff] %v6018_v9  ;;  %v6004_v47 = vadd.f32 %v9378_v15, %v11399_v62  ;;  %v8597_v45 = vpop.f32.mrb[16].mxu0 }
 0x569   : > { %v6021_v49 = vmax.f32 %v6005_v61, 0.0  ;;  %v5991_v0 = vadd.f32 %v8597_v45, %v11399_v62  ;;  %v5888_v53 = vpop.f32.mrb[17].mxu0 }
 0x56a   : > { %v6020_v13 = vmax.f32 %v6004_v47, 0.0  ;;  %v5990_v44 = vadd.f32 %v11399_v62, %v5888_v53 }
 0x56b   : > { %6037 = vst [vmem:[%s11405_s16 + $0x78] sm:$0xff] %v6021_v49  ;;  %v6007_v46 = vmax.f32 %v5991_v0, 0.0 }
 0x56c   : > { %6036 = vst [vmem:[%s11405_s16 + $0x70] sm:$0xff] %v6020_v13  ;;  %v6006_v1 = vmax.f32 %v5990_v44, 0.0  ;;  %v8600_v4 = vpop.f32.mrb[18].mxu0 }
 0x56d   : > { %6023 = vst [vmem:[%s11405_s16 + $0x8] sm:$0xff] %v6007_v46  ;;  %v5993_v40 = vadd.f32 %v8600_v4, %v11399_v62  ;;  %v5898_v43 = vpop.f32.mrb[19].mxu0 }
 0x56e   : > { %6022 = vst [vmem:[%s11405_s16] sm:$0xff] %v6006_v1  ;;  %v5992_v60 = vadd.f32 %v11399_v62, %v5898_v43 }
 0x56f   : > { %v6009_v25 = vmax.f32 %v5993_v40, 0.0 }
 0x570   : > { %v6008_v33 = vmax.f32 %v5992_v60, 0.0  ;;  %v8603_v19 = vpop.f32.mrb[20].mxu0 }
 0x571   : > { %6025 = vst [vmem:[%s11405_s16 + $0x18] sm:$0xff] %v6009_v25  ;;  %v5995_v5 = vadd.f32 %v8603_v19, %v11399_v62  ;;  %v5908_v6 = vpop.f32.mrb[21].mxu0 }
 0x572   : > { %6024 = vst [vmem:[%s11405_s16 + $0x10] sm:$0xff] %v6008_v33  ;;  %v5994_v39 = vadd.f32 %v11399_v62, %v5908_v6 }
 0x573   : > { %v6011_v3 = vmax.f32 %v5995_v5, 0.0 }
 0x574   : > { %v6010_v30 = vmax.f32 %v5994_v39, 0.0  ;;  %v8606_v56 = vpop.f32.mrb[22].mxu0 }
 0x575   : > { %6027 = vst [vmem:[%s11405_s16 + $0x28] sm:$0xff] %v6011_v3  ;;  %v5997_v35 = vadd.f32 %v8606_v56, %v11399_v62  ;;  %v5918_v32 = vpop.f32.mrb[23].mxu0 }
 0x576   : > { %6026 = vst [vmem:[%s11405_s16 + $0x20] sm:$0xff] %v6010_v30  ;;  %v5996_v28 = vadd.f32 %v11399_v62, %v5918_v32 }
 0x577   : > { %v6013_v20 = vmax.f32 %v5997_v35, 0.0 }
 0x578   : > { %v6012_v23 = vmax.f32 %v5996_v28, 0.0 }
 0x579   : > { %6029 = vst [vmem:[%s11405_s16 + $0x38] sm:$0xff] %v6013_v20 }
 0x57a   : > { %6028 = vst [vmem:[%s11405_s16 + $0x30] sm:$0xff] %v6012_v23 }
 0x57b   : > { %9876 = shalt.err (!%p9873_p11)
}
 0x57c   : > { %s9877_s9 = scalar_lea.hbm %s11440_s21, 2048  ;;  %s9881_s19 = scalar_lea.hbm %s11496_s7, 4096 }
 0x57d   : > { %p9878_p13 = scmp.ne.s32.totalorder %s11440_s21, %s9877_s9  ;;  %p9882_p6 = scmp.lt.u32.totalorder %s11440_s21, %s11496_s7 }
 0x57e   : > { %p9883_p9 = scmp.lt.u32.totalorder %s9881_s19, %s9877_s9  ;;  %p9885_p12 = scmp.lt.u32.totalorder %s9877_s9, %s11440_s21 }
 0x57f   : > { %p9879_p5 = pnand %p9878_p13, %p11522_p1 }
 0x580   : > { %p9884_p10 = por %p9883_p9, %p9882_p6 }
 0x581   : > { %p9880_p0 = pneg %p9879_p5 }
 0x582   : > { %p9886_p2 = por %p9885_p12, %p9884_p10 }
 0x584   : > { %p9887_p3 = pnand %p9886_p2, %p9880_p0 }
 0x586   : > { %9890 = shalt.err (!%p9887_p3)
}
 0x587   : > { %s9941_s14 = smov 128   ;;  %s9942_s17 = smov 8  }
 0x588   : > { %9748 = dma.vmem_to_hbm [thread:$0]  (%p11522_p1), %s11442_s13, 2048, %s11440_s21, %s11448_s28, %s9941_s14, %s9941_s14, %s9942_s17  }
 0x589 PF: > { %p9765_p4 = scmp.ge.s32.totalorder %s9933_s27, 2  ;;  %s6067_s20 = sand.u32 1, %s9921_s24  }
 0x58a   : > { %p11523_p7 = scmp.ne.s32.totalorder %s11508_s12, 0  ;;  %s6068_s22 = scalar_lea.sflag [#allocation6], %s6067_s20 }
 0x58c   : > { %p9758_p8 = pnand %p9765_p4, %p11523_p7 }
 0x58e   : > { %9916 = dma.done.wait (!%p9758_p8), %s6068_s22, 2048  }
 0x58f   : > { %9918 = vsyncadd (!%p9758_p8), %s6068_s22, 4294965248  ;;  %s11524_s23 = sld [smem:[#allocation13_spill]]  ;;  %p19_p11 = scmp.ge.s32.totalorder %s10008_s30, 4  }
 0x590   : > { %s11525_s24 = smov %s9925_s25  ;;  %s11526_s25 = smov %s9929_s26 }
 0x591   : > { %s11528_s27 = smov %s10008_s30  ;;  %21 = sbr.rel (!%p19_p11) target bundleno = 5 (0x5), region = 122 }
 0x595   : > { %s11527_s26 = smov %s11524_s23 }
 0x598   :  { %6073 = vsyncpa [#allocation5], 1 }
 0x599   :  { %6075 = vsyncpa [#allocation5 + $0x1], 1 }
 0x59a   :  { %6076 = vsyncpa [#allocation8], 1 }
 0x59b   :  { %6077 = vsyncpa [#allocation6], 1 }
 0x59c   :  { %6079 = vsyncpa [#allocation6 + $0x1], 1 }

</bundles_post_ra>
